<compile_context>
chip_gen: v6e
topology: v6e:2x2x1
jax: 0.10.0
libtpu: 0.0.40
codegen_flags: <defaults>
</compile_context>

<pallas_src>
import functools
import numpy as np

import jax
import jax.numpy as jnp
from jax import lax
from jax.experimental import pallas as pl
from jax.experimental.pallas import tpu as pltpu

# ---------------------------- configuration ----------------------------
IMG_SIZE = 16
PATCH_SIZE = 4
IN_CHANNEL = 3
EMBED_DIM = 48
DEPTH = 4
NUM_HEADS = 3
MLP_RATIO = 4.0
NUM_CLASSES = 10
REDUCE_LOCATION = (2,)
NUM_TOKENS = (8,)            # tokens kept after each reduction

GRID_HW = IMG_SIZE // PATCH_SIZE
NUM_PATCHES = GRID_HW * GRID_HW                      # 16
PATCH_DIM = IN_CHANNEL * PATCH_SIZE * PATCH_SIZE     # 48
MLP_HIDDEN = int(EMBED_DIM * MLP_RATIO)              # 192
HEAD_DIM = EMBED_DIM // NUM_HEADS                    # 16
ATTN_SCALE = HEAD_DIM ** (-0.5)                      # 0.25 (exact power of two)
HEAD_PAD = 128                                       # lane-dense classifier store
TB_TARGET = 8                                        # images per grid step
NEG_INF = -1e30

F32 = jnp.float32
BF16 = jnp.bfloat16


def _pad8(n):
    return ((n + 7) // 8) * 8


NP0 = _pad8(NUM_PATCHES + 1)            # 24 padded token rows before reduction
GWP_W = _pad8(max(NUM_TOKENS) + 1)      # 16 padded token rows after reduction
NUM_RED = len(REDUCE_LOCATION)

# row offsets inside the f32 constant-row table (width = EMBED_DIM)
R_EMBED = 0                             # NP0 rows: additive embed (cls+pos / pos+b)
R_LN1G = R_EMBED + NP0
R_LN1B = R_LN1G + DEPTH
R_LN2G = R_LN1B + DEPTH
R_LN2B = R_LN2G + DEPTH
R_BPROJ = R_LN2B + DEPTH
R_B2 = R_BPROJ + DEPTH
R_NORMG = R_B2 + DEPTH
R_NORMB = R_NORMG + 1
R_GCN = R_NORMB + 1                     # per reducer: gb0,gb1,gb2, ln_g, ln_b, bp
N_CONST_ROWS = R_GCN + 6 * NUM_RED


# ---------------------------- in-kernel helpers ----------------------------
def _layernorm(x, g, b, eps):
    mu = jnp.mean(x, axis=-1, keepdims=True)
    var = jnp.mean(jnp.square(x - mu), axis=-1, keepdims=True)
    return (x - mu) * lax.rsqrt(var + eps) * g + b


def _gelu_exact(x):
    # matches torch.nn.GELU() (erf formulation), kept in f32
    return 0.5 * x * (1.0 + lax.erf(x * 0.7071067811865476))


# ---------------------------- fused forward kernel ----------------------------
def fused_vit_kernel(patches_ref, consts_ref, adj_ref, bqkv_ref, b1_ref,
                     sqw_ref, wqkv_ref, w1_ref, w2_ref, gw_ref, gwp_ref,
                     headw_ref, headb_ref, out_ref, *, tb):
    C = EMBED_DIM
    hd = HEAD_DIM

    def crow(r):                         # (1, C) f32 row of the constant table
        return consts_ref[pl.ds(r, 1), :]

    def mm_bf16(a, w_bf16):              # bf16 operands, f32 accumulation (MXU)
        return jnp.dot(a.astype(BF16), w_bf16, preferred_element_type=F32)

    # ---- patch embedding (conv-as-matmul) + cls token + positional embedding ----
    np_cur = NP0                         # padded token rows (17 real -> 24)
    n_real = NUM_PATCHES + 1
    patches2 = patches_ref[...].reshape(tb * np_cur, PATCH_DIM)
    x2 = mm_bf16(patches2, sqw_ref[0])                         # (tb*NP0, C)
    embed_add = consts_ref[pl.ds(R_EMBED, NP0), :]             # (NP0, C)
    x2 = (x2.reshape(tb, np_cur, C) + embed_add[None]).reshape(tb * np_cur, C)

    # per-image column-weight row: doubles as padding mask and as the reference's
    # token_weight (all-ones over real body tokens initially).
    col = lax.broadcasted_iota(jnp.int32, (1, 1, np_cur), 2)
    w_col = jnp.broadcast_to((col < n_real).astype(F32), (tb, 1, np_cur))

    ridx = 0
    for d in range(DEPTH):
        # ---------------- soft token reduction (GCN pooling) ----------------
        if d in REDUCE_LOCATION:
            n_out = NUM_TOKENS[ridx]
            x3 = x2.reshape(tb, np_cur, C)
            rg = R_GCN + 6 * ridx
            gb = [crow(rg + i) for i in range(3)]
            gln_g, gln_b = crow(rg + 3), crow(rg + 4)
            bp_row = crow(rg + 5)[:, :GWP_W]                   # (1, GWP_W)

            adj_b = jnp.broadcast_to(adj_ref[...][None], (tb, np_cur, np_cur))

            def gconv(h3, i):
                # f32 throughout: matches the torch reference for the pooling path
                y3 = jnp.einsum('bnm,bmc->bnc', adj_b, h3,
                                preferred_element_type=F32)
                y2 = jnp.dot(y3.reshape(tb * np_cur, C), gw_ref[3 * ridx + i],
                             preferred_element_type=F32) + gb[i]
                ssq = jnp.sum(y2 * y2, axis=-1, keepdims=True)
                return y2 * lax.rsqrt(jnp.maximum(ssq, 1e-24))  # F.normalize(p=2)

            h1 = _layernorm(jnp.maximum(gconv(x3, 0), 0.0), gln_g, gln_b, 1e-5)
            h2 = _layernorm(jnp.maximum(gconv(h1.reshape(tb, np_cur, C), 1), 0.0),
                            gln_g, gln_b, 1e-5)
            h3 = gconv(h2.reshape(tb, np_cur, C), 2)
            # pred over concat([h1,h2,h3]) without materializing the concat
            pred = (jnp.dot(h1, gwp_ref[3 * ridx + 0], preferred_element_type=F32)
                    + jnp.dot(h2, gwp_ref[3 * ridx + 1], preferred_element_type=F32)
                    + jnp.dot(h3, gwp_ref[3 * ridx + 2], preferred_element_type=F32)
                    + bp_row)                                   # (tb*np_cur, GWP_W)
            pred3 = pred.reshape(tb, np_cur, GWP_W)
            m = jnp.max(pred3, axis=-1, keepdims=True)
            e = jnp.exp(pred3 - m)
            s = e * pl.reciprocal(jnp.sum(e, axis=-1, keepdims=True), approx=True)

            # augment the assignment with an identity row/col for the cls token and
            # zero out cls/pad rows -> no sublane-offset concatenates anywhere.
            rid = lax.broadcasted_iota(jnp.int32, (1, np_cur, 1), 1)
            body = jnp.logical_and(rid >= 1, rid < n_real).astype(F32)
            rid2 = lax.broadcasted_iota(jnp.int32, (1, np_cur, GWP_W), 1)
            cid2 = lax.broadcasted_iota(jnp.int32, (1, np_cur, GWP_W), 2)
            cls_ind = jnp.logical_and(rid2 == 0, cid2 == 0).astype(F32)
            s_aug = s * body + cls_ind                          # (tb, np_cur, GWP_W)

            # pooled tokens x_new = S_aug^T @ x ; new token weights = tw @ S_aug
            s_t = jnp.swapaxes(s_aug, 1, 2)                     # (tb, GWP_W, np_cur)
            x3 = jnp.einsum('bmn,bnc->bmc', s_t, x3, preferred_element_type=F32)
            w_col = jnp.einsum('bon,bnm->bom', w_col, s_aug,
                               preferred_element_type=F32)
            # NOTE: pooled adjacency S^T@adj@S only feeds a *further* reducer;
            # with a single reduction stage it is dead compute and skipped.
            np_cur = GWP_W
            n_real = n_out + 1
            x2 = x3.reshape(tb * np_cur, C)
            ridx += 1

        # ---------------- transformer block d ----------------
        tbn = tb * np_cur
        xn = _layernorm(x2, crow(R_LN1G + d), crow(R_LN1B + d), 1e-6)
        qkv = mm_bf16(xn, wqkv_ref[d]) + bqkv_ref[pl.ds(d, 1), :]   # (tbn, 3C)
        qkv3 = qkv.reshape(tb, np_cur, 3 * C).astype(BF16)

        key_ids = lax.broadcasted_iota(jnp.int32, (1, 1, np_cur), 2)
        key_valid = key_ids < n_real
        wb = jnp.broadcast_to(w_col, (tb, np_cur, np_cur))      # hoisted per block

        heads = []
        for h in range(NUM_HEADS):
            q = qkv3[:, :, h * hd:(h + 1) * hd]                 # scale folded in W_q
            k = qkv3[:, :, C + h * hd:C + (h + 1) * hd]
            v = qkv3[:, :, 2 * C + h * hd:2 * C + (h + 1) * hd]
            logits = jnp.einsum('bqd,bkd->bqk', q, k, preferred_element_type=F32)
            logits = jnp.where(key_valid, logits, NEG_INF)      # mask padded keys
            m = jnp.max(logits, axis=-1, keepdims=True)
            e = jnp.exp(logits - m) * wb                        # token-weighted softmax
            p = e * pl.reciprocal(jnp.sum(e, axis=-1, keepdims=True), approx=True)
            heads.append(jnp.einsum('bqk,bkd->bqd', p.astype(BF16), v,
                                    preferred_element_type=F32))
        attn2 = jnp.concatenate(heads, axis=-1).reshape(tbn, C)
        x2 = x2 + mm_bf16(attn2, sqw_ref[1 + d]) + crow(R_BPROJ + d)

        xn2 = _layernorm(x2, crow(R_LN2G + d), crow(R_LN2B + d), 1e-6)
        hid = _gelu_exact(mm_bf16(xn2, w1_ref[d]) + b1_ref[pl.ds(d, 1), :])
        x2 = x2 + mm_bf16(hid, w2_ref[d]) + crow(R_B2 + d)

    # ---- final LayerNorm + classifier; emit the cls row, lane-dense 128 wide ----
    xn = _layernorm(x2, crow(R_NORMG), crow(R_NORMB), 1e-6)
    logits = mm_bf16(xn, headw_ref[...]) + headb_ref[...]       # (tbn, 128)
    out_ref[...] = logits.reshape(tb, np_cur, HEAD_PAD)[:, 0:1, :]


# ---------------------------- pallas_call wrapper ----------------------------
def _const_spec(a):
    nd = a.ndim
    return pl.BlockSpec(a.shape, lambda i: (0,) * nd)


def choose_tile_batch(B):
    # ~8 images/step = ~192 activation rows per MXU pass (fills a 128-row v5e
    # pass, ~75% of a 256-row v6e/v7x push); halve until the grid keeps >= 2
    # steps so dimension_semantics=("parallel",) can use both v7x TensorCores.
    tb = TB_TARGET
    while tb > 1 and -(-B // tb) < 2:
        tb //= 2
    return tb


def fused_forward_call(patches, packed, tb):
    b_pad = patches.shape[0]
    kernel = functools.partial(fused_vit_kernel, tb=tb)
    in_specs = [pl.BlockSpec((tb, NP0, PATCH_DIM), lambda i: (i, 0, 0))]
    in_specs += [_const_spec(a) for a in packed]
    out = pl.pallas_call(
        kernel,
        out_shape=jax.ShapeDtypeStruct((b_pad, 1, HEAD_PAD), F32),
        grid=(b_pad // tb,),
        in_specs=in_specs,
        out_specs=pl.BlockSpec((tb, 1, HEAD_PAD), lambda i: (i, 0, 0)),
        compiler_params=pltpu.CompilerParams(
            dimension_semantics=("parallel",),
            vmem_limit_bytes=8 * 1024 * 1024,
        ),
    )(patches, *packed)
    return out[:, 0, :NUM_CLASSES]


# ---------------------------- host-side glue ----------------------------
def extract_patches(x, p):
    # (B, C, H, W) -> (B, num_patches, C*p*p); feature order (c, kh, kw)
    B, C, H, W = x.shape
    gh, gw = H // p, W // p
    x = x.reshape(B, C, gh, p, gw, p)
    x = jnp.transpose(x, (0, 2, 4, 1, 3, 5))
    return x.reshape(B, gh * gw, C * p * p)


def forward(x_img, packed, tb):
    B = x_img.shape[0]
    patches = extract_patches(x_img, PATCH_SIZE)                 # (B, 16, 48)
    b_pad = -(-B // tb) * tb
    buf = jnp.zeros((b_pad, NP0, PATCH_DIM), F32)                # row 0 = cls slot
    buf = buf.at[:B, 1:1 + NUM_PATCHES, :].set(patches)
    logits = fused_forward_call(buf, packed, tb)
    return logits[:B]


def get_adj(img_size, patch_size):
    # exact replica of TokenReduceViT.get_adj
    H = W = img_size // patch_size
    pos_x, pos_y = np.meshgrid(np.arange(H), np.arange(W))
    pos_x, pos_y = pos_x.flatten(), pos_y.flatten()
    pos_xx = (pos_x[:, None] - pos_x[None, :]) ** 2
    pos_yy = (pos_y[:, None] - pos_y[None, :]) ** 2
    adj = (pos_xx + pos_yy <= 1).astype(float)
    sqrt_deg = np.diag(1.0 / np.sqrt(np.sum(adj, axis=0, dtype=float).squeeze()))
    adj = np.matmul(np.matmul(sqrt_deg, adj), sqrt_deg)
    return np.asarray(adj, dtype=np.float32)


def init_params(key):
    keys = iter(jax.random.split(key, 256))

    def nrm(shape, scale=0.05):
        return (scale * jax.random.normal(next(keys), shape)).astype(F32)

    params = {
        "patch_w": nrm((PATCH_DIM, EMBED_DIM)),
        "patch_b": nrm((EMBED_DIM,), 0.02),
        "cls_token": nrm((1, 1, EMBED_DIM), 0.02),
        "pos_embed": nrm((1, NUM_PATCHES + 1, EMBED_DIM), 0.02),
        "norm_g": jnp.ones((EMBED_DIM,), F32),
        "norm_b": jnp.zeros((EMBED_DIM,), F32),
        "head_w": nrm((EMBED_DIM, NUM_CLASSES)),
        "head_b": jnp.zeros((NUM_CLASSES,), F32),
    }
    blocks = []
    for _ in range(DEPTH):
        blocks.append(dict(
            ln1_g=jnp.ones((EMBED_DIM,), F32),
            ln1_b=jnp.zeros((EMBED_DIM,), F32),
            wqkv=nrm((EMBED_DIM, 3 * EMBED_DIM)),
            bqkv=nrm((3 * EMBED_DIM,), 0.02),          # qkv_bias=True
            wproj=nrm((EMBED_DIM, EMBED_DIM)),
            bproj=jnp.zeros((EMBED_DIM,), F32),
            ln2_g=jnp.ones((EMBED_DIM,), F32),
            ln2_b=jnp.zeros((EMBED_DIM,), F32),
            w1=nrm((EMBED_DIM, MLP_HIDDEN)),
            b1=jnp.zeros((MLP_HIDDEN,), F32),
            w2=nrm((MLP_HIDDEN, EMBED_DIM)),
            b2=jnp.zeros((EMBED_DIM,), F32),
        ))
    params["blocks"] = blocks

    preds = []
    for n_out in NUM_TOKENS:
        D = EMBED_DIM
        preds.append(dict(
            w1=nrm((D, D), 0.1), b1=jnp.zeros((D,), F32),
            w2=nrm((D, D), 0.1), b2=jnp.zeros((D,), F32),
            w3=nrm((D, D), 0.1), b3=jnp.zeros((D,), F32),
            ln_g=jnp.ones((D,), F32), ln_b=jnp.zeros((D,), F32),
            wp=nrm((3 * D, n_out), 0.1), bp=jnp.zeros((n_out,), F32),
        ))
    params["predictors"] = preds
    return params


def pack_params(params, adj_base):
    """Consolidate every parameter into 12 VMEM-resident kernel inputs."""
    C, D = EMBED_DIM, DEPTH
    blocks = params["blocks"]

    # ---- one f32 row table for every (., C)-shaped constant vector ----
    rows = np.zeros((N_CONST_ROWS, C), np.float32)
    rows[R_EMBED] = (np.array(params["cls_token"]).reshape(C)
                     + np.array(params["pos_embed"])[0, 0])
    rows[R_EMBED + 1: R_EMBED + 1 + NUM_PATCHES] = (
        np.array(params["pos_embed"])[0, 1:] + np.array(params["patch_b"]))
    for d, blk in enumerate(blocks):
        rows[R_LN1G + d] = np.array(blk["ln1_g"])
        rows[R_LN1B + d] = np.array(blk["ln1_b"])
        rows[R_LN2G + d] = np.array(blk["ln2_g"])
        rows[R_LN2B + d] = np.array(blk["ln2_b"])
        rows[R_BPROJ + d] = np.array(blk["bproj"])
        rows[R_B2 + d] = np.array(blk["b2"])
    rows[R_NORMG] = np.array(params["norm_g"])
    rows[R_NORMB] = np.array(params["norm_b"])
    for r, p in enumerate(params["predictors"]):
        base = R_GCN + 6 * r
        rows[base + 0] = np.array(p["b1"])
        rows[base + 1] = np.array(p["b2"])
        rows[base + 2] = np.array(p["b3"])
        rows[base + 3] = np.array(p["ln_g"])
        rows[base + 4] = np.array(p["ln_b"])
        n_out = p["wp"].shape[1]
        bp_row = np.full((C,), NEG_INF, np.float32)   # NEG_INF masks pad columns
        bp_row[1:1 + n_out] = np.array(p["bp"])
        rows[base + 5] = bp_row

    # adjacency in the padded token frame (cls row/col = 0, pad rows/cols = 0)
    adj_aug = np.zeros((NP0, NP0), np.float32)
    adj_aug[1:1 + NUM_PATCHES, 1:1 + NUM_PATCHES] = np.array(adj_base)

    # per-depth weights; attention scale folded into the q third of QKV
    bqkv = np.zeros((D, 3 * C), np.float32)
    b1s = np.zeros((D, MLP_HIDDEN), np.float32)
    wqkv = np.zeros((D, C, 3 * C), np.float32)
    sqw = np.zeros((1 + D, C, C), np.float32)         # [patch_w, proj_0..proj_3]
    w1s = np.zeros((D, C, MLP_HIDDEN), np.float32)
    w2s = np.zeros((D, MLP_HIDDEN, C), np.float32)
    sqw[0] = np.array(params["patch_w"])
    for d, blk in enumerate(blocks):
        w = np.array(blk["wqkv"])
        bq = np.array(blk["bqkv"])
        w[:, :C] *= ATTN_SCALE
        bq[:C] *= ATTN_SCALE
        wqkv[d] = w
        bqkv[d] = bq
        sqw[1 + d] = np.array(blk["wproj"])
        w1s[d] = np.array(blk["w1"])
        b1s[d] = np.array(blk["b1"])
        w2s[d] = np.array(blk["w2"])

    # GCN weights stay f32; pred weights shifted one column right (col 0 = cls)
    gw = np.zeros((3 * NUM_RED, C, C), np.float32)
    gwp = np.zeros((3 * NUM_RED, C, GWP_W), np.float32)
    for r, p in enumerate(params["predictors"]):
        n_out = p["wp"].shape[1]
        gw[3 * r + 0] = np.array(p["w1"])
        gw[3 * r + 1] = np.array(p["w2"])
        gw[3 * r + 2] = np.array(p["w3"])
        wp = np.array(p["wp"])                        # (3C, n_out)
        for i in range(3):
            gwp[3 * r + i, :, 1:1 + n_out] = wp[i * C:(i + 1) * C]

    head_w = np.zeros((C, HEAD_PAD), np.float32)
    head_w[:, :NUM_CLASSES] = np.array(params["head_w"])
    head_b = np.zeros((1, HEAD_PAD), np.float32)
    head_b[0, :NUM_CLASSES] = np.array(params["head_b"])

    packed = (
        jnp.asarray(rows),                            # f32 constant-row table
        jnp.asarray(adj_aug),                         # f32 (NP0, NP0)
        jnp.asarray(bqkv),                            # f32 (D, 3C)
        jnp.asarray(b1s),                             # f32 (D, Hid)
        jnp.asarray(sqw).astype(BF16),                # bf16 (1+D, C, C)
        jnp.asarray(wqkv).astype(BF16),               # bf16 (D, C, 3C)
        jnp.asarray(w1s).astype(BF16),                # bf16 (D, C, Hid)
        jnp.asarray(w2s).astype(BF16),                # bf16 (D, Hid, C)
        jnp.asarray(gw),                              # f32 (3R, C, C)
        jnp.asarray(gwp),                             # f32 (3R, C, GWP_W)
        jnp.asarray(head_w).astype(BF16),             # bf16 (C, 128)
        jnp.asarray(head_b),                          # f32 (1, 128)
    )
    return packed


# ---------------------------- main ----------------------------
if __name__ == "__main__":
    key = jax.random.PRNGKey(0)
    pkey, xkey = jax.random.split(key)
    params = init_params(pkey)
    adj_base = get_adj(IMG_SIZE, PATCH_SIZE)
    packed = pack_params(params, adj_base)

    fwd = jax.jit(forward, static_argnums=(2,))

    # small run (B=2): TB=1, grid=(2,)
    x = jax.random.normal(xkey, (2, IN_CHANNEL, IMG_SIZE, IMG_SIZE), dtype=F32)
    out = fwd(x, packed, choose_tile_batch(x.shape[0]))
    jax.block_until_ready(out)
    assert out.shape == (2, NUM_CLASSES)
    assert bool(jnp.all(jnp.isfinite(out)))

    # batched-throughput path (B=16): TB=8, grid=(2,), ~192 rows per MXU pass
    xb = jax.random.normal(xkey, (16, IN_CHANNEL, IMG_SIZE, IMG_SIZE), dtype=F32)
    outb = fwd(xb, packed, choose_tile_batch(xb.shape[0]))
    jax.block_until_ready(outb)
    assert outb.shape == (16, NUM_CLASSES)
    assert bool(jnp.all(jnp.isfinite(outb)))
    # batching must not change per-image results
    assert bool(jnp.allclose(outb[:2], out, atol=2e-2, rtol=2e-2))

    print("KERNEL_OK")
</pallas_src>

<mosaic_0001>
module attributes {stable_mosaic.version = 11 : i64} {
  func.func @fused_vit_kernel(%arg0: i32, %arg1: memref<1x24x48xf32, #tpu.memory_space<vmem>>, %arg2: memref<56x48xf32, #tpu.memory_space<vmem>>, %arg3: memref<24x24xf32, #tpu.memory_space<vmem>>, %arg4: memref<4x144xf32, #tpu.memory_space<vmem>>, %arg5: memref<4x192xf32, #tpu.memory_space<vmem>>, %arg6: memref<5x48x48xbf16, #tpu.memory_space<vmem>>, %arg7: memref<4x48x144xbf16, #tpu.memory_space<vmem>>, %arg8: memref<4x48x192xbf16, #tpu.memory_space<vmem>>, %arg9: memref<4x192x48xbf16, #tpu.memory_space<vmem>>, %arg10: memref<3x48x48xf32, #tpu.memory_space<vmem>>, %arg11: memref<3x48x16xf32, #tpu.memory_space<vmem>>, %arg12: memref<48x128xbf16, #tpu.memory_space<vmem>>, %arg13: memref<1x128xf32, #tpu.memory_space<vmem>>, %arg14: memref<1x1x128xf32, #tpu.memory_space<vmem>>) attributes {dimension_semantics = [#tpu.dimension_semantics<parallel>], iteration_bounds = array<i64: 2>, scalar_prefetch = 0 : i64, scratch_operands = 0 : i64, tpu.core_type = #tpu.core_type<tc>, window_params = [{transform_indices = @transform_0, window_bounds = array<i64: 1, 24, 48>}, {pipeline_mode = #tpu.pipeline_mode<synchronous>, transform_indices = @transform_1, window_bounds = array<i64: 56, 48>}, {pipeline_mode = #tpu.pipeline_mode<synchronous>, transform_indices = @transform_2, window_bounds = array<i64: 24, 24>}, {pipeline_mode = #tpu.pipeline_mode<synchronous>, transform_indices = @transform_3, window_bounds = array<i64: 4, 144>}, {pipeline_mode = #tpu.pipeline_mode<synchronous>, transform_indices = @transform_4, window_bounds = array<i64: 4, 192>}, {pipeline_mode = #tpu.pipeline_mode<synchronous>, transform_indices = @transform_5, window_bounds = array<i64: 5, 48, 48>}, {pipeline_mode = #tpu.pipeline_mode<synchronous>, transform_indices = @transform_6, window_bounds = array<i64: 4, 48, 144>}, {pipeline_mode = #tpu.pipeline_mode<synchronous>, transform_indices = @transform_7, window_bounds = array<i64: 4, 48, 192>}, {pipeline_mode = #tpu.pipeline_mode<synchronous>, transform_indices = @transform_8, window_bounds = array<i64: 4, 192, 48>}, {pipeline_mode = #tpu.pipeline_mode<synchronous>, transform_indices = @transform_9, window_bounds = array<i64: 3, 48, 48>}, {pipeline_mode = #tpu.pipeline_mode<synchronous>, transform_indices = @transform_10, window_bounds = array<i64: 3, 48, 16>}, {pipeline_mode = #tpu.pipeline_mode<synchronous>, transform_indices = @transform_11, window_bounds = array<i64: 48, 128>}, {pipeline_mode = #tpu.pipeline_mode<synchronous>, transform_indices = @transform_12, window_bounds = array<i64: 1, 128>}, {transform_indices = @transform_13, window_bounds = array<i64: 1, 1, 128>}]} {
    %c0 = arith.constant 0 : index
    %c0_0 = arith.constant 0 : index
    %c0_1 = arith.constant 0 : index
    %0 = vector.load %arg1[%c0, %c0_0, %c0_1] : memref<1x24x48xf32, #tpu.memory_space<vmem>>, vector<1x24x48xf32>
    %1 = vector.shape_cast %0 : vector<1x24x48xf32> to vector<24x48xf32>
    %c0_2 = arith.constant 0 : index
    %c0_3 = arith.constant 0 : index
    %c0_4 = arith.constant 0 : index
    %2 = vector.load %arg6[%c0_2, %c0_3, %c0_4] : memref<5x48x48xbf16, #tpu.memory_space<vmem>>, vector<1x48x48xbf16>
    %3 = vector.shape_cast %2 : vector<1x48x48xbf16> to vector<48x48xbf16>
    %4 = arith.truncf %1 : vector<24x48xf32> to vector<24x48xbf16>
    %cst = arith.constant dense<0.000000e+00> : vector<24x48xf32>
    %5 = tpu.matmul %4, %3, %cst {dimension_numbers = #tpu.dot_dimension_numbers<[1], [0], [0], [1], [0, 0, 1, 1], [], []>} : vector<24x48xbf16>, vector<48x48xbf16>, vector<24x48xf32> -> vector<24x48xf32>
    %c0_5 = arith.constant 0 : index
    %c0_6 = arith.constant 0 : index
    %6 = vector.load %arg2[%c0_5, %c0_6] : memref<56x48xf32, #tpu.memory_space<vmem>>, vector<24x48xf32>
    %7 = vector.shape_cast %5 : vector<24x48xf32> to vector<1x24x48xf32>
    %8 = vector.shape_cast %6 : vector<24x48xf32> to vector<1x24x48xf32>
    %9 = arith.addf %7, %8 : vector<1x24x48xf32>
    %10 = vector.shape_cast %9 : vector<1x24x48xf32> to vector<24x48xf32>
    %11 = tpu.iota {dimensions = array<i32: 2>} : vector<1x1x24xi32>
    %c17_i32 = arith.constant 17 : i32
    %12 = vector.broadcast %c17_i32 : i32 to vector<1x1x24xi32>
    %13 = arith.cmpi slt, %11, %12 : vector<1x1x24xi32>
    %14 = arith.extui %13 : vector<1x1x24xi1> to vector<1x1x24xi32>
    %15 = arith.sitofp %14 : vector<1x1x24xi32> to vector<1x1x24xf32>
    %c24 = arith.constant 24 : index
    %c0_7 = arith.constant 0 : index
    %16 = vector.load %arg2[%c24, %c0_7] : memref<56x48xf32, #tpu.memory_space<vmem>>, vector<1x48xf32>
    %c28 = arith.constant 28 : index
    %c0_8 = arith.constant 0 : index
    %17 = vector.load %arg2[%c28, %c0_8] : memref<56x48xf32, #tpu.memory_space<vmem>>, vector<1x48xf32>
    %cst_9 = arith.constant dense<0.000000e+00> : vector<24xf32>
    %18 = vector.multi_reduction <add>, %10, %cst_9 [1] : vector<24x48xf32> to vector<24xf32>
    %19 = vector.shape_cast %18 : vector<24xf32> to vector<24x1xf32>
    %cst_10 = arith.constant 4.800000e+01 : f32
    %20 = vector.broadcast %cst_10 : f32 to vector<24x1xf32>
    %21 = arith.divf %19, %20 : vector<24x1xf32>
    %22 = vector.broadcast %21 : vector<24x1xf32> to vector<24x48xf32>
    %23 = arith.subf %10, %22 : vector<24x48xf32>
    %24 = arith.mulf %23, %23 : vector<24x48xf32>
    %cst_11 = arith.constant dense<0.000000e+00> : vector<24xf32>
    %25 = vector.multi_reduction <add>, %24, %cst_11 [1] : vector<24x48xf32> to vector<24xf32>
    %26 = vector.shape_cast %25 : vector<24xf32> to vector<24x1xf32>
    %cst_12 = arith.constant 4.800000e+01 : f32
    %27 = vector.broadcast %cst_12 : f32 to vector<24x1xf32>
    %28 = arith.divf %26, %27 : vector<24x1xf32>
    %29 = vector.broadcast %21 : vector<24x1xf32> to vector<24x48xf32>
    %30 = arith.subf %10, %29 : vector<24x48xf32>
    %cst_13 = arith.constant 9.99999997E-7 : f32
    %31 = vector.broadcast %cst_13 : f32 to vector<24x1xf32>
    %32 = arith.addf %28, %31 : vector<24x1xf32>
    %33 = math.rsqrt %32 : vector<24x1xf32>
    %34 = vector.broadcast %33 : vector<24x1xf32> to vector<24x48xf32>
    %35 = arith.mulf %30, %34 : vector<24x48xf32>
    %36 = vector.broadcast %16 : vector<1x48xf32> to vector<24x48xf32>
    %37 = arith.mulf %35, %36 : vector<24x48xf32>
    %38 = vector.broadcast %17 : vector<1x48xf32> to vector<24x48xf32>
    %39 = arith.addf %37, %38 : vector<24x48xf32>
    %c0_14 = arith.constant 0 : index
    %c0_15 = arith.constant 0 : index
    %c0_16 = arith.constant 0 : index
    %40 = vector.load %arg7[%c0_14, %c0_15, %c0_16] : memref<4x48x144xbf16, #tpu.memory_space<vmem>>, vector<1x48x144xbf16>
    %41 = vector.shape_cast %40 : vector<1x48x144xbf16> to vector<48x144xbf16>
    %42 = arith.truncf %39 : vector<24x48xf32> to vector<24x48xbf16>
    %cst_17 = arith.constant dense<0.000000e+00> : vector<24x144xf32>
    %43 = tpu.matmul %42, %41, %cst_17 {dimension_numbers = #tpu.dot_dimension_numbers<[1], [0], [0], [1], [0, 0, 1, 1], [], []>} : vector<24x48xbf16>, vector<48x144xbf16>, vector<24x144xf32> -> vector<24x144xf32>
    %c0_18 = arith.constant 0 : index
    %c0_19 = arith.constant 0 : index
    %44 = vector.load %arg4[%c0_18, %c0_19] : memref<4x144xf32, #tpu.memory_space<vmem>>, vector<1x144xf32>
    %45 = vector.broadcast %44 : vector<1x144xf32> to vector<24x144xf32>
    %46 = arith.addf %43, %45 : vector<24x144xf32>
    %47 = vector.shape_cast %46 : vector<24x144xf32> to vector<1x24x144xf32>
    %48 = arith.truncf %47 : vector<1x24x144xf32> to vector<1x24x144xbf16>
    %49 = tpu.iota {dimensions = array<i32: 2>} : vector<1x1x24xi32>
    %c17_i32_20 = arith.constant 17 : i32
    %50 = vector.broadcast %c17_i32_20 : i32 to vector<1x1x24xi32>
    %51 = arith.cmpi slt, %49, %50 : vector<1x1x24xi32>
    %52 = vector.shape_cast %15 : vector<1x1x24xf32> to vector<1x1x24xf32>
    %53 = vector.broadcast %52 : vector<1x1x24xf32> to vector<1x24x24xf32>
    %54 = vector.extract_strided_slice %48 {offsets = [0, 0, 0], sizes = [1, 24, 16], strides = [1, 1, 1]} : vector<1x24x144xbf16> to vector<1x24x16xbf16>
    %55 = vector.extract_strided_slice %48 {offsets = [0, 0, 48], sizes = [1, 24, 16], strides = [1, 1, 1]} : vector<1x24x144xbf16> to vector<1x24x16xbf16>
    %56 = vector.extract_strided_slice %48 {offsets = [0, 0, 96], sizes = [1, 24, 16], strides = [1, 1, 1]} : vector<1x24x144xbf16> to vector<1x24x16xbf16>
    "tpu.trace_start"() <{level = 10 : i32, message = "bqd,bkd->bqk"}> : () -> ()
    %cst_21 = arith.constant dense<0.000000e+00> : vector<1x24x24xf32>
    %57 = tpu.matmul %54, %55, %cst_21 {dimension_numbers = #tpu.dot_dimension_numbers<[2], [2], [1], [1], [0, 0, 0, 1, 1, 1], [0], [0]>} : vector<1x24x16xbf16>, vector<1x24x16xbf16>, vector<1x24x24xf32> -> vector<1x24x24xf32>
    %cst_22 = arith.constant -1.000000e+30 : f32
    "tpu.trace_stop"() : () -> ()
    %58 = vector.shape_cast %51 : vector<1x1x24xi1> to vector<1x1x24xi1>
    %59 = vector.broadcast %58 : vector<1x1x24xi1> to vector<1x24x24xi1>
    %60 = vector.broadcast %cst_22 : f32 to vector<1x24x24xf32>
    %61 = arith.select %59, %57, %60 : vector<1x24x24xi1>, vector<1x24x24xf32>
    %cst_23 = arith.constant dense<0xFF800000> : vector<1x24xf32>
    %62 = vector.multi_reduction <maximumf>, %61, %cst_23 [2] : vector<1x24x24xf32> to vector<1x24xf32>
    %63 = vector.shape_cast %62 : vector<1x24xf32> to vector<1x24x1xf32>
    %64 = vector.broadcast %63 : vector<1x24x1xf32> to vector<1x24x24xf32>
    %65 = arith.subf %61, %64 : vector<1x24x24xf32>
    %66 = math.exp %65 : vector<1x24x24xf32>
    %67 = arith.mulf %66, %53 : vector<1x24x24xf32>
    %cst_24 = arith.constant dense<0.000000e+00> : vector<1x24xf32>
    %68 = vector.multi_reduction <add>, %67, %cst_24 [2] : vector<1x24x24xf32> to vector<1x24xf32>
    %69 = vector.shape_cast %68 : vector<1x24xf32> to vector<1x24x1xf32>
    %70 = tpu.reciprocal %69 {approx = true} : vector<1x24x1xf32> -> vector<1x24x1xf32>
    %71 = vector.broadcast %70 : vector<1x24x1xf32> to vector<1x24x24xf32>
    %72 = arith.mulf %67, %71 : vector<1x24x24xf32>
    %73 = arith.truncf %72 : vector<1x24x24xf32> to vector<1x24x24xbf16>
    "tpu.trace_start"() <{level = 10 : i32, message = "bqk,bkd->bqd"}> : () -> ()
    %cst_25 = arith.constant dense<0.000000e+00> : vector<1x24x16xf32>
    %74 = tpu.matmul %73, %56, %cst_25 {dimension_numbers = #tpu.dot_dimension_numbers<[2], [1], [1], [2], [0, 0, 0, 1, 1, 2], [0], [0]>} : vector<1x24x24xbf16>, vector<1x24x16xbf16>, vector<1x24x16xf32> -> vector<1x24x16xf32>
    "tpu.trace_stop"() : () -> ()
    %75 = vector.extract_strided_slice %48 {offsets = [0, 0, 16], sizes = [1, 24, 16], strides = [1, 1, 1]} : vector<1x24x144xbf16> to vector<1x24x16xbf16>
    %76 = vector.extract_strided_slice %48 {offsets = [0, 0, 64], sizes = [1, 24, 16], strides = [1, 1, 1]} : vector<1x24x144xbf16> to vector<1x24x16xbf16>
    %77 = vector.extract_strided_slice %48 {offsets = [0, 0, 112], sizes = [1, 24, 16], strides = [1, 1, 1]} : vector<1x24x144xbf16> to vector<1x24x16xbf16>
    "tpu.trace_start"() <{level = 10 : i32, message = "bqd,bkd->bqk"}> : () -> ()
    %cst_26 = arith.constant dense<0.000000e+00> : vector<1x24x24xf32>
    %78 = tpu.matmul %75, %76, %cst_26 {dimension_numbers = #tpu.dot_dimension_numbers<[2], [2], [1], [1], [0, 0, 0, 1, 1, 1], [0], [0]>} : vector<1x24x16xbf16>, vector<1x24x16xbf16>, vector<1x24x24xf32> -> vector<1x24x24xf32>
    %cst_27 = arith.constant -1.000000e+30 : f32
    "tpu.trace_stop"() : () -> ()
    %79 = vector.shape_cast %51 : vector<1x1x24xi1> to vector<1x1x24xi1>
    %80 = vector.broadcast %79 : vector<1x1x24xi1> to vector<1x24x24xi1>
    %81 = vector.broadcast %cst_27 : f32 to vector<1x24x24xf32>
    %82 = arith.select %80, %78, %81 : vector<1x24x24xi1>, vector<1x24x24xf32>
    %cst_28 = arith.constant dense<0xFF800000> : vector<1x24xf32>
    %83 = vector.multi_reduction <maximumf>, %82, %cst_28 [2] : vector<1x24x24xf32> to vector<1x24xf32>
    %84 = vector.shape_cast %83 : vector<1x24xf32> to vector<1x24x1xf32>
    %85 = vector.broadcast %84 : vector<1x24x1xf32> to vector<1x24x24xf32>
    %86 = arith.subf %82, %85 : vector<1x24x24xf32>
    %87 = math.exp %86 : vector<1x24x24xf32>
    %88 = arith.mulf %87, %53 : vector<1x24x24xf32>
    %cst_29 = arith.constant dense<0.000000e+00> : vector<1x24xf32>
    %89 = vector.multi_reduction <add>, %88, %cst_29 [2] : vector<1x24x24xf32> to vector<1x24xf32>
    %90 = vector.shape_cast %89 : vector<1x24xf32> to vector<1x24x1xf32>
    %91 = tpu.reciprocal %90 {approx = true} : vector<1x24x1xf32> -> vector<1x24x1xf32>
    %92 = vector.broadcast %91 : vector<1x24x1xf32> to vector<1x24x24xf32>
    %93 = arith.mulf %88, %92 : vector<1x24x24xf32>
    %94 = arith.truncf %93 : vector<1x24x24xf32> to vector<1x24x24xbf16>
    "tpu.trace_start"() <{level = 10 : i32, message = "bqk,bkd->bqd"}> : () -> ()
    %cst_30 = arith.constant dense<0.000000e+00> : vector<1x24x16xf32>
    %95 = tpu.matmul %94, %77, %cst_30 {dimension_numbers = #tpu.dot_dimension_numbers<[2], [1], [1], [2], [0, 0, 0, 1, 1, 2], [0], [0]>} : vector<1x24x24xbf16>, vector<1x24x16xbf16>, vector<1x24x16xf32> -> vector<1x24x16xf32>
    "tpu.trace_stop"() : () -> ()
    %96 = vector.extract_strided_slice %48 {offsets = [0, 0, 32], sizes = [1, 24, 16], strides = [1, 1, 1]} : vector<1x24x144xbf16> to vector<1x24x16xbf16>
    %97 = vector.extract_strided_slice %48 {offsets = [0, 0, 80], sizes = [1, 24, 16], strides = [1, 1, 1]} : vector<1x24x144xbf16> to vector<1x24x16xbf16>
    %98 = vector.extract_strided_slice %48 {offsets = [0, 0, 128], sizes = [1, 24, 16], strides = [1, 1, 1]} : vector<1x24x144xbf16> to vector<1x24x16xbf16>
    "tpu.trace_start"() <{level = 10 : i32, message = "bqd,bkd->bqk"}> : () -> ()
    %cst_31 = arith.constant dense<0.000000e+00> : vector<1x24x24xf32>
    %99 = tpu.matmul %96, %97, %cst_31 {dimension_numbers = #tpu.dot_dimension_numbers<[2], [2], [1], [1], [0, 0, 0, 1, 1, 1], [0], [0]>} : vector<1x24x16xbf16>, vector<1x24x16xbf16>, vector<1x24x24xf32> -> vector<1x24x24xf32>
    %cst_32 = arith.constant -1.000000e+30 : f32
    "tpu.trace_stop"() : () -> ()
    %100 = vector.shape_cast %51 : vector<1x1x24xi1> to vector<1x1x24xi1>
    %101 = vector.broadcast %100 : vector<1x1x24xi1> to vector<1x24x24xi1>
    %102 = vector.broadcast %cst_32 : f32 to vector<1x24x24xf32>
    %103 = arith.select %101, %99, %102 : vector<1x24x24xi1>, vector<1x24x24xf32>
    %cst_33 = arith.constant dense<0xFF800000> : vector<1x24xf32>
    %104 = vector.multi_reduction <maximumf>, %103, %cst_33 [2] : vector<1x24x24xf32> to vector<1x24xf32>
    %105 = vector.shape_cast %104 : vector<1x24xf32> to vector<1x24x1xf32>
    %106 = vector.broadcast %105 : vector<1x24x1xf32> to vector<1x24x24xf32>
    %107 = arith.subf %103, %106 : vector<1x24x24xf32>
    %108 = math.exp %107 : vector<1x24x24xf32>
    %109 = arith.mulf %108, %53 : vector<1x24x24xf32>
    %cst_34 = arith.constant dense<0.000000e+00> : vector<1x24xf32>
    %110 = vector.multi_reduction <add>, %109, %cst_34 [2] : vector<1x24x24xf32> to vector<1x24xf32>
    %111 = vector.shape_cast %110 : vector<1x24xf32> to vector<1x24x1xf32>
    %112 = tpu.reciprocal %111 {approx = true} : vector<1x24x1xf32> -> vector<1x24x1xf32>
    %113 = vector.broadcast %112 : vector<1x24x1xf32> to vector<1x24x24xf32>
    %114 = arith.mulf %109, %113 : vector<1x24x24xf32>
    %115 = arith.truncf %114 : vector<1x24x24xf32> to vector<1x24x24xbf16>
    "tpu.trace_start"() <{level = 10 : i32, message = "bqk,bkd->bqd"}> : () -> ()
    %cst_35 = arith.constant dense<0.000000e+00> : vector<1x24x16xf32>
    %116 = tpu.matmul %115, %98, %cst_35 {dimension_numbers = #tpu.dot_dimension_numbers<[2], [1], [1], [2], [0, 0, 0, 1, 1, 2], [0], [0]>} : vector<1x24x24xbf16>, vector<1x24x16xbf16>, vector<1x24x16xf32> -> vector<1x24x16xf32>
    "tpu.trace_stop"() : () -> ()
    %117 = tpu.concatenate %74, %95, %116 in 2 : vector<1x24x16xf32>, vector<1x24x16xf32>, vector<1x24x16xf32> -> vector<1x24x48xf32>
    %118 = vector.shape_cast %117 : vector<1x24x48xf32> to vector<24x48xf32>
    %c1 = arith.constant 1 : index
    %c0_36 = arith.constant 0 : index
    %c0_37 = arith.constant 0 : index
    %119 = vector.load %arg6[%c1, %c0_36, %c0_37] : memref<5x48x48xbf16, #tpu.memory_space<vmem>>, vector<1x48x48xbf16>
    %120 = vector.shape_cast %119 : vector<1x48x48xbf16> to vector<48x48xbf16>
    %121 = arith.truncf %118 : vector<24x48xf32> to vector<24x48xbf16>
    %cst_38 = arith.constant dense<0.000000e+00> : vector<24x48xf32>
    %122 = tpu.matmul %121, %120, %cst_38 {dimension_numbers = #tpu.dot_dimension_numbers<[1], [0], [0], [1], [0, 0, 1, 1], [], []>} : vector<24x48xbf16>, vector<48x48xbf16>, vector<24x48xf32> -> vector<24x48xf32>
    %123 = arith.addf %10, %122 : vector<24x48xf32>
    %c40 = arith.constant 40 : index
    %c0_39 = arith.constant 0 : index
    %124 = vector.load %arg2[%c40, %c0_39] : memref<56x48xf32, #tpu.memory_space<vmem>>, vector<1x48xf32>
    %125 = vector.broadcast %124 : vector<1x48xf32> to vector<24x48xf32>
    %126 = arith.addf %123, %125 : vector<24x48xf32>
    %c32 = arith.constant 32 : index
    %c0_40 = arith.constant 0 : index
    %127 = vector.load %arg2[%c32, %c0_40] : memref<56x48xf32, #tpu.memory_space<vmem>>, vector<1x48xf32>
    %c36 = arith.constant 36 : index
    %c0_41 = arith.constant 0 : index
    %128 = vector.load %arg2[%c36, %c0_41] : memref<56x48xf32, #tpu.memory_space<vmem>>, vector<1x48xf32>
    %cst_42 = arith.constant dense<0.000000e+00> : vector<24xf32>
    %129 = vector.multi_reduction <add>, %126, %cst_42 [1] : vector<24x48xf32> to vector<24xf32>
    %130 = vector.shape_cast %129 : vector<24xf32> to vector<24x1xf32>
    %cst_43 = arith.constant 4.800000e+01 : f32
    %131 = vector.broadcast %cst_43 : f32 to vector<24x1xf32>
    %132 = arith.divf %130, %131 : vector<24x1xf32>
    %133 = vector.broadcast %132 : vector<24x1xf32> to vector<24x48xf32>
    %134 = arith.subf %126, %133 : vector<24x48xf32>
    %135 = arith.mulf %134, %134 : vector<24x48xf32>
    %cst_44 = arith.constant dense<0.000000e+00> : vector<24xf32>
    %136 = vector.multi_reduction <add>, %135, %cst_44 [1] : vector<24x48xf32> to vector<24xf32>
    %137 = vector.shape_cast %136 : vector<24xf32> to vector<24x1xf32>
    %cst_45 = arith.constant 4.800000e+01 : f32
    %138 = vector.broadcast %cst_45 : f32 to vector<24x1xf32>
    %139 = arith.divf %137, %138 : vector<24x1xf32>
    %140 = vector.broadcast %132 : vector<24x1xf32> to vector<24x48xf32>
    %141 = arith.subf %126, %140 : vector<24x48xf32>
    %cst_46 = arith.constant 9.99999997E-7 : f32
    %142 = vector.broadcast %cst_46 : f32 to vector<24x1xf32>
    %143 = arith.addf %139, %142 : vector<24x1xf32>
    %144 = math.rsqrt %143 : vector<24x1xf32>
    %145 = vector.broadcast %144 : vector<24x1xf32> to vector<24x48xf32>
    %146 = arith.mulf %141, %145 : vector<24x48xf32>
    %147 = vector.broadcast %127 : vector<1x48xf32> to vector<24x48xf32>
    %148 = arith.mulf %146, %147 : vector<24x48xf32>
    %149 = vector.broadcast %128 : vector<1x48xf32> to vector<24x48xf32>
    %150 = arith.addf %148, %149 : vector<24x48xf32>
    %c0_47 = arith.constant 0 : index
    %c0_48 = arith.constant 0 : index
    %c0_49 = arith.constant 0 : index
    %151 = vector.load %arg8[%c0_47, %c0_48, %c0_49] : memref<4x48x192xbf16, #tpu.memory_space<vmem>>, vector<1x48x192xbf16>
    %152 = vector.shape_cast %151 : vector<1x48x192xbf16> to vector<48x192xbf16>
    %153 = arith.truncf %150 : vector<24x48xf32> to vector<24x48xbf16>
    %cst_50 = arith.constant dense<0.000000e+00> : vector<24x192xf32>
    %154 = tpu.matmul %153, %152, %cst_50 {dimension_numbers = #tpu.dot_dimension_numbers<[1], [0], [0], [1], [0, 0, 1, 1], [], []>} : vector<24x48xbf16>, vector<48x192xbf16>, vector<24x192xf32> -> vector<24x192xf32>
    %c0_51 = arith.constant 0 : index
    %c0_52 = arith.constant 0 : index
    %155 = vector.load %arg5[%c0_51, %c0_52] : memref<4x192xf32, #tpu.memory_space<vmem>>, vector<1x192xf32>
    %156 = vector.broadcast %155 : vector<1x192xf32> to vector<24x192xf32>
    %157 = arith.addf %154, %156 : vector<24x192xf32>
    %cst_53 = arith.constant 5.000000e-01 : f32
    %158 = vector.broadcast %cst_53 : f32 to vector<24x192xf32>
    %159 = arith.mulf %158, %157 : vector<24x192xf32>
    %cst_54 = arith.constant 0.707106769 : f32
    %160 = vector.broadcast %cst_54 : f32 to vector<24x192xf32>
    %161 = arith.mulf %157, %160 : vector<24x192xf32>
    %162 = math.erf %161 : vector<24x192xf32>
    %cst_55 = arith.constant 1.000000e+00 : f32
    %163 = vector.broadcast %cst_55 : f32 to vector<24x192xf32>
    %164 = arith.addf %163, %162 : vector<24x192xf32>
    %165 = arith.mulf %159, %164 : vector<24x192xf32>
    %c0_56 = arith.constant 0 : index
    %c0_57 = arith.constant 0 : index
    %c0_58 = arith.constant 0 : index
    %166 = vector.load %arg9[%c0_56, %c0_57, %c0_58] : memref<4x192x48xbf16, #tpu.memory_space<vmem>>, vector<1x192x48xbf16>
    %167 = vector.shape_cast %166 : vector<1x192x48xbf16> to vector<192x48xbf16>
    %168 = arith.truncf %165 : vector<24x192xf32> to vector<24x192xbf16>
    %cst_59 = arith.constant dense<0.000000e+00> : vector<24x48xf32>
    %169 = tpu.matmul %168, %167, %cst_59 {dimension_numbers = #tpu.dot_dimension_numbers<[1], [0], [0], [1], [0, 0, 1, 1], [], []>} : vector<24x192xbf16>, vector<192x48xbf16>, vector<24x48xf32> -> vector<24x48xf32>
    %170 = arith.addf %126, %169 : vector<24x48xf32>
    %c44 = arith.constant 44 : index
    %c0_60 = arith.constant 0 : index
    %171 = vector.load %arg2[%c44, %c0_60] : memref<56x48xf32, #tpu.memory_space<vmem>>, vector<1x48xf32>
    %172 = vector.broadcast %171 : vector<1x48xf32> to vector<24x48xf32>
    %173 = arith.addf %170, %172 : vector<24x48xf32>
    %c25 = arith.constant 25 : index
    %c0_61 = arith.constant 0 : index
    %174 = vector.load %arg2[%c25, %c0_61] : memref<56x48xf32, #tpu.memory_space<vmem>>, vector<1x48xf32>
    %c29 = arith.constant 29 : index
    %c0_62 = arith.constant 0 : index
    %175 = vector.load %arg2[%c29, %c0_62] : memref<56x48xf32, #tpu.memory_space<vmem>>, vector<1x48xf32>
    %cst_63 = arith.constant dense<0.000000e+00> : vector<24xf32>
    %176 = vector.multi_reduction <add>, %173, %cst_63 [1] : vector<24x48xf32> to vector<24xf32>
    %177 = vector.shape_cast %176 : vector<24xf32> to vector<24x1xf32>
    %cst_64 = arith.constant 4.800000e+01 : f32
    %178 = vector.broadcast %cst_64 : f32 to vector<24x1xf32>
    %179 = arith.divf %177, %178 : vector<24x1xf32>
    %180 = vector.broadcast %179 : vector<24x1xf32> to vector<24x48xf32>
    %181 = arith.subf %173, %180 : vector<24x48xf32>
    %182 = arith.mulf %181, %181 : vector<24x48xf32>
    %cst_65 = arith.constant dense<0.000000e+00> : vector<24xf32>
    %183 = vector.multi_reduction <add>, %182, %cst_65 [1] : vector<24x48xf32> to vector<24xf32>
    %184 = vector.shape_cast %183 : vector<24xf32> to vector<24x1xf32>
    %cst_66 = arith.constant 4.800000e+01 : f32
    %185 = vector.broadcast %cst_66 : f32 to vector<24x1xf32>
    %186 = arith.divf %184, %185 : vector<24x1xf32>
    %187 = vector.broadcast %179 : vector<24x1xf32> to vector<24x48xf32>
    %188 = arith.subf %173, %187 : vector<24x48xf32>
    %cst_67 = arith.constant 9.99999997E-7 : f32
    %189 = vector.broadcast %cst_67 : f32 to vector<24x1xf32>
    %190 = arith.addf %186, %189 : vector<24x1xf32>
    %191 = math.rsqrt %190 : vector<24x1xf32>
    %192 = vector.broadcast %191 : vector<24x1xf32> to vector<24x48xf32>
    %193 = arith.mulf %188, %192 : vector<24x48xf32>
    %194 = vector.broadcast %174 : vector<1x48xf32> to vector<24x48xf32>
    %195 = arith.mulf %193, %194 : vector<24x48xf32>
    %196 = vector.broadcast %175 : vector<1x48xf32> to vector<24x48xf32>
    %197 = arith.addf %195, %196 : vector<24x48xf32>
    %c1_68 = arith.constant 1 : index
    %c0_69 = arith.constant 0 : index
    %c0_70 = arith.constant 0 : index
    %198 = vector.load %arg7[%c1_68, %c0_69, %c0_70] : memref<4x48x144xbf16, #tpu.memory_space<vmem>>, vector<1x48x144xbf16>
    %199 = vector.shape_cast %198 : vector<1x48x144xbf16> to vector<48x144xbf16>
    %200 = arith.truncf %197 : vector<24x48xf32> to vector<24x48xbf16>
    %cst_71 = arith.constant dense<0.000000e+00> : vector<24x144xf32>
    %201 = tpu.matmul %200, %199, %cst_71 {dimension_numbers = #tpu.dot_dimension_numbers<[1], [0], [0], [1], [0, 0, 1, 1], [], []>} : vector<24x48xbf16>, vector<48x144xbf16>, vector<24x144xf32> -> vector<24x144xf32>
    %c1_72 = arith.constant 1 : index
    %c0_73 = arith.constant 0 : index
    %202 = vector.load %arg4[%c1_72, %c0_73] : memref<4x144xf32, #tpu.memory_space<vmem>>, vector<1x144xf32>
    %203 = vector.broadcast %202 : vector<1x144xf32> to vector<24x144xf32>
    %204 = arith.addf %201, %203 : vector<24x144xf32>
    %205 = vector.shape_cast %204 : vector<24x144xf32> to vector<1x24x144xf32>
    %206 = arith.truncf %205 : vector<1x24x144xf32> to vector<1x24x144xbf16>
    %207 = tpu.iota {dimensions = array<i32: 2>} : vector<1x1x24xi32>
    %c17_i32_74 = arith.constant 17 : i32
    %208 = vector.broadcast %c17_i32_74 : i32 to vector<1x1x24xi32>
    %209 = arith.cmpi slt, %207, %208 : vector<1x1x24xi32>
    %210 = vector.shape_cast %15 : vector<1x1x24xf32> to vector<1x1x24xf32>
    %211 = vector.broadcast %210 : vector<1x1x24xf32> to vector<1x24x24xf32>
    %212 = vector.extract_strided_slice %206 {offsets = [0, 0, 0], sizes = [1, 24, 16], strides = [1, 1, 1]} : vector<1x24x144xbf16> to vector<1x24x16xbf16>
    %213 = vector.extract_strided_slice %206 {offsets = [0, 0, 48], sizes = [1, 24, 16], strides = [1, 1, 1]} : vector<1x24x144xbf16> to vector<1x24x16xbf16>
    %214 = vector.extract_strided_slice %206 {offsets = [0, 0, 96], sizes = [1, 24, 16], strides = [1, 1, 1]} : vector<1x24x144xbf16> to vector<1x24x16xbf16>
    "tpu.trace_start"() <{level = 10 : i32, message = "bqd,bkd->bqk"}> : () -> ()
    %cst_75 = arith.constant dense<0.000000e+00> : vector<1x24x24xf32>
    %215 = tpu.matmul %212, %213, %cst_75 {dimension_numbers = #tpu.dot_dimension_numbers<[2], [2], [1], [1], [0, 0, 0, 1, 1, 1], [0], [0]>} : vector<1x24x16xbf16>, vector<1x24x16xbf16>, vector<1x24x24xf32> -> vector<1x24x24xf32>
    %cst_76 = arith.constant -1.000000e+30 : f32
    "tpu.trace_stop"() : () -> ()
    %216 = vector.shape_cast %209 : vector<1x1x24xi1> to vector<1x1x24xi1>
    %217 = vector.broadcast %216 : vector<1x1x24xi1> to vector<1x24x24xi1>
    %218 = vector.broadcast %cst_76 : f32 to vector<1x24x24xf32>
    %219 = arith.select %217, %215, %218 : vector<1x24x24xi1>, vector<1x24x24xf32>
    %cst_77 = arith.constant dense<0xFF800000> : vector<1x24xf32>
    %220 = vector.multi_reduction <maximumf>, %219, %cst_77 [2] : vector<1x24x24xf32> to vector<1x24xf32>
    %221 = vector.shape_cast %220 : vector<1x24xf32> to vector<1x24x1xf32>
    %222 = vector.broadcast %221 : vector<1x24x1xf32> to vector<1x24x24xf32>
    %223 = arith.subf %219, %222 : vector<1x24x24xf32>
    %224 = math.exp %223 : vector<1x24x24xf32>
    %225 = arith.mulf %224, %211 : vector<1x24x24xf32>
    %cst_78 = arith.constant dense<0.000000e+00> : vector<1x24xf32>
    %226 = vector.multi_reduction <add>, %225, %cst_78 [2] : vector<1x24x24xf32> to vector<1x24xf32>
    %227 = vector.shape_cast %226 : vector<1x24xf32> to vector<1x24x1xf32>
    %228 = tpu.reciprocal %227 {approx = true} : vector<1x24x1xf32> -> vector<1x24x1xf32>
    %229 = vector.broadcast %228 : vector<1x24x1xf32> to vector<1x24x24xf32>
    %230 = arith.mulf %225, %229 : vector<1x24x24xf32>
    %231 = arith.truncf %230 : vector<1x24x24xf32> to vector<1x24x24xbf16>
    "tpu.trace_start"() <{level = 10 : i32, message = "bqk,bkd->bqd"}> : () -> ()
    %cst_79 = arith.constant dense<0.000000e+00> : vector<1x24x16xf32>
    %232 = tpu.matmul %231, %214, %cst_79 {dimension_numbers = #tpu.dot_dimension_numbers<[2], [1], [1], [2], [0, 0, 0, 1, 1, 2], [0], [0]>} : vector<1x24x24xbf16>, vector<1x24x16xbf16>, vector<1x24x16xf32> -> vector<1x24x16xf32>
    "tpu.trace_stop"() : () -> ()
    %233 = vector.extract_strided_slice %206 {offsets = [0, 0, 16], sizes = [1, 24, 16], strides = [1, 1, 1]} : vector<1x24x144xbf16> to vector<1x24x16xbf16>
    %234 = vector.extract_strided_slice %206 {offsets = [0, 0, 64], sizes = [1, 24, 16], strides = [1, 1, 1]} : vector<1x24x144xbf16> to vector<1x24x16xbf16>
    %235 = vector.extract_strided_slice %206 {offsets = [0, 0, 112], sizes = [1, 24, 16], strides = [1, 1, 1]} : vector<1x24x144xbf16> to vector<1x24x16xbf16>
    "tpu.trace_start"() <{level = 10 : i32, message = "bqd,bkd->bqk"}> : () -> ()
    %cst_80 = arith.constant dense<0.000000e+00> : vector<1x24x24xf32>
    %236 = tpu.matmul %233, %234, %cst_80 {dimension_numbers = #tpu.dot_dimension_numbers<[2], [2], [1], [1], [0, 0, 0, 1, 1, 1], [0], [0]>} : vector<1x24x16xbf16>, vector<1x24x16xbf16>, vector<1x24x24xf32> -> vector<1x24x24xf32>
    %cst_81 = arith.constant -1.000000e+30 : f32
    "tpu.trace_stop"() : () -> ()
    %237 = vector.shape_cast %209 : vector<1x1x24xi1> to vector<1x1x24xi1>
    %238 = vector.broadcast %237 : vector<1x1x24xi1> to vector<1x24x24xi1>
    %239 = vector.broadcast %cst_81 : f32 to vector<1x24x24xf32>
    %240 = arith.select %238, %236, %239 : vector<1x24x24xi1>, vector<1x24x24xf32>
    %cst_82 = arith.constant dense<0xFF800000> : vector<1x24xf32>
    %241 = vector.multi_reduction <maximumf>, %240, %cst_82 [2] : vector<1x24x24xf32> to vector<1x24xf32>
    %242 = vector.shape_cast %241 : vector<1x24xf32> to vector<1x24x1xf32>
    %243 = vector.broadcast %242 : vector<1x24x1xf32> to vector<1x24x24xf32>
    %244 = arith.subf %240, %243 : vector<1x24x24xf32>
    %245 = math.exp %244 : vector<1x24x24xf32>
    %246 = arith.mulf %245, %211 : vector<1x24x24xf32>
    %cst_83 = arith.constant dense<0.000000e+00> : vector<1x24xf32>
    %247 = vector.multi_reduction <add>, %246, %cst_83 [2] : vector<1x24x24xf32> to vector<1x24xf32>
    %248 = vector.shape_cast %247 : vector<1x24xf32> to vector<1x24x1xf32>
    %249 = tpu.reciprocal %248 {approx = true} : vector<1x24x1xf32> -> vector<1x24x1xf32>
    %250 = vector.broadcast %249 : vector<1x24x1xf32> to vector<1x24x24xf32>
    %251 = arith.mulf %246, %250 : vector<1x24x24xf32>
    %252 = arith.truncf %251 : vector<1x24x24xf32> to vector<1x24x24xbf16>
    "tpu.trace_start"() <{level = 10 : i32, message = "bqk,bkd->bqd"}> : () -> ()
    %cst_84 = arith.constant dense<0.000000e+00> : vector<1x24x16xf32>
    %253 = tpu.matmul %252, %235, %cst_84 {dimension_numbers = #tpu.dot_dimension_numbers<[2], [1], [1], [2], [0, 0, 0, 1, 1, 2], [0], [0]>} : vector<1x24x24xbf16>, vector<1x24x16xbf16>, vector<1x24x16xf32> -> vector<1x24x16xf32>
    "tpu.trace_stop"() : () -> ()
    %254 = vector.extract_strided_slice %206 {offsets = [0, 0, 32], sizes = [1, 24, 16], strides = [1, 1, 1]} : vector<1x24x144xbf16> to vector<1x24x16xbf16>
    %255 = vector.extract_strided_slice %206 {offsets = [0, 0, 80], sizes = [1, 24, 16], strides = [1, 1, 1]} : vector<1x24x144xbf16> to vector<1x24x16xbf16>
    %256 = vector.extract_strided_slice %206 {offsets = [0, 0, 128], sizes = [1, 24, 16], strides = [1, 1, 1]} : vector<1x24x144xbf16> to vector<1x24x16xbf16>
    "tpu.trace_start"() <{level = 10 : i32, message = "bqd,bkd->bqk"}> : () -> ()
    %cst_85 = arith.constant dense<0.000000e+00> : vector<1x24x24xf32>
    %257 = tpu.matmul %254, %255, %cst_85 {dimension_numbers = #tpu.dot_dimension_numbers<[2], [2], [1], [1], [0, 0, 0, 1, 1, 1], [0], [0]>} : vector<1x24x16xbf16>, vector<1x24x16xbf16>, vector<1x24x24xf32> -> vector<1x24x24xf32>
    %cst_86 = arith.constant -1.000000e+30 : f32
    "tpu.trace_stop"() : () -> ()
    %258 = vector.shape_cast %209 : vector<1x1x24xi1> to vector<1x1x24xi1>
    %259 = vector.broadcast %258 : vector<1x1x24xi1> to vector<1x24x24xi1>
    %260 = vector.broadcast %cst_86 : f32 to vector<1x24x24xf32>
    %261 = arith.select %259, %257, %260 : vector<1x24x24xi1>, vector<1x24x24xf32>
    %cst_87 = arith.constant dense<0xFF800000> : vector<1x24xf32>
    %262 = vector.multi_reduction <maximumf>, %261, %cst_87 [2] : vector<1x24x24xf32> to vector<1x24xf32>
    %263 = vector.shape_cast %262 : vector<1x24xf32> to vector<1x24x1xf32>
    %264 = vector.broadcast %263 : vector<1x24x1xf32> to vector<1x24x24xf32>
    %265 = arith.subf %261, %264 : vector<1x24x24xf32>
    %266 = math.exp %265 : vector<1x24x24xf32>
    %267 = arith.mulf %266, %211 : vector<1x24x24xf32>
    %cst_88 = arith.constant dense<0.000000e+00> : vector<1x24xf32>
    %268 = vector.multi_reduction <add>, %267, %cst_88 [2] : vector<1x24x24xf32> to vector<1x24xf32>
    %269 = vector.shape_cast %268 : vector<1x24xf32> to vector<1x24x1xf32>
    %270 = tpu.reciprocal %269 {approx = true} : vector<1x24x1xf32> -> vector<1x24x1xf32>
    %271 = vector.broadcast %270 : vector<1x24x1xf32> to vector<1x24x24xf32>
    %272 = arith.mulf %267, %271 : vector<1x24x24xf32>
    %273 = arith.truncf %272 : vector<1x24x24xf32> to vector<1x24x24xbf16>
    "tpu.trace_start"() <{level = 10 : i32, message = "bqk,bkd->bqd"}> : () -> ()
    %cst_89 = arith.constant dense<0.000000e+00> : vector<1x24x16xf32>
    %274 = tpu.matmul %273, %256, %cst_89 {dimension_numbers = #tpu.dot_dimension_numbers<[2], [1], [1], [2], [0, 0, 0, 1, 1, 2], [0], [0]>} : vector<1x24x24xbf16>, vector<1x24x16xbf16>, vector<1x24x16xf32> -> vector<1x24x16xf32>
    "tpu.trace_stop"() : () -> ()
    %275 = tpu.concatenate %232, %253, %274 in 2 : vector<1x24x16xf32>, vector<1x24x16xf32>, vector<1x24x16xf32> -> vector<1x24x48xf32>
    %276 = vector.shape_cast %275 : vector<1x24x48xf32> to vector<24x48xf32>
    %c2 = arith.constant 2 : index
    %c0_90 = arith.constant 0 : index
    %c0_91 = arith.constant 0 : index
    %277 = vector.load %arg6[%c2, %c0_90, %c0_91] : memref<5x48x48xbf16, #tpu.memory_space<vmem>>, vector<1x48x48xbf16>
    %278 = vector.shape_cast %277 : vector<1x48x48xbf16> to vector<48x48xbf16>
    %279 = arith.truncf %276 : vector<24x48xf32> to vector<24x48xbf16>
    %cst_92 = arith.constant dense<0.000000e+00> : vector<24x48xf32>
    %280 = tpu.matmul %279, %278, %cst_92 {dimension_numbers = #tpu.dot_dimension_numbers<[1], [0], [0], [1], [0, 0, 1, 1], [], []>} : vector<24x48xbf16>, vector<48x48xbf16>, vector<24x48xf32> -> vector<24x48xf32>
    %281 = arith.addf %173, %280 : vector<24x48xf32>
    %c41 = arith.constant 41 : index
    %c0_93 = arith.constant 0 : index
    %282 = vector.load %arg2[%c41, %c0_93] : memref<56x48xf32, #tpu.memory_space<vmem>>, vector<1x48xf32>
    %283 = vector.broadcast %282 : vector<1x48xf32> to vector<24x48xf32>
    %284 = arith.addf %281, %283 : vector<24x48xf32>
    %c33 = arith.constant 33 : index
    %c0_94 = arith.constant 0 : index
    %285 = vector.load %arg2[%c33, %c0_94] : memref<56x48xf32, #tpu.memory_space<vmem>>, vector<1x48xf32>
    %c37 = arith.constant 37 : index
    %c0_95 = arith.constant 0 : index
    %286 = vector.load %arg2[%c37, %c0_95] : memref<56x48xf32, #tpu.memory_space<vmem>>, vector<1x48xf32>
    %cst_96 = arith.constant dense<0.000000e+00> : vector<24xf32>
    %287 = vector.multi_reduction <add>, %284, %cst_96 [1] : vector<24x48xf32> to vector<24xf32>
    %288 = vector.shape_cast %287 : vector<24xf32> to vector<24x1xf32>
    %cst_97 = arith.constant 4.800000e+01 : f32
    %289 = vector.broadcast %cst_97 : f32 to vector<24x1xf32>
    %290 = arith.divf %288, %289 : vector<24x1xf32>
    %291 = vector.broadcast %290 : vector<24x1xf32> to vector<24x48xf32>
    %292 = arith.subf %284, %291 : vector<24x48xf32>
    %293 = arith.mulf %292, %292 : vector<24x48xf32>
    %cst_98 = arith.constant dense<0.000000e+00> : vector<24xf32>
    %294 = vector.multi_reduction <add>, %293, %cst_98 [1] : vector<24x48xf32> to vector<24xf32>
    %295 = vector.shape_cast %294 : vector<24xf32> to vector<24x1xf32>
    %cst_99 = arith.constant 4.800000e+01 : f32
    %296 = vector.broadcast %cst_99 : f32 to vector<24x1xf32>
    %297 = arith.divf %295, %296 : vector<24x1xf32>
    %298 = vector.broadcast %290 : vector<24x1xf32> to vector<24x48xf32>
    %299 = arith.subf %284, %298 : vector<24x48xf32>
    %cst_100 = arith.constant 9.99999997E-7 : f32
    %300 = vector.broadcast %cst_100 : f32 to vector<24x1xf32>
    %301 = arith.addf %297, %300 : vector<24x1xf32>
    %302 = math.rsqrt %301 : vector<24x1xf32>
    %303 = vector.broadcast %302 : vector<24x1xf32> to vector<24x48xf32>
    %304 = arith.mulf %299, %303 : vector<24x48xf32>
    %305 = vector.broadcast %285 : vector<1x48xf32> to vector<24x48xf32>
    %306 = arith.mulf %304, %305 : vector<24x48xf32>
    %307 = vector.broadcast %286 : vector<1x48xf32> to vector<24x48xf32>
    %308 = arith.addf %306, %307 : vector<24x48xf32>
    %c1_101 = arith.constant 1 : index
    %c0_102 = arith.constant 0 : index
    %c0_103 = arith.constant 0 : index
    %309 = vector.load %arg8[%c1_101, %c0_102, %c0_103] : memref<4x48x192xbf16, #tpu.memory_space<vmem>>, vector<1x48x192xbf16>
    %310 = vector.shape_cast %309 : vector<1x48x192xbf16> to vector<48x192xbf16>
    %311 = arith.truncf %308 : vector<24x48xf32> to vector<24x48xbf16>
    %cst_104 = arith.constant dense<0.000000e+00> : vector<24x192xf32>
    %312 = tpu.matmul %311, %310, %cst_104 {dimension_numbers = #tpu.dot_dimension_numbers<[1], [0], [0], [1], [0, 0, 1, 1], [], []>} : vector<24x48xbf16>, vector<48x192xbf16>, vector<24x192xf32> -> vector<24x192xf32>
    %c1_105 = arith.constant 1 : index
    %c0_106 = arith.constant 0 : index
    %313 = vector.load %arg5[%c1_105, %c0_106] : memref<4x192xf32, #tpu.memory_space<vmem>>, vector<1x192xf32>
    %314 = vector.broadcast %313 : vector<1x192xf32> to vector<24x192xf32>
    %315 = arith.addf %312, %314 : vector<24x192xf32>
    %cst_107 = arith.constant 5.000000e-01 : f32
    %316 = vector.broadcast %cst_107 : f32 to vector<24x192xf32>
    %317 = arith.mulf %316, %315 : vector<24x192xf32>
    %cst_108 = arith.constant 0.707106769 : f32
    %318 = vector.broadcast %cst_108 : f32 to vector<24x192xf32>
    %319 = arith.mulf %315, %318 : vector<24x192xf32>
    %320 = math.erf %319 : vector<24x192xf32>
    %cst_109 = arith.constant 1.000000e+00 : f32
    %321 = vector.broadcast %cst_109 : f32 to vector<24x192xf32>
    %322 = arith.addf %321, %320 : vector<24x192xf32>
    %323 = arith.mulf %317, %322 : vector<24x192xf32>
    %c1_110 = arith.constant 1 : index
    %c0_111 = arith.constant 0 : index
    %c0_112 = arith.constant 0 : index
    %324 = vector.load %arg9[%c1_110, %c0_111, %c0_112] : memref<4x192x48xbf16, #tpu.memory_space<vmem>>, vector<1x192x48xbf16>
    %325 = vector.shape_cast %324 : vector<1x192x48xbf16> to vector<192x48xbf16>
    %326 = arith.truncf %323 : vector<24x192xf32> to vector<24x192xbf16>
    %cst_113 = arith.constant dense<0.000000e+00> : vector<24x48xf32>
    %327 = tpu.matmul %326, %325, %cst_113 {dimension_numbers = #tpu.dot_dimension_numbers<[1], [0], [0], [1], [0, 0, 1, 1], [], []>} : vector<24x192xbf16>, vector<192x48xbf16>, vector<24x48xf32> -> vector<24x48xf32>
    %328 = arith.addf %284, %327 : vector<24x48xf32>
    %c45 = arith.constant 45 : index
    %c0_114 = arith.constant 0 : index
    %329 = vector.load %arg2[%c45, %c0_114] : memref<56x48xf32, #tpu.memory_space<vmem>>, vector<1x48xf32>
    %330 = vector.broadcast %329 : vector<1x48xf32> to vector<24x48xf32>
    %331 = arith.addf %328, %330 : vector<24x48xf32>
    %332 = vector.shape_cast %331 : vector<24x48xf32> to vector<1x24x48xf32>
    %c50 = arith.constant 50 : index
    %c0_115 = arith.constant 0 : index
    %333 = vector.load %arg2[%c50, %c0_115] : memref<56x48xf32, #tpu.memory_space<vmem>>, vector<1x48xf32>
    %c51 = arith.constant 51 : index
    %c0_116 = arith.constant 0 : index
    %334 = vector.load %arg2[%c51, %c0_116] : memref<56x48xf32, #tpu.memory_space<vmem>>, vector<1x48xf32>
    %c52 = arith.constant 52 : index
    %c0_117 = arith.constant 0 : index
    %335 = vector.load %arg2[%c52, %c0_117] : memref<56x48xf32, #tpu.memory_space<vmem>>, vector<1x48xf32>
    %c53 = arith.constant 53 : index
    %c0_118 = arith.constant 0 : index
    %336 = vector.load %arg2[%c53, %c0_118] : memref<56x48xf32, #tpu.memory_space<vmem>>, vector<1x48xf32>
    %c54 = arith.constant 54 : index
    %c0_119 = arith.constant 0 : index
    %337 = vector.load %arg2[%c54, %c0_119] : memref<56x48xf32, #tpu.memory_space<vmem>>, vector<1x48xf32>
    %c55 = arith.constant 55 : index
    %c0_120 = arith.constant 0 : index
    %338 = vector.load %arg2[%c55, %c0_120] : memref<56x48xf32, #tpu.memory_space<vmem>>, vector<1x48xf32>
    %339 = vector.extract_strided_slice %338 {offsets = [0, 0], sizes = [1, 16], strides = [1, 1]} : vector<1x48xf32> to vector<1x16xf32>
    %c0_121 = arith.constant 0 : index
    %c0_122 = arith.constant 0 : index
    %340 = vector.load %arg3[%c0_121, %c0_122] : memref<24x24xf32, #tpu.memory_space<vmem>>, vector<24x24xf32>
    %341 = vector.shape_cast %340 : vector<24x24xf32> to vector<1x24x24xf32>
    "tpu.trace_start"() <{level = 10 : i32, message = "bnm,bmc->bnc"}> : () -> ()
    %cst_123 = arith.constant dense<0.000000e+00> : vector<1x24x48xf32>
    %342 = tpu.matmul %341, %332, %cst_123 {dimension_numbers = #tpu.dot_dimension_numbers<[2], [1], [1], [2], [0, 0, 0, 1, 1, 2], [0], [0]>} : vector<1x24x24xf32>, vector<1x24x48xf32>, vector<1x24x48xf32> -> vector<1x24x48xf32>
    "tpu.trace_stop"() : () -> ()
    %343 = vector.shape_cast %342 : vector<1x24x48xf32> to vector<24x48xf32>
    %c0_124 = arith.constant 0 : index
    %c0_125 = arith.constant 0 : index
    %c0_126 = arith.constant 0 : index
    %344 = vector.load %arg10[%c0_124, %c0_125, %c0_126] : memref<3x48x48xf32, #tpu.memory_space<vmem>>, vector<1x48x48xf32>
    %345 = vector.shape_cast %344 : vector<1x48x48xf32> to vector<48x48xf32>
    %cst_127 = arith.constant dense<0.000000e+00> : vector<24x48xf32>
    %346 = tpu.matmul %343, %345, %cst_127 {dimension_numbers = #tpu.dot_dimension_numbers<[1], [0], [0], [1], [0, 0, 1, 1], [], []>} : vector<24x48xf32>, vector<48x48xf32>, vector<24x48xf32> -> vector<24x48xf32>
    %347 = vector.broadcast %333 : vector<1x48xf32> to vector<24x48xf32>
    %348 = arith.addf %346, %347 : vector<24x48xf32>
    %349 = arith.mulf %348, %348 : vector<24x48xf32>
    %cst_128 = arith.constant dense<0.000000e+00> : vector<24xf32>
    %350 = vector.multi_reduction <add>, %349, %cst_128 [1] : vector<24x48xf32> to vector<24xf32>
    %351 = vector.shape_cast %350 : vector<24xf32> to vector<24x1xf32>
    %cst_129 = arith.constant 1.000000e-24 : f32
    %352 = vector.broadcast %cst_129 : f32 to vector<24x1xf32>
    %353 = arith.maximumf %351, %352 : vector<24x1xf32>
    %354 = math.rsqrt %353 : vector<24x1xf32>
    %355 = vector.broadcast %354 : vector<24x1xf32> to vector<24x48xf32>
    %356 = arith.mulf %348, %355 : vector<24x48xf32>
    %cst_130 = arith.constant 0.000000e+00 : f32
    %357 = vector.broadcast %cst_130 : f32 to vector<24x48xf32>
    %358 = arith.maximumf %356, %357 : vector<24x48xf32>
    %cst_131 = arith.constant dense<0.000000e+00> : vector<24xf32>
    %359 = vector.multi_reduction <add>, %358, %cst_131 [1] : vector<24x48xf32> to vector<24xf32>
    %360 = vector.shape_cast %359 : vector<24xf32> to vector<24x1xf32>
    %cst_132 = arith.constant 4.800000e+01 : f32
    %361 = vector.broadcast %cst_132 : f32 to vector<24x1xf32>
    %362 = arith.divf %360, %361 : vector<24x1xf32>
    %363 = vector.broadcast %362 : vector<24x1xf32> to vector<24x48xf32>
    %364 = arith.subf %358, %363 : vector<24x48xf32>
    %365 = arith.mulf %364, %364 : vector<24x48xf32>
    %cst_133 = arith.constant dense<0.000000e+00> : vector<24xf32>
    %366 = vector.multi_reduction <add>, %365, %cst_133 [1] : vector<24x48xf32> to vector<24xf32>
    %367 = vector.shape_cast %366 : vector<24xf32> to vector<24x1xf32>
    %cst_134 = arith.constant 4.800000e+01 : f32
    %368 = vector.broadcast %cst_134 : f32 to vector<24x1xf32>
    %369 = arith.divf %367, %368 : vector<24x1xf32>
    %370 = vector.broadcast %362 : vector<24x1xf32> to vector<24x48xf32>
    %371 = arith.subf %358, %370 : vector<24x48xf32>
    %cst_135 = arith.constant 9.99999974E-6 : f32
    %372 = vector.broadcast %cst_135 : f32 to vector<24x1xf32>
    %373 = arith.addf %369, %372 : vector<24x1xf32>
    %374 = math.rsqrt %373 : vector<24x1xf32>
    %375 = vector.broadcast %374 : vector<24x1xf32> to vector<24x48xf32>
    %376 = arith.mulf %371, %375 : vector<24x48xf32>
    %377 = vector.broadcast %336 : vector<1x48xf32> to vector<24x48xf32>
    %378 = arith.mulf %376, %377 : vector<24x48xf32>
    %379 = vector.broadcast %337 : vector<1x48xf32> to vector<24x48xf32>
    %380 = arith.addf %378, %379 : vector<24x48xf32>
    %381 = vector.shape_cast %380 : vector<24x48xf32> to vector<1x24x48xf32>
    "tpu.trace_start"() <{level = 10 : i32, message = "bnm,bmc->bnc"}> : () -> ()
    %cst_136 = arith.constant dense<0.000000e+00> : vector<1x24x48xf32>
    %382 = tpu.matmul %341, %381, %cst_136 {dimension_numbers = #tpu.dot_dimension_numbers<[2], [1], [1], [2], [0, 0, 0, 1, 1, 2], [0], [0]>} : vector<1x24x24xf32>, vector<1x24x48xf32>, vector<1x24x48xf32> -> vector<1x24x48xf32>
    "tpu.trace_stop"() : () -> ()
    %383 = vector.shape_cast %382 : vector<1x24x48xf32> to vector<24x48xf32>
    %c1_137 = arith.constant 1 : index
    %c0_138 = arith.constant 0 : index
    %c0_139 = arith.constant 0 : index
    %384 = vector.load %arg10[%c1_137, %c0_138, %c0_139] : memref<3x48x48xf32, #tpu.memory_space<vmem>>, vector<1x48x48xf32>
    %385 = vector.shape_cast %384 : vector<1x48x48xf32> to vector<48x48xf32>
    %cst_140 = arith.constant dense<0.000000e+00> : vector<24x48xf32>
    %386 = tpu.matmul %383, %385, %cst_140 {dimension_numbers = #tpu.dot_dimension_numbers<[1], [0], [0], [1], [0, 0, 1, 1], [], []>} : vector<24x48xf32>, vector<48x48xf32>, vector<24x48xf32> -> vector<24x48xf32>
    %387 = vector.broadcast %334 : vector<1x48xf32> to vector<24x48xf32>
    %388 = arith.addf %386, %387 : vector<24x48xf32>
    %389 = arith.mulf %388, %388 : vector<24x48xf32>
    %cst_141 = arith.constant dense<0.000000e+00> : vector<24xf32>
    %390 = vector.multi_reduction <add>, %389, %cst_141 [1] : vector<24x48xf32> to vector<24xf32>
    %391 = vector.shape_cast %390 : vector<24xf32> to vector<24x1xf32>
    %cst_142 = arith.constant 1.000000e-24 : f32
    %392 = vector.broadcast %cst_142 : f32 to vector<24x1xf32>
    %393 = arith.maximumf %391, %392 : vector<24x1xf32>
    %394 = math.rsqrt %393 : vector<24x1xf32>
    %395 = vector.broadcast %394 : vector<24x1xf32> to vector<24x48xf32>
    %396 = arith.mulf %388, %395 : vector<24x48xf32>
    %cst_143 = arith.constant 0.000000e+00 : f32
    %397 = vector.broadcast %cst_143 : f32 to vector<24x48xf32>
    %398 = arith.maximumf %396, %397 : vector<24x48xf32>
    %cst_144 = arith.constant dense<0.000000e+00> : vector<24xf32>
    %399 = vector.multi_reduction <add>, %398, %cst_144 [1] : vector<24x48xf32> to vector<24xf32>
    %400 = vector.shape_cast %399 : vector<24xf32> to vector<24x1xf32>
    %cst_145 = arith.constant 4.800000e+01 : f32
    %401 = vector.broadcast %cst_145 : f32 to vector<24x1xf32>
    %402 = arith.divf %400, %401 : vector<24x1xf32>
    %403 = vector.broadcast %402 : vector<24x1xf32> to vector<24x48xf32>
    %404 = arith.subf %398, %403 : vector<24x48xf32>
    %405 = arith.mulf %404, %404 : vector<24x48xf32>
    %cst_146 = arith.constant dense<0.000000e+00> : vector<24xf32>
    %406 = vector.multi_reduction <add>, %405, %cst_146 [1] : vector<24x48xf32> to vector<24xf32>
    %407 = vector.shape_cast %406 : vector<24xf32> to vector<24x1xf32>
    %cst_147 = arith.constant 4.800000e+01 : f32
    %408 = vector.broadcast %cst_147 : f32 to vector<24x1xf32>
    %409 = arith.divf %407, %408 : vector<24x1xf32>
    %410 = vector.broadcast %402 : vector<24x1xf32> to vector<24x48xf32>
    %411 = arith.subf %398, %410 : vector<24x48xf32>
    %cst_148 = arith.constant 9.99999974E-6 : f32
    %412 = vector.broadcast %cst_148 : f32 to vector<24x1xf32>
    %413 = arith.addf %409, %412 : vector<24x1xf32>
    %414 = math.rsqrt %413 : vector<24x1xf32>
    %415 = vector.broadcast %414 : vector<24x1xf32> to vector<24x48xf32>
    %416 = arith.mulf %411, %415 : vector<24x48xf32>
    %417 = vector.broadcast %336 : vector<1x48xf32> to vector<24x48xf32>
    %418 = arith.mulf %416, %417 : vector<24x48xf32>
    %419 = vector.broadcast %337 : vector<1x48xf32> to vector<24x48xf32>
    %420 = arith.addf %418, %419 : vector<24x48xf32>
    %421 = vector.shape_cast %420 : vector<24x48xf32> to vector<1x24x48xf32>
    "tpu.trace_start"() <{level = 10 : i32, message = "bnm,bmc->bnc"}> : () -> ()
    %cst_149 = arith.constant dense<0.000000e+00> : vector<1x24x48xf32>
    %422 = tpu.matmul %341, %421, %cst_149 {dimension_numbers = #tpu.dot_dimension_numbers<[2], [1], [1], [2], [0, 0, 0, 1, 1, 2], [0], [0]>} : vector<1x24x24xf32>, vector<1x24x48xf32>, vector<1x24x48xf32> -> vector<1x24x48xf32>
    "tpu.trace_stop"() : () -> ()
    %423 = vector.shape_cast %422 : vector<1x24x48xf32> to vector<24x48xf32>
    %c2_150 = arith.constant 2 : index
    %c0_151 = arith.constant 0 : index
    %c0_152 = arith.constant 0 : index
    %424 = vector.load %arg10[%c2_150, %c0_151, %c0_152] : memref<3x48x48xf32, #tpu.memory_space<vmem>>, vector<1x48x48xf32>
    %425 = vector.shape_cast %424 : vector<1x48x48xf32> to vector<48x48xf32>
    %cst_153 = arith.constant dense<0.000000e+00> : vector<24x48xf32>
    %426 = tpu.matmul %423, %425, %cst_153 {dimension_numbers = #tpu.dot_dimension_numbers<[1], [0], [0], [1], [0, 0, 1, 1], [], []>} : vector<24x48xf32>, vector<48x48xf32>, vector<24x48xf32> -> vector<24x48xf32>
    %427 = vector.broadcast %335 : vector<1x48xf32> to vector<24x48xf32>
    %428 = arith.addf %426, %427 : vector<24x48xf32>
    %429 = arith.mulf %428, %428 : vector<24x48xf32>
    %cst_154 = arith.constant dense<0.000000e+00> : vector<24xf32>
    %430 = vector.multi_reduction <add>, %429, %cst_154 [1] : vector<24x48xf32> to vector<24xf32>
    %431 = vector.shape_cast %430 : vector<24xf32> to vector<24x1xf32>
    %cst_155 = arith.constant 1.000000e-24 : f32
    %432 = vector.broadcast %cst_155 : f32 to vector<24x1xf32>
    %433 = arith.maximumf %431, %432 : vector<24x1xf32>
    %434 = math.rsqrt %433 : vector<24x1xf32>
    %435 = vector.broadcast %434 : vector<24x1xf32> to vector<24x48xf32>
    %436 = arith.mulf %428, %435 : vector<24x48xf32>
    %c0_156 = arith.constant 0 : index
    %c0_157 = arith.constant 0 : index
    %c0_158 = arith.constant 0 : index
    %437 = vector.load %arg11[%c0_156, %c0_157, %c0_158] : memref<3x48x16xf32, #tpu.memory_space<vmem>>, vector<1x48x16xf32>
    %438 = vector.shape_cast %437 : vector<1x48x16xf32> to vector<48x16xf32>
    %cst_159 = arith.constant dense<0.000000e+00> : vector<24x16xf32>
    %439 = tpu.matmul %380, %438, %cst_159 {dimension_numbers = #tpu.dot_dimension_numbers<[1], [0], [0], [1], [0, 0, 1, 1], [], []>} : vector<24x48xf32>, vector<48x16xf32>, vector<24x16xf32> -> vector<24x16xf32>
    %c1_160 = arith.constant 1 : index
    %c0_161 = arith.constant 0 : index
    %c0_162 = arith.constant 0 : index
    %440 = vector.load %arg11[%c1_160, %c0_161, %c0_162] : memref<3x48x16xf32, #tpu.memory_space<vmem>>, vector<1x48x16xf32>
    %441 = vector.shape_cast %440 : vector<1x48x16xf32> to vector<48x16xf32>
    %cst_163 = arith.constant dense<0.000000e+00> : vector<24x16xf32>
    %442 = tpu.matmul %420, %441, %cst_163 {dimension_numbers = #tpu.dot_dimension_numbers<[1], [0], [0], [1], [0, 0, 1, 1], [], []>} : vector<24x48xf32>, vector<48x16xf32>, vector<24x16xf32> -> vector<24x16xf32>
    %443 = arith.addf %439, %442 : vector<24x16xf32>
    %c2_164 = arith.constant 2 : index
    %c0_165 = arith.constant 0 : index
    %c0_166 = arith.constant 0 : index
    %444 = vector.load %arg11[%c2_164, %c0_165, %c0_166] : memref<3x48x16xf32, #tpu.memory_space<vmem>>, vector<1x48x16xf32>
    %445 = vector.shape_cast %444 : vector<1x48x16xf32> to vector<48x16xf32>
    %cst_167 = arith.constant dense<0.000000e+00> : vector<24x16xf32>
    %446 = tpu.matmul %436, %445, %cst_167 {dimension_numbers = #tpu.dot_dimension_numbers<[1], [0], [0], [1], [0, 0, 1, 1], [], []>} : vector<24x48xf32>, vector<48x16xf32>, vector<24x16xf32> -> vector<24x16xf32>
    %447 = arith.addf %443, %446 : vector<24x16xf32>
    %448 = vector.broadcast %339 : vector<1x16xf32> to vector<24x16xf32>
    %449 = arith.addf %447, %448 : vector<24x16xf32>
    %450 = vector.shape_cast %449 : vector<24x16xf32> to vector<1x24x16xf32>
    %cst_168 = arith.constant dense<0xFF800000> : vector<1x24xf32>
    %451 = vector.multi_reduction <maximumf>, %450, %cst_168 [2] : vector<1x24x16xf32> to vector<1x24xf32>
    %452 = vector.shape_cast %451 : vector<1x24xf32> to vector<1x24x1xf32>
    %453 = vector.broadcast %452 : vector<1x24x1xf32> to vector<1x24x16xf32>
    %454 = arith.subf %450, %453 : vector<1x24x16xf32>
    %455 = math.exp %454 : vector<1x24x16xf32>
    %cst_169 = arith.constant dense<0.000000e+00> : vector<1x24xf32>
    %456 = vector.multi_reduction <add>, %455, %cst_169 [2] : vector<1x24x16xf32> to vector<1x24xf32>
    %457 = vector.shape_cast %456 : vector<1x24xf32> to vector<1x24x1xf32>
    %458 = tpu.reciprocal %457 {approx = true} : vector<1x24x1xf32> -> vector<1x24x1xf32>
    %459 = vector.broadcast %458 : vector<1x24x1xf32> to vector<1x24x16xf32>
    %460 = arith.mulf %455, %459 : vector<1x24x16xf32>
    %461 = tpu.iota {dimensions = array<i32: 1>} : vector<1x24x1xi32>
    %c1_i32 = arith.constant 1 : i32
    %462 = vector.broadcast %c1_i32 : i32 to vector<1x24x1xi32>
    %463 = arith.cmpi sge, %461, %462 : vector<1x24x1xi32>
    %c17_i32_170 = arith.constant 17 : i32
    %464 = vector.broadcast %c17_i32_170 : i32 to vector<1x24x1xi32>
    %465 = arith.cmpi slt, %461, %464 : vector<1x24x1xi32>
    %466 = arith.andi %463, %465 : vector<1x24x1xi1>
    %467 = arith.extui %466 : vector<1x24x1xi1> to vector<1x24x1xi32>
    %468 = arith.sitofp %467 : vector<1x24x1xi32> to vector<1x24x1xf32>
    %469 = tpu.iota {dimensions = array<i32: 1>} : vector<1x24x16xi32>
    %470 = tpu.iota {dimensions = array<i32: 2>} : vector<1x24x16xi32>
    %c0_i32 = arith.constant 0 : i32
    %471 = vector.broadcast %c0_i32 : i32 to vector<1x24x16xi32>
    %472 = arith.cmpi eq, %469, %471 : vector<1x24x16xi32>
    %c0_i32_171 = arith.constant 0 : i32
    %473 = vector.broadcast %c0_i32_171 : i32 to vector<1x24x16xi32>
    %474 = arith.cmpi eq, %470, %473 : vector<1x24x16xi32>
    %475 = arith.andi %472, %474 : vector<1x24x16xi1>
    %476 = arith.extui %475 : vector<1x24x16xi1> to vector<1x24x16xi32>
    %477 = arith.sitofp %476 : vector<1x24x16xi32> to vector<1x24x16xf32>
    %478 = vector.broadcast %468 : vector<1x24x1xf32> to vector<1x24x16xf32>
    %479 = arith.mulf %460, %478 : vector<1x24x16xf32>
    %480 = arith.addf %479, %477 : vector<1x24x16xf32>
    %481 = tpu.transpose %480, [0, 2, 1] : vector<1x24x16xf32> -> vector<1x16x24xf32>
    "tpu.trace_start"() <{level = 10 : i32, message = "bmn,bnc->bmc"}> : () -> ()
    %cst_172 = arith.constant dense<0.000000e+00> : vector<1x16x48xf32>
    %482 = tpu.matmul %481, %332, %cst_172 {dimension_numbers = #tpu.dot_dimension_numbers<[2], [1], [1], [2], [0, 0, 0, 1, 1, 2], [0], [0]>} : vector<1x16x24xf32>, vector<1x24x48xf32>, vector<1x16x48xf32> -> vector<1x16x48xf32>
    "tpu.trace_stop"() : () -> ()
    "tpu.trace_start"() <{level = 10 : i32, message = "bon,bnm->bom"}> : () -> ()
    %cst_173 = arith.constant dense<0.000000e+00> : vector<1x1x16xf32>
    %483 = tpu.matmul %15, %480, %cst_173 {dimension_numbers = #tpu.dot_dimension_numbers<[2], [1], [1], [2], [0, 0, 0, 1, 1, 2], [0], [0]>} : vector<1x1x24xf32>, vector<1x24x16xf32>, vector<1x1x16xf32> -> vector<1x1x16xf32>
    "tpu.trace_stop"() : () -> ()
    %484 = vector.shape_cast %482 : vector<1x16x48xf32> to vector<16x48xf32>
    %c26 = arith.constant 26 : index
    %c0_174 = arith.constant 0 : index
    %485 = vector.load %arg2[%c26, %c0_174] : memref<56x48xf32, #tpu.memory_space<vmem>>, vector<1x48xf32>
    %c30 = arith.constant 30 : index
    %c0_175 = arith.constant 0 : index
    %486 = vector.load %arg2[%c30, %c0_175] : memref<56x48xf32, #tpu.memory_space<vmem>>, vector<1x48xf32>
    %cst_176 = arith.constant dense<0.000000e+00> : vector<16xf32>
    %487 = vector.multi_reduction <add>, %484, %cst_176 [1] : vector<16x48xf32> to vector<16xf32>
    %488 = vector.shape_cast %487 : vector<16xf32> to vector<16x1xf32>
    %cst_177 = arith.constant 4.800000e+01 : f32
    %489 = vector.broadcast %cst_177 : f32 to vector<16x1xf32>
    %490 = arith.divf %488, %489 : vector<16x1xf32>
    %491 = vector.broadcast %490 : vector<16x1xf32> to vector<16x48xf32>
    %492 = arith.subf %484, %491 : vector<16x48xf32>
    %493 = arith.mulf %492, %492 : vector<16x48xf32>
    %cst_178 = arith.constant dense<0.000000e+00> : vector<16xf32>
    %494 = vector.multi_reduction <add>, %493, %cst_178 [1] : vector<16x48xf32> to vector<16xf32>
    %495 = vector.shape_cast %494 : vector<16xf32> to vector<16x1xf32>
    %cst_179 = arith.constant 4.800000e+01 : f32
    %496 = vector.broadcast %cst_179 : f32 to vector<16x1xf32>
    %497 = arith.divf %495, %496 : vector<16x1xf32>
    %498 = vector.broadcast %490 : vector<16x1xf32> to vector<16x48xf32>
    %499 = arith.subf %484, %498 : vector<16x48xf32>
    %cst_180 = arith.constant 9.99999997E-7 : f32
    %500 = vector.broadcast %cst_180 : f32 to vector<16x1xf32>
    %501 = arith.addf %497, %500 : vector<16x1xf32>
    %502 = math.rsqrt %501 : vector<16x1xf32>
    %503 = vector.broadcast %502 : vector<16x1xf32> to vector<16x48xf32>
    %504 = arith.mulf %499, %503 : vector<16x48xf32>
    %505 = vector.broadcast %485 : vector<1x48xf32> to vector<16x48xf32>
    %506 = arith.mulf %504, %505 : vector<16x48xf32>
    %507 = vector.broadcast %486 : vector<1x48xf32> to vector<16x48xf32>
    %508 = arith.addf %506, %507 : vector<16x48xf32>
    %c2_181 = arith.constant 2 : index
    %c0_182 = arith.constant 0 : index
    %c0_183 = arith.constant 0 : index
    %509 = vector.load %arg7[%c2_181, %c0_182, %c0_183] : memref<4x48x144xbf16, #tpu.memory_space<vmem>>, vector<1x48x144xbf16>
    %510 = vector.shape_cast %509 : vector<1x48x144xbf16> to vector<48x144xbf16>
    %511 = arith.truncf %508 : vector<16x48xf32> to vector<16x48xbf16>
    %cst_184 = arith.constant dense<0.000000e+00> : vector<16x144xf32>
    %512 = tpu.matmul %511, %510, %cst_184 {dimension_numbers = #tpu.dot_dimension_numbers<[1], [0], [0], [1], [0, 0, 1, 1], [], []>} : vector<16x48xbf16>, vector<48x144xbf16>, vector<16x144xf32> -> vector<16x144xf32>
    %c2_185 = arith.constant 2 : index
    %c0_186 = arith.constant 0 : index
    %513 = vector.load %arg4[%c2_185, %c0_186] : memref<4x144xf32, #tpu.memory_space<vmem>>, vector<1x144xf32>
    %514 = vector.broadcast %513 : vector<1x144xf32> to vector<16x144xf32>
    %515 = arith.addf %512, %514 : vector<16x144xf32>
    %516 = vector.shape_cast %515 : vector<16x144xf32> to vector<1x16x144xf32>
    %517 = arith.truncf %516 : vector<1x16x144xf32> to vector<1x16x144xbf16>
    %518 = tpu.iota {dimensions = array<i32: 2>} : vector<1x1x16xi32>
    %c9_i32 = arith.constant 9 : i32
    %519 = vector.broadcast %c9_i32 : i32 to vector<1x1x16xi32>
    %520 = arith.cmpi slt, %518, %519 : vector<1x1x16xi32>
    %521 = vector.shape_cast %483 : vector<1x1x16xf32> to vector<1x1x16xf32>
    %522 = vector.broadcast %521 : vector<1x1x16xf32> to vector<1x16x16xf32>
    %523 = vector.extract_strided_slice %517 {offsets = [0, 0, 0], sizes = [1, 16, 16], strides = [1, 1, 1]} : vector<1x16x144xbf16> to vector<1x16x16xbf16>
    %524 = vector.extract_strided_slice %517 {offsets = [0, 0, 48], sizes = [1, 16, 16], strides = [1, 1, 1]} : vector<1x16x144xbf16> to vector<1x16x16xbf16>
    %525 = vector.extract_strided_slice %517 {offsets = [0, 0, 96], sizes = [1, 16, 16], strides = [1, 1, 1]} : vector<1x16x144xbf16> to vector<1x16x16xbf16>
    "tpu.trace_start"() <{level = 10 : i32, message = "bqd,bkd->bqk"}> : () -> ()
    %cst_187 = arith.constant dense<0.000000e+00> : vector<1x16x16xf32>
    %526 = tpu.matmul %523, %524, %cst_187 {dimension_numbers = #tpu.dot_dimension_numbers<[2], [2], [1], [1], [0, 0, 0, 1, 1, 1], [0], [0]>} : vector<1x16x16xbf16>, vector<1x16x16xbf16>, vector<1x16x16xf32> -> vector<1x16x16xf32>
    %cst_188 = arith.constant -1.000000e+30 : f32
    "tpu.trace_stop"() : () -> ()
    %527 = vector.shape_cast %520 : vector<1x1x16xi1> to vector<1x1x16xi1>
    %528 = vector.broadcast %527 : vector<1x1x16xi1> to vector<1x16x16xi1>
    %529 = vector.broadcast %cst_188 : f32 to vector<1x16x16xf32>
    %530 = arith.select %528, %526, %529 : vector<1x16x16xi1>, vector<1x16x16xf32>
    %cst_189 = arith.constant dense<0xFF800000> : vector<1x16xf32>
    %531 = vector.multi_reduction <maximumf>, %530, %cst_189 [2] : vector<1x16x16xf32> to vector<1x16xf32>
    %532 = vector.shape_cast %531 : vector<1x16xf32> to vector<1x16x1xf32>
    %533 = vector.broadcast %532 : vector<1x16x1xf32> to vector<1x16x16xf32>
    %534 = arith.subf %530, %533 : vector<1x16x16xf32>
    %535 = math.exp %534 : vector<1x16x16xf32>
    %536 = arith.mulf %535, %522 : vector<1x16x16xf32>
    %cst_190 = arith.constant dense<0.000000e+00> : vector<1x16xf32>
    %537 = vector.multi_reduction <add>, %536, %cst_190 [2] : vector<1x16x16xf32> to vector<1x16xf32>
    %538 = vector.shape_cast %537 : vector<1x16xf32> to vector<1x16x1xf32>
    %539 = tpu.reciprocal %538 {approx = true} : vector<1x16x1xf32> -> vector<1x16x1xf32>
    %540 = vector.broadcast %539 : vector<1x16x1xf32> to vector<1x16x16xf32>
    %541 = arith.mulf %536, %540 : vector<1x16x16xf32>
    %542 = arith.truncf %541 : vector<1x16x16xf32> to vector<1x16x16xbf16>
    "tpu.trace_start"() <{level = 10 : i32, message = "bqk,bkd->bqd"}> : () -> ()
    %cst_191 = arith.constant dense<0.000000e+00> : vector<1x16x16xf32>
    %543 = tpu.matmul %542, %525, %cst_191 {dimension_numbers = #tpu.dot_dimension_numbers<[2], [1], [1], [2], [0, 0, 0, 1, 1, 2], [0], [0]>} : vector<1x16x16xbf16>, vector<1x16x16xbf16>, vector<1x16x16xf32> -> vector<1x16x16xf32>
    "tpu.trace_stop"() : () -> ()
    %544 = vector.extract_strided_slice %517 {offsets = [0, 0, 16], sizes = [1, 16, 16], strides = [1, 1, 1]} : vector<1x16x144xbf16> to vector<1x16x16xbf16>
    %545 = vector.extract_strided_slice %517 {offsets = [0, 0, 64], sizes = [1, 16, 16], strides = [1, 1, 1]} : vector<1x16x144xbf16> to vector<1x16x16xbf16>
    %546 = vector.extract_strided_slice %517 {offsets = [0, 0, 112], sizes = [1, 16, 16], strides = [1, 1, 1]} : vector<1x16x144xbf16> to vector<1x16x16xbf16>
    "tpu.trace_start"() <{level = 10 : i32, message = "bqd,bkd->bqk"}> : () -> ()
    %cst_192 = arith.constant dense<0.000000e+00> : vector<1x16x16xf32>
    %547 = tpu.matmul %544, %545, %cst_192 {dimension_numbers = #tpu.dot_dimension_numbers<[2], [2], [1], [1], [0, 0, 0, 1, 1, 1], [0], [0]>} : vector<1x16x16xbf16>, vector<1x16x16xbf16>, vector<1x16x16xf32> -> vector<1x16x16xf32>
    %cst_193 = arith.constant -1.000000e+30 : f32
    "tpu.trace_stop"() : () -> ()
    %548 = vector.shape_cast %520 : vector<1x1x16xi1> to vector<1x1x16xi1>
    %549 = vector.broadcast %548 : vector<1x1x16xi1> to vector<1x16x16xi1>
    %550 = vector.broadcast %cst_193 : f32 to vector<1x16x16xf32>
    %551 = arith.select %549, %547, %550 : vector<1x16x16xi1>, vector<1x16x16xf32>
    %cst_194 = arith.constant dense<0xFF800000> : vector<1x16xf32>
    %552 = vector.multi_reduction <maximumf>, %551, %cst_194 [2] : vector<1x16x16xf32> to vector<1x16xf32>
    %553 = vector.shape_cast %552 : vector<1x16xf32> to vector<1x16x1xf32>
    %554 = vector.broadcast %553 : vector<1x16x1xf32> to vector<1x16x16xf32>
    %555 = arith.subf %551, %554 : vector<1x16x16xf32>
    %556 = math.exp %555 : vector<1x16x16xf32>
    %557 = arith.mulf %556, %522 : vector<1x16x16xf32>
    %cst_195 = arith.constant dense<0.000000e+00> : vector<1x16xf32>
    %558 = vector.multi_reduction <add>, %557, %cst_195 [2] : vector<1x16x16xf32> to vector<1x16xf32>
    %559 = vector.shape_cast %558 : vector<1x16xf32> to vector<1x16x1xf32>
    %560 = tpu.reciprocal %559 {approx = true} : vector<1x16x1xf32> -> vector<1x16x1xf32>
    %561 = vector.broadcast %560 : vector<1x16x1xf32> to vector<1x16x16xf32>
    %562 = arith.mulf %557, %561 : vector<1x16x16xf32>
    %563 = arith.truncf %562 : vector<1x16x16xf32> to vector<1x16x16xbf16>
    "tpu.trace_start"() <{level = 10 : i32, message = "bqk,bkd->bqd"}> : () -> ()
    %cst_196 = arith.constant dense<0.000000e+00> : vector<1x16x16xf32>
    %564 = tpu.matmul %563, %546, %cst_196 {dimension_numbers = #tpu.dot_dimension_numbers<[2], [1], [1], [2], [0, 0, 0, 1, 1, 2], [0], [0]>} : vector<1x16x16xbf16>, vector<1x16x16xbf16>, vector<1x16x16xf32> -> vector<1x16x16xf32>
    "tpu.trace_stop"() : () -> ()
    %565 = vector.extract_strided_slice %517 {offsets = [0, 0, 32], sizes = [1, 16, 16], strides = [1, 1, 1]} : vector<1x16x144xbf16> to vector<1x16x16xbf16>
    %566 = vector.extract_strided_slice %517 {offsets = [0, 0, 80], sizes = [1, 16, 16], strides = [1, 1, 1]} : vector<1x16x144xbf16> to vector<1x16x16xbf16>
    %567 = vector.extract_strided_slice %517 {offsets = [0, 0, 128], sizes = [1, 16, 16], strides = [1, 1, 1]} : vector<1x16x144xbf16> to vector<1x16x16xbf16>
    "tpu.trace_start"() <{level = 10 : i32, message = "bqd,bkd->bqk"}> : () -> ()
    %cst_197 = arith.constant dense<0.000000e+00> : vector<1x16x16xf32>
    %568 = tpu.matmul %565, %566, %cst_197 {dimension_numbers = #tpu.dot_dimension_numbers<[2], [2], [1], [1], [0, 0, 0, 1, 1, 1], [0], [0]>} : vector<1x16x16xbf16>, vector<1x16x16xbf16>, vector<1x16x16xf32> -> vector<1x16x16xf32>
    %cst_198 = arith.constant -1.000000e+30 : f32
    "tpu.trace_stop"() : () -> ()
    %569 = vector.shape_cast %520 : vector<1x1x16xi1> to vector<1x1x16xi1>
    %570 = vector.broadcast %569 : vector<1x1x16xi1> to vector<1x16x16xi1>
    %571 = vector.broadcast %cst_198 : f32 to vector<1x16x16xf32>
    %572 = arith.select %570, %568, %571 : vector<1x16x16xi1>, vector<1x16x16xf32>
    %cst_199 = arith.constant dense<0xFF800000> : vector<1x16xf32>
    %573 = vector.multi_reduction <maximumf>, %572, %cst_199 [2] : vector<1x16x16xf32> to vector<1x16xf32>
    %574 = vector.shape_cast %573 : vector<1x16xf32> to vector<1x16x1xf32>
    %575 = vector.broadcast %574 : vector<1x16x1xf32> to vector<1x16x16xf32>
    %576 = arith.subf %572, %575 : vector<1x16x16xf32>
    %577 = math.exp %576 : vector<1x16x16xf32>
    %578 = arith.mulf %577, %522 : vector<1x16x16xf32>
    %cst_200 = arith.constant dense<0.000000e+00> : vector<1x16xf32>
    %579 = vector.multi_reduction <add>, %578, %cst_200 [2] : vector<1x16x16xf32> to vector<1x16xf32>
    %580 = vector.shape_cast %579 : vector<1x16xf32> to vector<1x16x1xf32>
    %581 = tpu.reciprocal %580 {approx = true} : vector<1x16x1xf32> -> vector<1x16x1xf32>
    %582 = vector.broadcast %581 : vector<1x16x1xf32> to vector<1x16x16xf32>
    %583 = arith.mulf %578, %582 : vector<1x16x16xf32>
    %584 = arith.truncf %583 : vector<1x16x16xf32> to vector<1x16x16xbf16>
    "tpu.trace_start"() <{level = 10 : i32, message = "bqk,bkd->bqd"}> : () -> ()
    %cst_201 = arith.constant dense<0.000000e+00> : vector<1x16x16xf32>
    %585 = tpu.matmul %584, %567, %cst_201 {dimension_numbers = #tpu.dot_dimension_numbers<[2], [1], [1], [2], [0, 0, 0, 1, 1, 2], [0], [0]>} : vector<1x16x16xbf16>, vector<1x16x16xbf16>, vector<1x16x16xf32> -> vector<1x16x16xf32>
    "tpu.trace_stop"() : () -> ()
    %586 = tpu.concatenate %543, %564, %585 in 2 : vector<1x16x16xf32>, vector<1x16x16xf32>, vector<1x16x16xf32> -> vector<1x16x48xf32>
    %587 = vector.shape_cast %586 : vector<1x16x48xf32> to vector<16x48xf32>
    %c3 = arith.constant 3 : index
    %c0_202 = arith.constant 0 : index
    %c0_203 = arith.constant 0 : index
    %588 = vector.load %arg6[%c3, %c0_202, %c0_203] : memref<5x48x48xbf16, #tpu.memory_space<vmem>>, vector<1x48x48xbf16>
    %589 = vector.shape_cast %588 : vector<1x48x48xbf16> to vector<48x48xbf16>
    %590 = arith.truncf %587 : vector<16x48xf32> to vector<16x48xbf16>
    %cst_204 = arith.constant dense<0.000000e+00> : vector<16x48xf32>
    %591 = tpu.matmul %590, %589, %cst_204 {dimension_numbers = #tpu.dot_dimension_numbers<[1], [0], [0], [1], [0, 0, 1, 1], [], []>} : vector<16x48xbf16>, vector<48x48xbf16>, vector<16x48xf32> -> vector<16x48xf32>
    %592 = arith.addf %484, %591 : vector<16x48xf32>
    %c42 = arith.constant 42 : index
    %c0_205 = arith.constant 0 : index
    %593 = vector.load %arg2[%c42, %c0_205] : memref<56x48xf32, #tpu.memory_space<vmem>>, vector<1x48xf32>
    %594 = vector.broadcast %593 : vector<1x48xf32> to vector<16x48xf32>
    %595 = arith.addf %592, %594 : vector<16x48xf32>
    %c34 = arith.constant 34 : index
    %c0_206 = arith.constant 0 : index
    %596 = vector.load %arg2[%c34, %c0_206] : memref<56x48xf32, #tpu.memory_space<vmem>>, vector<1x48xf32>
    %c38 = arith.constant 38 : index
    %c0_207 = arith.constant 0 : index
    %597 = vector.load %arg2[%c38, %c0_207] : memref<56x48xf32, #tpu.memory_space<vmem>>, vector<1x48xf32>
    %cst_208 = arith.constant dense<0.000000e+00> : vector<16xf32>
    %598 = vector.multi_reduction <add>, %595, %cst_208 [1] : vector<16x48xf32> to vector<16xf32>
    %599 = vector.shape_cast %598 : vector<16xf32> to vector<16x1xf32>
    %cst_209 = arith.constant 4.800000e+01 : f32
    %600 = vector.broadcast %cst_209 : f32 to vector<16x1xf32>
    %601 = arith.divf %599, %600 : vector<16x1xf32>
    %602 = vector.broadcast %601 : vector<16x1xf32> to vector<16x48xf32>
    %603 = arith.subf %595, %602 : vector<16x48xf32>
    %604 = arith.mulf %603, %603 : vector<16x48xf32>
    %cst_210 = arith.constant dense<0.000000e+00> : vector<16xf32>
    %605 = vector.multi_reduction <add>, %604, %cst_210 [1] : vector<16x48xf32> to vector<16xf32>
    %606 = vector.shape_cast %605 : vector<16xf32> to vector<16x1xf32>
    %cst_211 = arith.constant 4.800000e+01 : f32
    %607 = vector.broadcast %cst_211 : f32 to vector<16x1xf32>
    %608 = arith.divf %606, %607 : vector<16x1xf32>
    %609 = vector.broadcast %601 : vector<16x1xf32> to vector<16x48xf32>
    %610 = arith.subf %595, %609 : vector<16x48xf32>
    %cst_212 = arith.constant 9.99999997E-7 : f32
    %611 = vector.broadcast %cst_212 : f32 to vector<16x1xf32>
    %612 = arith.addf %608, %611 : vector<16x1xf32>
    %613 = math.rsqrt %612 : vector<16x1xf32>
    %614 = vector.broadcast %613 : vector<16x1xf32> to vector<16x48xf32>
    %615 = arith.mulf %610, %614 : vector<16x48xf32>
    %616 = vector.broadcast %596 : vector<1x48xf32> to vector<16x48xf32>
    %617 = arith.mulf %615, %616 : vector<16x48xf32>
    %618 = vector.broadcast %597 : vector<1x48xf32> to vector<16x48xf32>
    %619 = arith.addf %617, %618 : vector<16x48xf32>
    %c2_213 = arith.constant 2 : index
    %c0_214 = arith.constant 0 : index
    %c0_215 = arith.constant 0 : index
    %620 = vector.load %arg8[%c2_213, %c0_214, %c0_215] : memref<4x48x192xbf16, #tpu.memory_space<vmem>>, vector<1x48x192xbf16>
    %621 = vector.shape_cast %620 : vector<1x48x192xbf16> to vector<48x192xbf16>
    %622 = arith.truncf %619 : vector<16x48xf32> to vector<16x48xbf16>
    %cst_216 = arith.constant dense<0.000000e+00> : vector<16x192xf32>
    %623 = tpu.matmul %622, %621, %cst_216 {dimension_numbers = #tpu.dot_dimension_numbers<[1], [0], [0], [1], [0, 0, 1, 1], [], []>} : vector<16x48xbf16>, vector<48x192xbf16>, vector<16x192xf32> -> vector<16x192xf32>
    %c2_217 = arith.constant 2 : index
    %c0_218 = arith.constant 0 : index
    %624 = vector.load %arg5[%c2_217, %c0_218] : memref<4x192xf32, #tpu.memory_space<vmem>>, vector<1x192xf32>
    %625 = vector.broadcast %624 : vector<1x192xf32> to vector<16x192xf32>
    %626 = arith.addf %623, %625 : vector<16x192xf32>
    %cst_219 = arith.constant 5.000000e-01 : f32
    %627 = vector.broadcast %cst_219 : f32 to vector<16x192xf32>
    %628 = arith.mulf %627, %626 : vector<16x192xf32>
    %cst_220 = arith.constant 0.707106769 : f32
    %629 = vector.broadcast %cst_220 : f32 to vector<16x192xf32>
    %630 = arith.mulf %626, %629 : vector<16x192xf32>
    %631 = math.erf %630 : vector<16x192xf32>
    %cst_221 = arith.constant 1.000000e+00 : f32
    %632 = vector.broadcast %cst_221 : f32 to vector<16x192xf32>
    %633 = arith.addf %632, %631 : vector<16x192xf32>
    %634 = arith.mulf %628, %633 : vector<16x192xf32>
    %c2_222 = arith.constant 2 : index
    %c0_223 = arith.constant 0 : index
    %c0_224 = arith.constant 0 : index
    %635 = vector.load %arg9[%c2_222, %c0_223, %c0_224] : memref<4x192x48xbf16, #tpu.memory_space<vmem>>, vector<1x192x48xbf16>
    %636 = vector.shape_cast %635 : vector<1x192x48xbf16> to vector<192x48xbf16>
    %637 = arith.truncf %634 : vector<16x192xf32> to vector<16x192xbf16>
    %cst_225 = arith.constant dense<0.000000e+00> : vector<16x48xf32>
    %638 = tpu.matmul %637, %636, %cst_225 {dimension_numbers = #tpu.dot_dimension_numbers<[1], [0], [0], [1], [0, 0, 1, 1], [], []>} : vector<16x192xbf16>, vector<192x48xbf16>, vector<16x48xf32> -> vector<16x48xf32>
    %639 = arith.addf %595, %638 : vector<16x48xf32>
    %c46 = arith.constant 46 : index
    %c0_226 = arith.constant 0 : index
    %640 = vector.load %arg2[%c46, %c0_226] : memref<56x48xf32, #tpu.memory_space<vmem>>, vector<1x48xf32>
    %641 = vector.broadcast %640 : vector<1x48xf32> to vector<16x48xf32>
    %642 = arith.addf %639, %641 : vector<16x48xf32>
    %c27 = arith.constant 27 : index
    %c0_227 = arith.constant 0 : index
    %643 = vector.load %arg2[%c27, %c0_227] : memref<56x48xf32, #tpu.memory_space<vmem>>, vector<1x48xf32>
    %c31 = arith.constant 31 : index
    %c0_228 = arith.constant 0 : index
    %644 = vector.load %arg2[%c31, %c0_228] : memref<56x48xf32, #tpu.memory_space<vmem>>, vector<1x48xf32>
    %cst_229 = arith.constant dense<0.000000e+00> : vector<16xf32>
    %645 = vector.multi_reduction <add>, %642, %cst_229 [1] : vector<16x48xf32> to vector<16xf32>
    %646 = vector.shape_cast %645 : vector<16xf32> to vector<16x1xf32>
    %cst_230 = arith.constant 4.800000e+01 : f32
    %647 = vector.broadcast %cst_230 : f32 to vector<16x1xf32>
    %648 = arith.divf %646, %647 : vector<16x1xf32>
    %649 = vector.broadcast %648 : vector<16x1xf32> to vector<16x48xf32>
    %650 = arith.subf %642, %649 : vector<16x48xf32>
    %651 = arith.mulf %650, %650 : vector<16x48xf32>
    %cst_231 = arith.constant dense<0.000000e+00> : vector<16xf32>
    %652 = vector.multi_reduction <add>, %651, %cst_231 [1] : vector<16x48xf32> to vector<16xf32>
    %653 = vector.shape_cast %652 : vector<16xf32> to vector<16x1xf32>
    %cst_232 = arith.constant 4.800000e+01 : f32
    %654 = vector.broadcast %cst_232 : f32 to vector<16x1xf32>
    %655 = arith.divf %653, %654 : vector<16x1xf32>
    %656 = vector.broadcast %648 : vector<16x1xf32> to vector<16x48xf32>
    %657 = arith.subf %642, %656 : vector<16x48xf32>
    %cst_233 = arith.constant 9.99999997E-7 : f32
    %658 = vector.broadcast %cst_233 : f32 to vector<16x1xf32>
    %659 = arith.addf %655, %658 : vector<16x1xf32>
    %660 = math.rsqrt %659 : vector<16x1xf32>
    %661 = vector.broadcast %660 : vector<16x1xf32> to vector<16x48xf32>
    %662 = arith.mulf %657, %661 : vector<16x48xf32>
    %663 = vector.broadcast %643 : vector<1x48xf32> to vector<16x48xf32>
    %664 = arith.mulf %662, %663 : vector<16x48xf32>
    %665 = vector.broadcast %644 : vector<1x48xf32> to vector<16x48xf32>
    %666 = arith.addf %664, %665 : vector<16x48xf32>
    %c3_234 = arith.constant 3 : index
    %c0_235 = arith.constant 0 : index
    %c0_236 = arith.constant 0 : index
    %667 = vector.load %arg7[%c3_234, %c0_235, %c0_236] : memref<4x48x144xbf16, #tpu.memory_space<vmem>>, vector<1x48x144xbf16>
    %668 = vector.shape_cast %667 : vector<1x48x144xbf16> to vector<48x144xbf16>
    %669 = arith.truncf %666 : vector<16x48xf32> to vector<16x48xbf16>
    %cst_237 = arith.constant dense<0.000000e+00> : vector<16x144xf32>
    %670 = tpu.matmul %669, %668, %cst_237 {dimension_numbers = #tpu.dot_dimension_numbers<[1], [0], [0], [1], [0, 0, 1, 1], [], []>} : vector<16x48xbf16>, vector<48x144xbf16>, vector<16x144xf32> -> vector<16x144xf32>
    %c3_238 = arith.constant 3 : index
    %c0_239 = arith.constant 0 : index
    %671 = vector.load %arg4[%c3_238, %c0_239] : memref<4x144xf32, #tpu.memory_space<vmem>>, vector<1x144xf32>
    %672 = vector.broadcast %671 : vector<1x144xf32> to vector<16x144xf32>
    %673 = arith.addf %670, %672 : vector<16x144xf32>
    %674 = vector.shape_cast %673 : vector<16x144xf32> to vector<1x16x144xf32>
    %675 = arith.truncf %674 : vector<1x16x144xf32> to vector<1x16x144xbf16>
    %676 = tpu.iota {dimensions = array<i32: 2>} : vector<1x1x16xi32>
    %c9_i32_240 = arith.constant 9 : i32
    %677 = vector.broadcast %c9_i32_240 : i32 to vector<1x1x16xi32>
    %678 = arith.cmpi slt, %676, %677 : vector<1x1x16xi32>
    %679 = vector.shape_cast %483 : vector<1x1x16xf32> to vector<1x1x16xf32>
    %680 = vector.broadcast %679 : vector<1x1x16xf32> to vector<1x16x16xf32>
    %681 = vector.extract_strided_slice %675 {offsets = [0, 0, 0], sizes = [1, 16, 16], strides = [1, 1, 1]} : vector<1x16x144xbf16> to vector<1x16x16xbf16>
    %682 = vector.extract_strided_slice %675 {offsets = [0, 0, 48], sizes = [1, 16, 16], strides = [1, 1, 1]} : vector<1x16x144xbf16> to vector<1x16x16xbf16>
    %683 = vector.extract_strided_slice %675 {offsets = [0, 0, 96], sizes = [1, 16, 16], strides = [1, 1, 1]} : vector<1x16x144xbf16> to vector<1x16x16xbf16>
    "tpu.trace_start"() <{level = 10 : i32, message = "bqd,bkd->bqk"}> : () -> ()
    %cst_241 = arith.constant dense<0.000000e+00> : vector<1x16x16xf32>
    %684 = tpu.matmul %681, %682, %cst_241 {dimension_numbers = #tpu.dot_dimension_numbers<[2], [2], [1], [1], [0, 0, 0, 1, 1, 1], [0], [0]>} : vector<1x16x16xbf16>, vector<1x16x16xbf16>, vector<1x16x16xf32> -> vector<1x16x16xf32>
    %cst_242 = arith.constant -1.000000e+30 : f32
    "tpu.trace_stop"() : () -> ()
    %685 = vector.shape_cast %678 : vector<1x1x16xi1> to vector<1x1x16xi1>
    %686 = vector.broadcast %685 : vector<1x1x16xi1> to vector<1x16x16xi1>
    %687 = vector.broadcast %cst_242 : f32 to vector<1x16x16xf32>
    %688 = arith.select %686, %684, %687 : vector<1x16x16xi1>, vector<1x16x16xf32>
    %cst_243 = arith.constant dense<0xFF800000> : vector<1x16xf32>
    %689 = vector.multi_reduction <maximumf>, %688, %cst_243 [2] : vector<1x16x16xf32> to vector<1x16xf32>
    %690 = vector.shape_cast %689 : vector<1x16xf32> to vector<1x16x1xf32>
    %691 = vector.broadcast %690 : vector<1x16x1xf32> to vector<1x16x16xf32>
    %692 = arith.subf %688, %691 : vector<1x16x16xf32>
    %693 = math.exp %692 : vector<1x16x16xf32>
    %694 = arith.mulf %693, %680 : vector<1x16x16xf32>
    %cst_244 = arith.constant dense<0.000000e+00> : vector<1x16xf32>
    %695 = vector.multi_reduction <add>, %694, %cst_244 [2] : vector<1x16x16xf32> to vector<1x16xf32>
    %696 = vector.shape_cast %695 : vector<1x16xf32> to vector<1x16x1xf32>
    %697 = tpu.reciprocal %696 {approx = true} : vector<1x16x1xf32> -> vector<1x16x1xf32>
    %698 = vector.broadcast %697 : vector<1x16x1xf32> to vector<1x16x16xf32>
    %699 = arith.mulf %694, %698 : vector<1x16x16xf32>
    %700 = arith.truncf %699 : vector<1x16x16xf32> to vector<1x16x16xbf16>
    "tpu.trace_start"() <{level = 10 : i32, message = "bqk,bkd->bqd"}> : () -> ()
    %cst_245 = arith.constant dense<0.000000e+00> : vector<1x16x16xf32>
    %701 = tpu.matmul %700, %683, %cst_245 {dimension_numbers = #tpu.dot_dimension_numbers<[2], [1], [1], [2], [0, 0, 0, 1, 1, 2], [0], [0]>} : vector<1x16x16xbf16>, vector<1x16x16xbf16>, vector<1x16x16xf32> -> vector<1x16x16xf32>
    "tpu.trace_stop"() : () -> ()
    %702 = vector.extract_strided_slice %675 {offsets = [0, 0, 16], sizes = [1, 16, 16], strides = [1, 1, 1]} : vector<1x16x144xbf16> to vector<1x16x16xbf16>
    %703 = vector.extract_strided_slice %675 {offsets = [0, 0, 64], sizes = [1, 16, 16], strides = [1, 1, 1]} : vector<1x16x144xbf16> to vector<1x16x16xbf16>
    %704 = vector.extract_strided_slice %675 {offsets = [0, 0, 112], sizes = [1, 16, 16], strides = [1, 1, 1]} : vector<1x16x144xbf16> to vector<1x16x16xbf16>
    "tpu.trace_start"() <{level = 10 : i32, message = "bqd,bkd->bqk"}> : () -> ()
    %cst_246 = arith.constant dense<0.000000e+00> : vector<1x16x16xf32>
    %705 = tpu.matmul %702, %703, %cst_246 {dimension_numbers = #tpu.dot_dimension_numbers<[2], [2], [1], [1], [0, 0, 0, 1, 1, 1], [0], [0]>} : vector<1x16x16xbf16>, vector<1x16x16xbf16>, vector<1x16x16xf32> -> vector<1x16x16xf32>
    %cst_247 = arith.constant -1.000000e+30 : f32
    "tpu.trace_stop"() : () -> ()
    %706 = vector.shape_cast %678 : vector<1x1x16xi1> to vector<1x1x16xi1>
    %707 = vector.broadcast %706 : vector<1x1x16xi1> to vector<1x16x16xi1>
    %708 = vector.broadcast %cst_247 : f32 to vector<1x16x16xf32>
    %709 = arith.select %707, %705, %708 : vector<1x16x16xi1>, vector<1x16x16xf32>
    %cst_248 = arith.constant dense<0xFF800000> : vector<1x16xf32>
    %710 = vector.multi_reduction <maximumf>, %709, %cst_248 [2] : vector<1x16x16xf32> to vector<1x16xf32>
    %711 = vector.shape_cast %710 : vector<1x16xf32> to vector<1x16x1xf32>
    %712 = vector.broadcast %711 : vector<1x16x1xf32> to vector<1x16x16xf32>
    %713 = arith.subf %709, %712 : vector<1x16x16xf32>
    %714 = math.exp %713 : vector<1x16x16xf32>
    %715 = arith.mulf %714, %680 : vector<1x16x16xf32>
    %cst_249 = arith.constant dense<0.000000e+00> : vector<1x16xf32>
    %716 = vector.multi_reduction <add>, %715, %cst_249 [2] : vector<1x16x16xf32> to vector<1x16xf32>
    %717 = vector.shape_cast %716 : vector<1x16xf32> to vector<1x16x1xf32>
    %718 = tpu.reciprocal %717 {approx = true} : vector<1x16x1xf32> -> vector<1x16x1xf32>
    %719 = vector.broadcast %718 : vector<1x16x1xf32> to vector<1x16x16xf32>
    %720 = arith.mulf %715, %719 : vector<1x16x16xf32>
    %721 = arith.truncf %720 : vector<1x16x16xf32> to vector<1x16x16xbf16>
    "tpu.trace_start"() <{level = 10 : i32, message = "bqk,bkd->bqd"}> : () -> ()
    %cst_250 = arith.constant dense<0.000000e+00> : vector<1x16x16xf32>
    %722 = tpu.matmul %721, %704, %cst_250 {dimension_numbers = #tpu.dot_dimension_numbers<[2], [1], [1], [2], [0, 0, 0, 1, 1, 2], [0], [0]>} : vector<1x16x16xbf16>, vector<1x16x16xbf16>, vector<1x16x16xf32> -> vector<1x16x16xf32>
    "tpu.trace_stop"() : () -> ()
    %723 = vector.extract_strided_slice %675 {offsets = [0, 0, 32], sizes = [1, 16, 16], strides = [1, 1, 1]} : vector<1x16x144xbf16> to vector<1x16x16xbf16>
    %724 = vector.extract_strided_slice %675 {offsets = [0, 0, 80], sizes = [1, 16, 16], strides = [1, 1, 1]} : vector<1x16x144xbf16> to vector<1x16x16xbf16>
    %725 = vector.extract_strided_slice %675 {offsets = [0, 0, 128], sizes = [1, 16, 16], strides = [1, 1, 1]} : vector<1x16x144xbf16> to vector<1x16x16xbf16>
    "tpu.trace_start"() <{level = 10 : i32, message = "bqd,bkd->bqk"}> : () -> ()
    %cst_251 = arith.constant dense<0.000000e+00> : vector<1x16x16xf32>
    %726 = tpu.matmul %723, %724, %cst_251 {dimension_numbers = #tpu.dot_dimension_numbers<[2], [2], [1], [1], [0, 0, 0, 1, 1, 1], [0], [0]>} : vector<1x16x16xbf16>, vector<1x16x16xbf16>, vector<1x16x16xf32> -> vector<1x16x16xf32>
    %cst_252 = arith.constant -1.000000e+30 : f32
    "tpu.trace_stop"() : () -> ()
    %727 = vector.shape_cast %678 : vector<1x1x16xi1> to vector<1x1x16xi1>
    %728 = vector.broadcast %727 : vector<1x1x16xi1> to vector<1x16x16xi1>
    %729 = vector.broadcast %cst_252 : f32 to vector<1x16x16xf32>
    %730 = arith.select %728, %726, %729 : vector<1x16x16xi1>, vector<1x16x16xf32>
    %cst_253 = arith.constant dense<0xFF800000> : vector<1x16xf32>
    %731 = vector.multi_reduction <maximumf>, %730, %cst_253 [2] : vector<1x16x16xf32> to vector<1x16xf32>
    %732 = vector.shape_cast %731 : vector<1x16xf32> to vector<1x16x1xf32>
    %733 = vector.broadcast %732 : vector<1x16x1xf32> to vector<1x16x16xf32>
    %734 = arith.subf %730, %733 : vector<1x16x16xf32>
    %735 = math.exp %734 : vector<1x16x16xf32>
    %736 = arith.mulf %735, %680 : vector<1x16x16xf32>
    %cst_254 = arith.constant dense<0.000000e+00> : vector<1x16xf32>
    %737 = vector.multi_reduction <add>, %736, %cst_254 [2] : vector<1x16x16xf32> to vector<1x16xf32>
    %738 = vector.shape_cast %737 : vector<1x16xf32> to vector<1x16x1xf32>
    %739 = tpu.reciprocal %738 {approx = true} : vector<1x16x1xf32> -> vector<1x16x1xf32>
    %740 = vector.broadcast %739 : vector<1x16x1xf32> to vector<1x16x16xf32>
    %741 = arith.mulf %736, %740 : vector<1x16x16xf32>
    %742 = arith.truncf %741 : vector<1x16x16xf32> to vector<1x16x16xbf16>
    "tpu.trace_start"() <{level = 10 : i32, message = "bqk,bkd->bqd"}> : () -> ()
    %cst_255 = arith.constant dense<0.000000e+00> : vector<1x16x16xf32>
    %743 = tpu.matmul %742, %725, %cst_255 {dimension_numbers = #tpu.dot_dimension_numbers<[2], [1], [1], [2], [0, 0, 0, 1, 1, 2], [0], [0]>} : vector<1x16x16xbf16>, vector<1x16x16xbf16>, vector<1x16x16xf32> -> vector<1x16x16xf32>
    "tpu.trace_stop"() : () -> ()
    %744 = tpu.concatenate %701, %722, %743 in 2 : vector<1x16x16xf32>, vector<1x16x16xf32>, vector<1x16x16xf32> -> vector<1x16x48xf32>
    %745 = vector.shape_cast %744 : vector<1x16x48xf32> to vector<16x48xf32>
    %c4 = arith.constant 4 : index
    %c0_256 = arith.constant 0 : index
    %c0_257 = arith.constant 0 : index
    %746 = vector.load %arg6[%c4, %c0_256, %c0_257] : memref<5x48x48xbf16, #tpu.memory_space<vmem>>, vector<1x48x48xbf16>
    %747 = vector.shape_cast %746 : vector<1x48x48xbf16> to vector<48x48xbf16>
    %748 = arith.truncf %745 : vector<16x48xf32> to vector<16x48xbf16>
    %cst_258 = arith.constant dense<0.000000e+00> : vector<16x48xf32>
    %749 = tpu.matmul %748, %747, %cst_258 {dimension_numbers = #tpu.dot_dimension_numbers<[1], [0], [0], [1], [0, 0, 1, 1], [], []>} : vector<16x48xbf16>, vector<48x48xbf16>, vector<16x48xf32> -> vector<16x48xf32>
    %750 = arith.addf %642, %749 : vector<16x48xf32>
    %c43 = arith.constant 43 : index
    %c0_259 = arith.constant 0 : index
    %751 = vector.load %arg2[%c43, %c0_259] : memref<56x48xf32, #tpu.memory_space<vmem>>, vector<1x48xf32>
    %752 = vector.broadcast %751 : vector<1x48xf32> to vector<16x48xf32>
    %753 = arith.addf %750, %752 : vector<16x48xf32>
    %c35 = arith.constant 35 : index
    %c0_260 = arith.constant 0 : index
    %754 = vector.load %arg2[%c35, %c0_260] : memref<56x48xf32, #tpu.memory_space<vmem>>, vector<1x48xf32>
    %c39 = arith.constant 39 : index
    %c0_261 = arith.constant 0 : index
    %755 = vector.load %arg2[%c39, %c0_261] : memref<56x48xf32, #tpu.memory_space<vmem>>, vector<1x48xf32>
    %cst_262 = arith.constant dense<0.000000e+00> : vector<16xf32>
    %756 = vector.multi_reduction <add>, %753, %cst_262 [1] : vector<16x48xf32> to vector<16xf32>
    %757 = vector.shape_cast %756 : vector<16xf32> to vector<16x1xf32>
    %cst_263 = arith.constant 4.800000e+01 : f32
    %758 = vector.broadcast %cst_263 : f32 to vector<16x1xf32>
    %759 = arith.divf %757, %758 : vector<16x1xf32>
    %760 = vector.broadcast %759 : vector<16x1xf32> to vector<16x48xf32>
    %761 = arith.subf %753, %760 : vector<16x48xf32>
    %762 = arith.mulf %761, %761 : vector<16x48xf32>
    %cst_264 = arith.constant dense<0.000000e+00> : vector<16xf32>
    %763 = vector.multi_reduction <add>, %762, %cst_264 [1] : vector<16x48xf32> to vector<16xf32>
    %764 = vector.shape_cast %763 : vector<16xf32> to vector<16x1xf32>
    %cst_265 = arith.constant 4.800000e+01 : f32
    %765 = vector.broadcast %cst_265 : f32 to vector<16x1xf32>
    %766 = arith.divf %764, %765 : vector<16x1xf32>
    %767 = vector.broadcast %759 : vector<16x1xf32> to vector<16x48xf32>
    %768 = arith.subf %753, %767 : vector<16x48xf32>
    %cst_266 = arith.constant 9.99999997E-7 : f32
    %769 = vector.broadcast %cst_266 : f32 to vector<16x1xf32>
    %770 = arith.addf %766, %769 : vector<16x1xf32>
    %771 = math.rsqrt %770 : vector<16x1xf32>
    %772 = vector.broadcast %771 : vector<16x1xf32> to vector<16x48xf32>
    %773 = arith.mulf %768, %772 : vector<16x48xf32>
    %774 = vector.broadcast %754 : vector<1x48xf32> to vector<16x48xf32>
    %775 = arith.mulf %773, %774 : vector<16x48xf32>
    %776 = vector.broadcast %755 : vector<1x48xf32> to vector<16x48xf32>
    %777 = arith.addf %775, %776 : vector<16x48xf32>
    %c3_267 = arith.constant 3 : index
    %c0_268 = arith.constant 0 : index
    %c0_269 = arith.constant 0 : index
    %778 = vector.load %arg8[%c3_267, %c0_268, %c0_269] : memref<4x48x192xbf16, #tpu.memory_space<vmem>>, vector<1x48x192xbf16>
    %779 = vector.shape_cast %778 : vector<1x48x192xbf16> to vector<48x192xbf16>
    %780 = arith.truncf %777 : vector<16x48xf32> to vector<16x48xbf16>
    %cst_270 = arith.constant dense<0.000000e+00> : vector<16x192xf32>
    %781 = tpu.matmul %780, %779, %cst_270 {dimension_numbers = #tpu.dot_dimension_numbers<[1], [0], [0], [1], [0, 0, 1, 1], [], []>} : vector<16x48xbf16>, vector<48x192xbf16>, vector<16x192xf32> -> vector<16x192xf32>
    %c3_271 = arith.constant 3 : index
    %c0_272 = arith.constant 0 : index
    %782 = vector.load %arg5[%c3_271, %c0_272] : memref<4x192xf32, #tpu.memory_space<vmem>>, vector<1x192xf32>
    %783 = vector.broadcast %782 : vector<1x192xf32> to vector<16x192xf32>
    %784 = arith.addf %781, %783 : vector<16x192xf32>
    %cst_273 = arith.constant 5.000000e-01 : f32
    %785 = vector.broadcast %cst_273 : f32 to vector<16x192xf32>
    %786 = arith.mulf %785, %784 : vector<16x192xf32>
    %cst_274 = arith.constant 0.707106769 : f32
    %787 = vector.broadcast %cst_274 : f32 to vector<16x192xf32>
    %788 = arith.mulf %784, %787 : vector<16x192xf32>
    %789 = math.erf %788 : vector<16x192xf32>
    %cst_275 = arith.constant 1.000000e+00 : f32
    %790 = vector.broadcast %cst_275 : f32 to vector<16x192xf32>
    %791 = arith.addf %790, %789 : vector<16x192xf32>
    %792 = arith.mulf %786, %791 : vector<16x192xf32>
    %c3_276 = arith.constant 3 : index
    %c0_277 = arith.constant 0 : index
    %c0_278 = arith.constant 0 : index
    %793 = vector.load %arg9[%c3_276, %c0_277, %c0_278] : memref<4x192x48xbf16, #tpu.memory_space<vmem>>, vector<1x192x48xbf16>
    %794 = vector.shape_cast %793 : vector<1x192x48xbf16> to vector<192x48xbf16>
    %795 = arith.truncf %792 : vector<16x192xf32> to vector<16x192xbf16>
    %cst_279 = arith.constant dense<0.000000e+00> : vector<16x48xf32>
    %796 = tpu.matmul %795, %794, %cst_279 {dimension_numbers = #tpu.dot_dimension_numbers<[1], [0], [0], [1], [0, 0, 1, 1], [], []>} : vector<16x192xbf16>, vector<192x48xbf16>, vector<16x48xf32> -> vector<16x48xf32>
    %797 = arith.addf %753, %796 : vector<16x48xf32>
    %c47 = arith.constant 47 : index
    %c0_280 = arith.constant 0 : index
    %798 = vector.load %arg2[%c47, %c0_280] : memref<56x48xf32, #tpu.memory_space<vmem>>, vector<1x48xf32>
    %799 = vector.broadcast %798 : vector<1x48xf32> to vector<16x48xf32>
    %800 = arith.addf %797, %799 : vector<16x48xf32>
    %c48 = arith.constant 48 : index
    %c0_281 = arith.constant 0 : index
    %801 = vector.load %arg2[%c48, %c0_281] : memref<56x48xf32, #tpu.memory_space<vmem>>, vector<1x48xf32>
    %c49 = arith.constant 49 : index
    %c0_282 = arith.constant 0 : index
    %802 = vector.load %arg2[%c49, %c0_282] : memref<56x48xf32, #tpu.memory_space<vmem>>, vector<1x48xf32>
    %cst_283 = arith.constant dense<0.000000e+00> : vector<16xf32>
    %803 = vector.multi_reduction <add>, %800, %cst_283 [1] : vector<16x48xf32> to vector<16xf32>
    %804 = vector.shape_cast %803 : vector<16xf32> to vector<16x1xf32>
    %cst_284 = arith.constant 4.800000e+01 : f32
    %805 = vector.broadcast %cst_284 : f32 to vector<16x1xf32>
    %806 = arith.divf %804, %805 : vector<16x1xf32>
    %807 = vector.broadcast %806 : vector<16x1xf32> to vector<16x48xf32>
    %808 = arith.subf %800, %807 : vector<16x48xf32>
    %809 = arith.mulf %808, %808 : vector<16x48xf32>
    %cst_285 = arith.constant dense<0.000000e+00> : vector<16xf32>
    %810 = vector.multi_reduction <add>, %809, %cst_285 [1] : vector<16x48xf32> to vector<16xf32>
    %811 = vector.shape_cast %810 : vector<16xf32> to vector<16x1xf32>
    %cst_286 = arith.constant 4.800000e+01 : f32
    %812 = vector.broadcast %cst_286 : f32 to vector<16x1xf32>
    %813 = arith.divf %811, %812 : vector<16x1xf32>
    %814 = vector.broadcast %806 : vector<16x1xf32> to vector<16x48xf32>
    %815 = arith.subf %800, %814 : vector<16x48xf32>
    %cst_287 = arith.constant 9.99999997E-7 : f32
    %816 = vector.broadcast %cst_287 : f32 to vector<16x1xf32>
    %817 = arith.addf %813, %816 : vector<16x1xf32>
    %818 = math.rsqrt %817 : vector<16x1xf32>
    %819 = vector.broadcast %818 : vector<16x1xf32> to vector<16x48xf32>
    %820 = arith.mulf %815, %819 : vector<16x48xf32>
    %821 = vector.broadcast %801 : vector<1x48xf32> to vector<16x48xf32>
    %822 = arith.mulf %820, %821 : vector<16x48xf32>
    %823 = vector.broadcast %802 : vector<1x48xf32> to vector<16x48xf32>
    %824 = arith.addf %822, %823 : vector<16x48xf32>
    %c0_288 = arith.constant 0 : index
    %c0_289 = arith.constant 0 : index
    %825 = vector.load %arg12[%c0_288, %c0_289] : memref<48x128xbf16, #tpu.memory_space<vmem>>, vector<48x128xbf16>
    %826 = arith.truncf %824 : vector<16x48xf32> to vector<16x48xbf16>
    %cst_290 = arith.constant dense<0.000000e+00> : vector<16x128xf32>
    %827 = tpu.matmul %826, %825, %cst_290 {dimension_numbers = #tpu.dot_dimension_numbers<[1], [0], [0], [1], [0, 0, 1, 1], [], []>} : vector<16x48xbf16>, vector<48x128xbf16>, vector<16x128xf32> -> vector<16x128xf32>
    %c0_291 = arith.constant 0 : index
    %c0_292 = arith.constant 0 : index
    %828 = vector.load %arg13[%c0_291, %c0_292] : memref<1x128xf32, #tpu.memory_space<vmem>>, vector<1x128xf32>
    %829 = vector.broadcast %828 : vector<1x128xf32> to vector<16x128xf32>
    %830 = arith.addf %827, %829 : vector<16x128xf32>
    %831 = vector.shape_cast %830 : vector<16x128xf32> to vector<1x16x128xf32>
    %832 = vector.extract_strided_slice %831 {offsets = [0, 0, 0], sizes = [1, 1, 128], strides = [1, 1, 1]} : vector<1x16x128xf32> to vector<1x1x128xf32>
    %c0_293 = arith.constant 0 : index
    %c0_294 = arith.constant 0 : index
    %c0_295 = arith.constant 0 : index
    %833 = vector.load %arg14[%c0_293, %c0_294, %c0_295] : memref<1x1x128xf32, #tpu.memory_space<vmem>>, vector<1x1x128xf32>
    tpu.vector_store %arg14[%c0_293, %c0_294, %c0_295], %832 {strides = array<i32>} : memref<1x1x128xf32, #tpu.memory_space<vmem>>, vector<1x1x128xf32>,
    return
  }
  func.func @transform_0(%arg0: i32) -> (i32, i32, i32) {
    %c0_i32 = arith.constant 0 : i32
    %c0_i32_0 = arith.constant 0 : i32
    %c0_i32_1 = arith.constant 0 : i32
    return %arg0, %c0_i32, %c0_i32_0 : i32, i32, i32
  }
  func.func @transform_1(%arg0: i32) -> (i32, i32) {
    %c0_i32 = arith.constant 0 : i32
    %c0_i32_0 = arith.constant 0 : i32
    %c0_i32_1 = arith.constant 0 : i32
    return %c0_i32, %c0_i32_0 : i32, i32
  }
  func.func @transform_2(%arg0: i32) -> (i32, i32) {
    %c0_i32 = arith.constant 0 : i32
    %c0_i32_0 = arith.constant 0 : i32
    %c0_i32_1 = arith.constant 0 : i32
    return %c0_i32, %c0_i32_0 : i32, i32
  }
  func.func @transform_3(%arg0: i32) -> (i32, i32) {
    %c0_i32 = arith.constant 0 : i32
    %c0_i32_0 = arith.constant 0 : i32
    %c0_i32_1 = arith.constant 0 : i32
    return %c0_i32, %c0_i32_0 : i32, i32
  }
  func.func @transform_4(%arg0: i32) -> (i32, i32) {
    %c0_i32 = arith.constant 0 : i32
    %c0_i32_0 = arith.constant 0 : i32
    %c0_i32_1 = arith.constant 0 : i32
    return %c0_i32, %c0_i32_0 : i32, i32
  }
  func.func @transform_5(%arg0: i32) -> (i32, i32, i32) {
    %c0_i32 = arith.constant 0 : i32
    %c0_i32_0 = arith.constant 0 : i32
    %c0_i32_1 = arith.constant 0 : i32
    %c0_i32_2 = arith.constant 0 : i32
    return %c0_i32, %c0_i32_0, %c0_i32_1 : i32, i32, i32
  }
  func.func @transform_6(%arg0: i32) -> (i32, i32, i32) {
    %c0_i32 = arith.constant 0 : i32
    %c0_i32_0 = arith.constant 0 : i32
    %c0_i32_1 = arith.constant 0 : i32
    %c0_i32_2 = arith.constant 0 : i32
    return %c0_i32, %c0_i32_0, %c0_i32_1 : i32, i32, i32
  }
  func.func @transform_7(%arg0: i32) -> (i32, i32, i32) {
    %c0_i32 = arith.constant 0 : i32
    %c0_i32_0 = arith.constant 0 : i32
    %c0_i32_1 = arith.constant 0 : i32
    %c0_i32_2 = arith.constant 0 : i32
    return %c0_i32, %c0_i32_0, %c0_i32_1 : i32, i32, i32
  }
  func.func @transform_8(%arg0: i32) -> (i32, i32, i32) {
    %c0_i32 = arith.constant 0 : i32
    %c0_i32_0 = arith.constant 0 : i32
    %c0_i32_1 = arith.constant 0 : i32
    %c0_i32_2 = arith.constant 0 : i32
    return %c0_i32, %c0_i32_0, %c0_i32_1 : i32, i32, i32
  }
  func.func @transform_9(%arg0: i32) -> (i32, i32, i32) {
    %c0_i32 = arith.constant 0 : i32
    %c0_i32_0 = arith.constant 0 : i32
    %c0_i32_1 = arith.constant 0 : i32
    %c0_i32_2 = arith.constant 0 : i32
    return %c0_i32, %c0_i32_0, %c0_i32_1 : i32, i32, i32
  }
  func.func @transform_10(%arg0: i32) -> (i32, i32, i32) {
    %c0_i32 = arith.constant 0 : i32
    %c0_i32_0 = arith.constant 0 : i32
    %c0_i32_1 = arith.constant 0 : i32
    %c0_i32_2 = arith.constant 0 : i32
    return %c0_i32, %c0_i32_0, %c0_i32_1 : i32, i32, i32
  }
  func.func @transform_11(%arg0: i32) -> (i32, i32) {
    %c0_i32 = arith.constant 0 : i32
    %c0_i32_0 = arith.constant 0 : i32
    %c0_i32_1 = arith.constant 0 : i32
    return %c0_i32, %c0_i32_0 : i32, i32
  }
  func.func @transform_12(%arg0: i32) -> (i32, i32) {
    %c0_i32 = arith.constant 0 : i32
    %c0_i32_0 = arith.constant 0 : i32
    %c0_i32_1 = arith.constant 0 : i32
    return %c0_i32, %c0_i32_0 : i32, i32
  }
  func.func @transform_13(%arg0: i32) -> (i32, i32, i32) {
    %c0_i32 = arith.constant 0 : i32
    %c0_i32_0 = arith.constant 0 : i32
    %c0_i32_1 = arith.constant 0 : i32
    return %arg0, %c0_i32, %c0_i32_0 : i32, i32, i32
  }
}

</mosaic_0001>

<bundles_post_ra>
// kernel: forward.1
= control target key start
LH: loop header
LB: loop body
LE: loop exit
PB: predicated region body
PF: predicated region fallthrough
CT: control target
= control target key end

     0   :  { %s9465_s0 = inlined_call_operand.vmem [shape: f32[2,24,48], index: 0, kind: input, shape index: {}]   ;;  %s9466_s1 = inlined_call_operand.vmem [shape: f32[56,48], index: 1, kind: input, shape index: {}]   ;;  %s9467_s2 = inlined_call_operand.vmem [shape: f32[24,24], index: 2, kind: input, shape index: {}]   ;;  %s9468_s3 = inlined_call_operand.vmem [shape: f32[4,144], index: 3, kind: input, shape index: {}]   ;;  %s9469_s4 = inlined_call_operand.vmem [shape: f32[4,192], index: 4, kind: input, shape index: {}]   ;;  %s9470_s5 = inlined_call_operand.vmem [shape: bf16[5,48,48], index: 5, kind: input, shape index: {}]   ;;  %s9471_s6 = inlined_call_operand.vmem [shape: bf16[4,48,144], index: 6, kind: input, shape index: {}]   ;;  %s9472_s7 = inlined_call_operand.vmem [shape: bf16[4,48,192], index: 7, kind: input, shape index: {}]   ;;  %s9473_s8 = inlined_call_operand.vmem [shape: bf16[4,192,48], index: 8, kind: input, shape index: {}]   ;;  %s9474_s9 = inlined_call_operand.vmem [shape: f32[3,48,48], index: 9, kind: input, shape index: {}]   ;;  %s9475_s10 = inlined_call_operand.vmem [shape: f32[3,48,16], index: 10, kind: input, shape index: {}]   ;;  %s9476_s11 = inlined_call_operand.vmem [shape: bf16[48,128], index: 11, kind: input, shape index: {}]   ;;  %s9477_s12 = inlined_call_operand.vmem [shape: f32[1,128], index: 12, kind: input, shape index: {}]   ;;  %s9478_s13 = inlined_call_operand.hbm [shape: f32[2,1,128], index: 13, kind: output, shape index: {}]  }
   0x1   :  { %9500 = sst [smem:[#allocation11_spill]] %s9465_s0 }
   0x2   :  { %9501 = sst [smem:[#allocation12_spill]] %s9477_s12 }
   0x3   :  { %9502 = sst [smem:[#allocation13_spill]] %s9478_s13 }
   0x4   :  { %18 = vsyncpa [#allocation3], 0 }
   0x5   :  { %20 = vsyncpa [#allocation3 + $0x1], 0  ;;  %s7799_s25 = smov 0   ;;  %s7801_s26 = smov 0  }
   0x6   :  { %s7803_s27 = smov 0   ;;  %s7805_s28 = smov 0  }
   0x7 LB: > { %9503 = sst [smem:[#allocation5_spill]] %s7704_s25  ;;  %s7820_s29 = sadd.s32 4294967295, %s7716_s28   ;;  %s7716_s28 = sphi %s7805_s28, %s9524_s28   ;;  %s7712_s27 = sphi %s7803_s27, %s9526_s27   ;;  %s7708_s26 = sphi %s7801_s26, %s9528_s26   ;;  %s7704_s25 = sphi %s7799_s25, %s9527_s25  }
   0x8   : > { %9504 = sst [smem:[#allocation6_spill]] %s7712_s27  ;;  %s6153_s30 = sadd.s32 4294967294, %s7716_s28  }
   0x9   : > { %9505 = sst [smem:[#allocation7_spill]] %s7716_s28  ;;  %s7824_s14 = sadd.s32 1, %s7716_s28  }
   0xa   : > { %9506 = sst [smem:[#allocation8_spill]] %s7824_s14  ;;  %s311_s15 = sadd.s32 1, %s7712_s27 }
   0xb   : > { %s308_s16 = ssub.s32 %s7716_s28, %s7824_s14  ;;  %p321_p0 = scmp.ne.s32.totalorder %s7712_s27, %s7708_s26 }
   0xc   : > { %p309_p1 = scmp.eq.s32.totalorder %s308_s16, 0  ;;  %p322_p2 = scmp.eq.s32.totalorder %s7820_s29, 1 }
   0xd   : > { %p327_p3 = scmp.ne.s32.totalorder %s7708_s26, %s7704_s25  ;;  %p328_p4 = scmp.eq.s32.totalorder %s6153_s30, 1 }
   0xe   : > { %s7835_s17 = scalar_select %p309_p1, %s7712_s27, %s311_s15  }
   0xf   : > { %p7837_p5 = por %p322_p2, %p321_p0  ;;  %p7841_p6 = por %p328_p4, %p327_p3 }
  0x10   : > { %9507 = sst [smem:[#allocation9_spill]] %s7835_s17  ;;  %p6156_p7 = scmp.ge.s32.totalorder %s7716_s28, 1 }
  0x11   : > { %s9509_s19 = scalar_select %p7841_p6, 1, 0 }
  0x12   : > { %p390_p8 = scmp.lt.s32.totalorder %s7716_s28, 3 }
  0x13   : > { %9510 = sst [smem:[#allocation10_spill]] %s9509_s19 }
  0x14   : > { %p391_p9 = pnand %p6156_p7, %p390_p8 }
  0x15   : > { %p433_p10 = scmp.lt.s32.totalorder (!%p391_p9), %s7820_s29, 1  ;;  %s9511_s0 = sld [smem:[#allocation11_spill]] (!%p391_p9) }
  0x16   : > { %394 = sbr.rel (%p391_p9) target bundleno = 15247 (0x3b8f), region = 72  ;;  %s9492_s23 = smov (!%p391_p9), 80  }
  0x17   : > { %s9486_s24 = smov (!%p391_p9), 64   ;;  %s9488_s30 = smov (!%p391_p9), 112  }
  0x18   : > { %s9484_s21 = smov (!%p391_p9), 96   ;;  %s9512_s27 = smov (!%p391_p9), 80  }
  0x19   : > { %s9513_s17 = smov (!%p391_p9), 32   ;;  %s431_s12 = sand.u32 (!%p391_p9), 1, %s7708_s26  }
  0x1a   : > { %s9519_s14 = sld [smem:[#allocation12_spill]] (!%p391_p9)  ;;  %s6564_s19 = sshll.u32 (!%p391_p9), %s7820_s29, 4 }
  0x1b   : > { %v7272_v0 = vld [vmem:[%s9470_s5 + $0x10] sm:$0xff]   ;;  %v7273_v1 = vld [vmem:[%s9470_s5 + $0x8] sm:$0xff]   ;;  %v7274_v2 = vld [vmem:[%s9470_s5] sm:$0xff]   ;;  %s434_s15 = scalar_select %p433_p10, %s7820_s29, 1  ;;  %vm468_vm0 = vcmask 392192   ;;  %v7718_v42 = vmov 0  }
  0x1c   : > { %6747 = vmatprep.subr.bf16.mxu0 %v7272_v0  ;;  %v525_v8 = vld [vmem:[%s9466_s1 + $0x10] sm:$0xff]  ;;  %v523_v10 = vld [vmem:[%s9466_s1] sm:$0xff]  ;;  %v524_v16 = vld [vmem:[%s9466_s1 + $0x8] sm:$0xff]  ;;  %vm707_vm1 = vcmask 130048   ;;  %vm822_vm2 = vcmask 1043456   ;;  %vm772_vm4 = vcmask 195584  }
  0x1d   : > { %6748 = vmatpush3.bf16.msra.mxu0 %v7272_v0  ;;  %s7182_s16 = smul.u32 24, %s434_s15  ;;  %v7277_v36 = vld [vmem:[%s9471_s6 + $0x24] ss:$8 sps:$4 sm:$0xff]   ;;  %v7275_v37 = vld [vmem:[%s9471_s6 + $0x20] ss:$8 sps:$4 sm:$0xff]   ;;  %s9490_s15 = smov 32  }
  0x1e   : > { %6749 = vmatprep.subr.bf16.mxu0 %v7273_v1  ;;  %v7280_v38 = vld [vmem:[%s9471_s6 + $0x14] ss:$8 sps:$4 sm:$0xff]   ;;  %v7278_v39 = vld [vmem:[%s9471_s6 + $0x10] ss:$8 sps:$4 sm:$0xff]   ;;  %v7283_v40 = vld [vmem:[%s9471_s6 + $0x4] ss:$8 sps:$4 sm:$0xff]  }
  0x1f   : > { %s437_s20 = scalar_lea.vmem %s9511_s0, %s7182_s16  ;;  %v7281_v41 = vld [vmem:[%s9471_s6] ss:$8 sps:$4 sm:$0xff]   ;;  %v6164_v54 = vld [vmem:[%s9466_s1 + $0x18] ss:$0 sm:$0xff]  ;;  %v6165_v59 = vld [vmem:[%s9466_s1 + $0x1c] ss:$0 sm:$0xff] }
  0x20   : > { %v439_v3 = vld [vmem:[%s437_s20] sm:$0xff]  ;;  %v440_v4 = vld [vmem:[%s437_s20 + $0x8] sm:$0xff]  ;;  %v441_v5 = vld [vmem:[%s437_s20 + $0x10] sm:$0xff]  ;;  %s9480_s16 = smov 16   ;;  %s9482_s20 = smov 48   ;;  %vm1238_vm5 = vcmask 261120  }
  0x21   : > { %6750 = vmatpush3.bf16.msra.mxu0 %v7273_v1  ;;  %v448_v6 = vpack.c.bf16 %v440_v4, %v439_v3  ;;  %v449_v7 = vpack.c.bf16 %v441_v5, %v441_v5  ;;  %v529_v4 = vlaneseq  ;;  %vm1626_vm6 = vcmask 523264   ;;  %s7728_s29 = smov [#allocation2]  }
  0x22   : > { %6751 = vmatprep.subr.bf16.mxu0 %v7274_v2  ;;  %vm7727_vm7 = vmmov 0  }
  0x23   : > { %6753 = vmatprep.mubr.msk.bf16.mxu0 %vm468_vm0, %v448_v6  ;;  %v7918_v5 = vshrl.u32 %v529_v4, 7 }
  0x25   : > { %6752 = vmatpush3.bf16.msra.mxu0 %v7274_v2  ;;  %v7921_v6 = vsub.s32 0, %v7918_v5  ;;  %vm3921_vm8 = vcmp.eq.s32.totalorder %v7918_v5, 0  ;;  %vm3906_vm10 = vcmp.ge.s32.totalorder %v7918_v5, 1 }
  0x26   : > { %656 = vmatprep.subr.bf16.mxu0 %v7277_v36 }
  0x28   : > { %6754 = vmatmul.mubr.msk.bf16.vlgmr.msra.gmra.mxu0 %vm468_vm0, %v449_v7  ;;  %v598_v7 = vld [vmem:[%s9468_s3] ss:$4 sm:$0x3] }
  0x29   : > { %657 = vmatpush1.bf16.msra.mxu0 %v7275_v37  ;;  %678 = vmatprep.mubr.bf16.mxu0 %v7718_v42 }
  0x2a   : > { %658 = vmatprep.subr.bf16.mxu0 %v7280_v38 }
  0x2d   : > { %659 = vmatpush1.bf16.msra.mxu0 %v7278_v39 }
  0x2e   : > { %660 = vmatprep.subr.bf16.mxu0 %v7283_v40 }
  0x31   : > { %661 = vmatpush1.bf16.msra.mxu0 %v7281_v41 }
  0xe8   : > { %v6755_v9 = vpop.f32.mrf.mxu0 }
  0xe9   : > { %v7869_v11 = vadd.f32 %v6755_v9, %v525_v8  ;;  %v603_v9 = vrot.slane %v598_v7, %v7921_v6 }
  0xea   : > { %v509_v12 = vpop.f32.mrf.mxu0 }
  0xeb   : > { %v7871_v13 = vadd.f32 %v523_v10, %v509_v12  ;;  %v542_v14 = vsel %vm468_vm0, %v7869_v11, 0.0 }
  0xec   : > { %543 = vadd.xlane.f32.xlu1 %v542_v14  ;;  %v6756_v15 = vpop.f32.mrf.mxu0 }
  0xed   : > { %v536_v17 = vsel %vm468_vm0, %v7871_v13, 0.0 }
  0xee   : > { %537 = vadd.xlane.f32.xlu0 %v536_v17  ;;  %v512_v18 = vpop.f32.mrf.mxu0 }
  0xef   : > { %v7880_v19 = vadd.f32 %v524_v16, %v512_v18 }
  0xf1   : > { %v539_v20 = vsel %vm468_vm0, %v7880_v19, 0.0 }
  0xf2   : > { %540 = vadd.xlane.f32.xlu0 %v539_v20 }
 0x175   : > { %v544_v21 = vpop.xlane.xlu1 %543 }
 0x176   : > { %v548_v22 = vmul.f32 0.020833334, %v544_v21 }
 0x177   : > { %v538_v23 = vpop.xlane.xlu0 %537 }
 0x178   : > { %v546_v24 = vmul.f32 0.020833334, %v538_v23  ;;  %v551_v25 = vsub.f32 %v7869_v11, %v548_v22 }
 0x17a   : > { %v549_v26 = vsub.f32 %v7871_v13, %v546_v24  ;;  %v554_v32 = vmul.f32 %v551_v25, %v551_v25 }
 0x17b   : > { %v541_v27 = vpop.xlane.xlu0 %540 }
 0x17c   : > { %v547_v28 = vmul.f32 0.020833334, %v541_v27  ;;  %v552_v29 = vmul.f32 %v549_v26, %v549_v26  ;;  %v561_v34 = vsel %vm468_vm0, %v554_v32, 0.0 }
 0x17e   : > { %v550_v30 = vsub.f32 %v7880_v19, %v547_v28  ;;  %v555_v31 = vsel %vm468_vm0, %v552_v29, 0.0 }
 0x17f   : > { %556 = vadd.xlane.f32.xlu1 %v555_v31 }
 0x180   : > { %v553_v33 = vmul.f32 %v550_v30, %v550_v30 }
 0x182   : > { %v558_v35 = vsel %vm468_vm0, %v553_v33, 0.0 }
 0x183   : > { %562 = vadd.xlane.f32.xlu1 %v561_v34  ;;  %559 = vadd.xlane.f32.xlu0 %v558_v35 }
 0x208   : > { %v557_v43 = vpop.xlane.xlu1 %556 }
 0x209   : > { %v564_v44 = vmul.f32 0.020833334, %v557_v43 }
 0x20b   : > { %v567_v45 = vadd.f32 1e-06, %v564_v44  ;;  %v7963_v44 = vand.u32 127, %v529_v4 }
 0x20c   : > { %v563_v46 = vpop.xlane.xlu1 %562  ;;  %v560_v47 = vpop.xlane.xlu0 %559 }
 0x20d   : > { %7410 = vrsqrt.f32 %v567_v45  ;;  %v566_v48 = vmul.f32 0.020833334, %v563_v46  ;;  %v565_v49 = vmul.f32 0.020833334, %v560_v47  ;;  %vm531_vm3 = vcmp.lt.s32.totalorder %v7963_v44, 17 }
 0x20e   : > { %vm3924_vm9 = vcmp.eq.s32.totalorder %v7963_v44, 0  ;;  %vm4265_vm13 = vcmp.lt.s32.totalorder %v7963_v44, 9 }
 0x20f   : > { %v569_v50 = vadd.f32 1e-06, %v566_v48  ;;  %v568_v51 = vadd.f32 1e-06, %v565_v49  ;;  %vm3925_vm11 = vmand %vm3921_vm8, %vm3924_vm9 }
 0x211   : > { %7412 = vrsqrt.f32 %v569_v50 }
 0x212   : > { %7414 = vrsqrt.f32 %v568_v51 }
 0x21a   : > { %v7411_v52 = vpop.eup %7410 }
 0x21b   : > { %v573_v53 = vmul.f32 %v7411_v52, %v549_v26 }
 0x21d   : > { %v580_v58 = vmul.f32 %v6164_v54, %v573_v53 }
 0x21e   : > { %v7413_v55 = vpop.eup %7412 }
 0x21f   : > { %v7415_v56 = vpop.eup %7414  ;;  %v575_v61 = vmul.f32 %v7413_v55, %v551_v25  ;;  %v587_v62 = vadd.f32 %v6165_v59, %v580_v58 }
 0x220   : > { %v574_v57 = vmul.f32 %v7415_v56, %v550_v30  ;;  %v7951_v30 = vsub.s32 1, %v7918_v5 }
 0x221   : > { %v582_v1 = vmul.f32 %v6164_v54, %v575_v61 }
 0x222   : > { %v581_v60 = vmul.f32 %v6164_v54, %v574_v57  ;;  %v607_v34 = vrot.slane %v598_v7, %v7951_v30 }
 0x223   : > { %v589_v2 = vadd.f32 %v6165_v59, %v582_v1 }
 0x224   : > { %v588_v63 = vadd.f32 %v6165_v59, %v581_v60 }
 0x225   : > { %v597_v3 = vpack.c.bf16 %v589_v2, %v589_v2 }
 0x226   : > { %v596_v0 = vpack.c.bf16 %v588_v63, %v587_v62 }
 0x228   : > { %6172 = vmatmul.mubr.msk.bf16.vlgmr.msra.gmra.mxu0 %vm468_vm0, %v596_v0 }
 0x229   : > { %688 = vmatprep.mubr.bf16.mxu0 %v7718_v42 }
 0x230   : > { %6173 = vmatmul.mubr.msk.bf16.gmra.mxu0 %vm468_vm0, %v597_v3 }
 0x2e8   : > { %v680_v8 = vpop.f32.mrf.mxu0 }
 0x2e9   : > { %v681_v14 = vadd.f32 %v680_v8, %v603_v9 }
 0x2ea   : > { %v682_v10 = vpop.f32.mrf.mxu0 }
 0x2eb   : > { %v683_v39 = vadd.f32 %v682_v10, %v607_v34 }
 0x2ec   : > { %v684_v12 = vpop.f32.mrf.mxu0 }
 0x2ed   : > { %v685_v15 = vadd.f32 %v684_v12, %v603_v9 }
 0x2ee   : > { %v686_v16 = vpop.f32.mrf.mxu0 }
 0x2ef   : > { %v7927_v17 = vpack.c.bf16 %v685_v15, %v681_v14  ;;  %v687_v38 = vadd.f32 %v686_v16, %v607_v34 }
 0x2f0   : > { %v690_v18 = vpop.f32.mrf.mxu0 }
 0x2f1   : > { %v691_v20 = vadd.f32 %v690_v18, %v603_v9  ;;  %703 = vrot.lane.b32.xlu1 %v7927_v17, %s9492_s23  ;;  %6761 = vmatprep.mubr.msk.bf16.mxu0 %vm707_vm1, %v7927_v17  ;;  %v698_v41 = vpack.c.bf16 %v687_v38, %v683_v39 }
 0x2f2   : > { %v692_v21 = vpop.f32.mrf.mxu0 }
 0x2f3   : > { %v7933_v22 = vpack.c.bf16 %v691_v20, %v691_v20  ;;  %v693_v35 = vadd.f32 %v692_v21, %v607_v34 }
 0x2f4   : > { %v694_v23 = vpop.f32.mrf.mxu0 }
 0x2f5   : > { %705 = vrot.lane.b32.xlu0 %v7933_v22, %s9492_s23  ;;  %880 = vrot.lane.b32.xlu1 %v7933_v22, %s9486_s24  ;;  %v700_v36 = vpack.c.bf16 %v693_v35, %v693_v35  ;;  %s9516_s23 = smov 96  }
 0x2f6   : > { %v695_v24 = vpop.f32.mrf.mxu0 }
 0x2f7   : > { %v1161_v43 = vsel %vm822_vm2, %v700_v36, 0 }
 0x2f9   : > { %874 = vrot.lane.b32.xlu0 %v7927_v17, %s9488_s30  ;;  %878 = vrot.lane.b32.xlu1 %v7927_v17, %s9486_s24  ;;  %s9515_s24 = smov 64  }
 0x2fd   : > { %876 = vrot.lane.b32.xlu1 %v7933_v22, %s9488_s30  ;;  %s9517_s30 = smov 48  }
 0x363   : > { %v704_v27 = vpop.permute.xlu1 %703 }
 0x364   : > { %v715_v28 = vsel %vm707_vm1, %v704_v27, 0 }
 0x367   : > { %v706_v25 = vpop.permute.xlu0 %705  ;;  %v881_v29 = vpop.permute.xlu1 %880 }
 0x368   : > { %7164 = vmatprep.subr.msk.bf16.mxu0 %vm707_vm1, %v706_v25  ;;  %v718_v26 = vsel %vm707_vm1, %v706_v25, 0  ;;  %v892_v32 = vsel %vm707_vm1, %v881_v29, 0  ;;  %v7724_v25 = vmov 0.0  }
 0x369   : > { %6758 = vmatpush3.bf16.xpose.msra.mxu0 %v718_v26  ;;  %v7991_v26 = vsel %vm531_vm3, 1.0, %v7724_v25 }
 0x36a   : > { %7165 = vmatprep.subr.msk.bf16.mxu0 %vm707_vm1, %v704_v27 }
 0x36b   : > { %v875_v31 = vpop.permute.xlu0 %874  ;;  %v879_v33 = vpop.permute.xlu1 %878 }
 0x36c   : > { %v889_v37 = vsel %vm707_vm1, %v879_v33, 0 }
 0x36f   : > { %v877_v40 = vpop.permute.xlu1 %876 }
 0x371   : > { %6760 = vmatpush3.bf16.xpose.msra.mxu0 %v715_v28 }
 0x372   : > { %7167 = vmatprep.subr.msk.bf16.mxu0 %vm707_vm1, %v881_v29 }
 0x378   : > { %6762 = vmatmul.mubr.msk.bf16.vlgmr.msra.gmra.mxu0 %vm707_vm1, %v7933_v22 }
 0x379   : > { %6774 = vmatpush3.bf16.xpose.msra.mxu0 %v892_v32  ;;  %6777 = vmatprep.mubr.msk.bf16.mxu0 %vm707_vm1, %v875_v31 }
 0x37a   : > { %7168 = vmatprep.subr.msk.bf16.mxu0 %vm707_vm1, %v879_v33 }
 0x381   : > { %6776 = vmatpush3.bf16.xpose.msra.mxu0 %v889_v37 }
 0x382   : > { %7172 = vmatprep.subr.msk.bf16.mxu0 %vm822_vm2, %v700_v36 }
 0x388   : > { %6778 = vmatmul.mubr.msk.bf16.vlgmr.msra.gmra.mxu0 %vm707_vm1, %v877_v40 }
 0x389   : > { %6798 = vmatpush3.bf16.msra.mxu0 %v1161_v43 }
 0x38a   : > { %6799 = vmatprep.subr.bf16.mxu0 %v698_v41 }
 0x38d   : > { %6800 = vmatpush3.bf16.msra.mxu0 %v698_v41 }
 0x438   : > { %v6763_v45 = vpop.f32.mrf.mxu0 }
 0x439   : > { %v771_v50 = vsel %vm531_vm3, %v6763_v45, -1e+30 }
 0x43a   : > { %v754_v46 = vpop.f32.mrf.mxu0  ;;  %v779_v53 = vsel %vm772_vm4, %v771_v50, -inf }
 0x43b   : > { %v769_v47 = vsel %vm531_vm3, %v754_v46, -1e+30 }
 0x43c   : > { %v6764_v48 = vpop.f32.mrf.mxu0  ;;  %v773_v49 = vsel %vm772_vm4, %v769_v47, -inf }
 0x43d   : > { %774 = vmax.xlane.f32.xlu0 %v773_v49 }
 0x43e   : > { %v757_v51 = vpop.f32.mrf.mxu0 }
 0x43f   : > { %v770_v52 = vsel %vm531_vm3, %v757_v51, -1e+30 }
 0x440   : > { %v776_v54 = vsel %vm772_vm4, %v770_v52, -inf }
 0x441   : > { %780 = vmax.xlane.f32.xlu0 %v779_v53  ;;  %777 = vmax.xlane.f32.xlu1 %v776_v54 }
 0x448   : > { %v6779_v55 = vpop.f32.mrf.mxu0 }
 0x449   : > { %v944_v56 = vsel %vm531_vm3, %v6779_v55, -1e+30 }
 0x44a   : > { %v928_v57 = vpop.f32.mrf.mxu0  ;;  %v951_v58 = vsel %vm772_vm4, %v944_v56, -inf }
 0x44b   : > { %v942_v59 = vsel %vm531_vm3, %v928_v57, -1e+30  ;;  %952 = vmax.xlane.f32.xlu1 %v951_v58 }
 0x44c   : > { %v6780_v60 = vpop.f32.mrf.mxu0  ;;  %v945_v61 = vsel %vm772_vm4, %v942_v59, -inf }
 0x44d   : > { %946 = vmax.xlane.f32.xlu0 %v945_v61 }
 0x44e   : > { %v931_v62 = vpop.f32.mrf.mxu0 }
 0x44f   : > { %v943_v63 = vsel %vm531_vm3, %v931_v62, -1e+30 }
 0x450   : > { %v948_v0 = vsel %vm772_vm4, %v943_v63, -inf }
 0x451   : > { %949 = vmax.xlane.f32.xlu0 %v948_v0 }
 0x45c   : > { %811 = vrot.lane.b32.xlu1 %v7927_v17, %s9490_s15 }
 0x460   : > { %985 = vrot.lane.b32.xlu1 %v7933_v22, %s9480_s16 }
 0x4c6   : > { %v775_v1 = vpop.xlane.xlu0 %774 }
 0x4c7   : > { %v782_v2 = vsub.f32 %v769_v47, %v775_v1 }
 0x4c9   : > { %v785_v3 = vmul.f32 1.442695, %v782_v2 }
 0x4ca   : > { %v781_v4 = vpop.xlane.xlu0 %780  ;;  %v778_v7 = vpop.xlane.xlu1 %777 }
 0x4cb   : > { %v784_v8 = vsub.f32 %v771_v50, %v781_v4  ;;  %v783_v9 = vsub.f32 %v770_v52, %v778_v7  ;;  %7416 = vpow2.f32 %v785_v3 }
 0x4cd   : > { %v789_v10 = vmul.f32 1.442695, %v784_v8  ;;  %v787_v12 = vmul.f32 1.442695, %v783_v9 }
 0x4cf   : > { %7418 = vpow2.f32 %v789_v10 }
 0x4d0   : > { %7420 = vpow2.f32 %v787_v12 }
 0x4d4   : > { %v953_v14 = vpop.xlane.xlu1 %952 }
 0x4d5   : > { %v956_v15 = vsub.f32 %v944_v56, %v953_v14 }
 0x4d6   : > { %v947_v16 = vpop.xlane.xlu0 %946 }
 0x4d7   : > { %v961_v18 = vmul.f32 1.442695, %v956_v15  ;;  %v954_v20 = vsub.f32 %v942_v59, %v947_v16 }
 0x4d8   : > { %v7417_v23 = vpop.eup %7416  ;;  %v812_v49 = vpop.permute.xlu1 %811 }
 0x4d9   : > { %7422 = vpow2.f32 %v961_v18  ;;  %v957_v21 = vmul.f32 1.442695, %v954_v20  ;;  %v791_v32 = vmul.f32 %v7417_v23, %v7991_v26 }
 0x4da   : > { %v950_v41 = vpop.xlane.xlu0 %949 }
 0x4db   : > { %7424 = vpow2.f32 %v957_v21  ;;  %v794_v34 = vsel %vm772_vm4, %v791_v32, 0.0  ;;  %v955_v43 = vsub.f32 %v943_v63, %v950_v41 }
 0x4dc   : > { %v7419_v24 = vpop.eup %7418  ;;  %v986_v50 = vpop.permute.xlu1 %985 }
 0x4dd   : > { %v7421_v27 = vpop.eup %7420  ;;  %v793_v28 = vmul.f32 %v7419_v24, %v7991_v26  ;;  %v959_v45 = vmul.f32 1.442695, %v955_v43  ;;  %v995_v0 = vsel %vm822_vm2, %v986_v50, 0 }
 0x4de   : > { %v792_v29 = vmul.f32 %v7421_v27, %v7991_v26 }
 0x4df   : > { %v800_v31 = vsel %vm772_vm4, %v793_v28, 0.0  ;;  %7426 = vpow2.f32 %v959_v45 }
 0x4e0   : > { %801 = vadd.xlane.f32.xlu0 %v800_v31  ;;  %v797_v33 = vsel %vm772_vm4, %v792_v29, 0.0 }
 0x4e1   : > { %798 = vadd.xlane.f32.xlu1 %v797_v33 }
 0x4e4   : > { %795 = vadd.xlane.f32.xlu0 %v794_v34 }
 0x4e6   : > { %v7423_v35 = vpop.eup %7422 }
 0x4e7   : > { %v8000_v36 = vmul.f32 %v7423_v35, %v7991_v26 }
 0x4e8   : > { %v7425_v37 = vpop.eup %7424 }
 0x4e9   : > { %v972_v38 = vsel %vm772_vm4, %v8000_v36, 0.0  ;;  %v963_v39 = vmul.f32 %v7425_v37, %v7991_v26 }
 0x4ea   : > { %973 = vadd.xlane.f32.xlu1 %v972_v38 }
 0x4eb   : > { %v966_v40 = vsel %vm772_vm4, %v963_v39, 0.0 }
 0x4ec   : > { %v7427_v46 = vpop.eup %7426 }
 0x4ed   : > { %v964_v47 = vmul.f32 %v7427_v46, %v7991_v26 }
 0x4ee   : > { %967 = vadd.xlane.f32.xlu1 %v966_v40 }
 0x4ef   : > { %v969_v48 = vsel %vm772_vm4, %v964_v47, 0.0 }
 0x4fa   : > { %813 = vrot.lane.b32.xlu0 %v7933_v22, %s9490_s15 }
 0x4ff   : > { %983 = vrot.lane.b32.xlu1 %v7927_v17, %s9480_s16 }
 0x503   : > { %1049 = vrot.lane.b32.xlu1 %v7927_v17, %s9482_s20 }
 0x507   : > { %1047 = vrot.lane.b32.xlu1 %v7933_v22, %s9484_s21 }
 0x519   : > { %970 = vadd.xlane.f32.xlu0 %v969_v48 }
 0x52f   : > { %1051 = vrot.lane.b32.xlu0 %v7933_v22, %s9482_s20  ;;  %s432_s20 = scalar_lea.vmem [#allocation2], %s431_s12 }
 0x533   : > { %1045 = vrot.lane.b32.xlu0 %v7927_v17, %s9484_s21  ;;  %s6086_s21 = scalar_lea.sflag [#allocation3], %s431_s12 }
 0x569   : > { %v802_v51 = vpop.xlane.xlu0 %801 }
 0x56a   : > { %v799_v52 = vpop.xlane.xlu1 %798  ;;  %7428 = vrcp.f32 %v802_v51 }
 0x56b   : > { %7430 = vrcp.f32 %v799_v52 }
 0x56d   : > { %v796_v53 = vpop.xlane.xlu0 %795 }
 0x56e   : > { %7432 = vrcp.f32 %v796_v53 }
 0x571   : > { %v814_v54 = vpop.permute.xlu0 %813 }
 0x572   : > { %7166 = vmatprep.subr.msk.bf16.mxu1 %vm822_vm2, %v814_v54  ;;  %v824_v55 = vsel %vm822_vm2, %v814_v54, 0 }
 0x573   : > { %6766 = vmatpush3.bf16.msra.mxu1 %v824_v55  ;;  %v974_v56 = vpop.xlane.xlu1 %973 }
 0x574   : > { %6767 = vmatprep.subr.bf16.mxu1 %v812_v49  ;;  %7434 = vrcp.f32 %v974_v56 }
 0x577   : > { %6768 = vmatpush3.bf16.msra.mxu1 %v812_v49  ;;  %v7429_v22 = vpop.eup %7428  ;;  %v968_v59 = vpop.xlane.xlu1 %967 }
 0x578   : > { %7169 = vmatprep.subr.msk.bf16.mxu1 %vm822_vm2, %v986_v50  ;;  %v7431_v17 = vpop.eup %7430  ;;  %v808_v58 = vmul.f32 %v7429_v22, %v793_v28  ;;  %7436 = vrcp.f32 %v968_v59 }
 0x579   : > { %v807_v61 = vmul.f32 %v7431_v17, %v792_v29 }
 0x57a   : > { %v810_v63 = vpack.c.bf16 %v808_v58, %v808_v58 }
 0x57b   : > { %v7433_v57 = vpop.eup %7432  ;;  %v984_v1 = vpop.permute.xlu1 %983 }
 0x57c   : > { %v806_v60 = vmul.f32 %v7433_v57, %v791_v32 }
 0x57e   : > { %v809_v62 = vpack.c.bf16 %v807_v61, %v806_v60 }
 0x57f   : > { %v1050_v20 = vpop.permute.xlu1 %1049 }
 0x580   : > { %6769 = vmatprep.mubr.msk.bf16.mxu1 %vm772_vm4, %v809_v62  ;;  %v1060_v21 = vsel %vm707_vm1, %v1050_v20, 0 }
 0x581   : > { %6770 = vmatmul.mubr.msk.bf16.vlgmr.msra.gmra.mxu1 %vm772_vm4, %v810_v63  ;;  %v7435_v4 = vpop.eup %7434 }
 0x582   : > { %6782 = vmatpush3.bf16.msra.mxu1 %v995_v0  ;;  %v980_v9 = vmul.f32 %v7435_v4, %v8000_v36 }
 0x583   : > { %6783 = vmatprep.subr.bf16.mxu1 %v984_v1  ;;  %v1048_v23 = vpop.permute.xlu1 %1047 }
 0x584   : > { %v982_v15 = vpack.c.bf16 %v980_v9, %v980_v9 }
 0x585   : > { %v7437_v7 = vpop.eup %7436 }
 0x586   : > { %6784 = vmatpush3.bf16.msra.mxu1 %v984_v1  ;;  %v978_v10 = vmul.f32 %v7437_v7, %v963_v39 }
 0x5a2   : > { %v971_v2 = vpop.xlane.xlu0 %970 }
 0x5a3   : > { %7438 = vrcp.f32 %v971_v2 }
 0x5a6   : > { %v1052_v3 = vpop.permute.xlu0 %1051 }
 0x5a7   : > { %7170 = vmatprep.subr.msk.bf16.mxu1 %vm707_vm1, %v1052_v3  ;;  %v1063_v18 = vsel %vm707_vm1, %v1052_v3, 0 }
 0x5aa   : > { %v1046_v16 = vpop.permute.xlu0 %1045 }
 0x5b0   : > { %v7439_v8 = vpop.eup %7438 }
 0x5b1   : > { %v979_v12 = vmul.f32 %v7439_v8, %v964_v47 }
 0x5b3   : > { %v981_v14 = vpack.c.bf16 %v979_v12, %v978_v10 }
 0x5b5   : > { %6785 = vmatprep.mubr.msk.bf16.mxu1 %vm772_vm4, %v981_v14 }
 0x5b6   : > { %6786 = vmatmul.mubr.msk.bf16.vlgmr.msra.gmra.mxu1 %vm772_vm4, %v982_v15  ;;  %v7284_v15 = vld [vmem:[%s9470_s5 + $0x28] sm:$0xff]  }
 0x5b7   : > { %6790 = vmatpush3.bf16.xpose.msra.mxu1 %v1063_v18  ;;  %6793 = vmatprep.mubr.msk.bf16.mxu1 %vm707_vm1, %v1046_v16  ;;  %v7285_v16 = vld [vmem:[%s9470_s5 + $0x20] sm:$0xff]   ;;  %v7286_v18 = vld [vmem:[%s9470_s5 + $0x18] sm:$0xff]  }
 0x5b8   : > { %7171 = vmatprep.subr.msk.bf16.mxu1 %vm707_vm1, %v1050_v20  ;;  %6805 = vmatprep.subr.bf16.mxu0 %v7284_v15 }
 0x5bf   : > { %6792 = vmatpush3.bf16.xpose.msra.mxu1 %v1060_v21 }
 0x5c6   : > { %6794 = vmatmul.mubr.msk.bf16.vlgmr.msra.gmra.mxu1 %vm707_vm1, %v1048_v23 }
 0x5c7   : > { %1477 = vmatprep.mubr.bf16.mxu1 %v7718_v42 }
 0x641   : > { %v8036_v24 = vpop.f32.mrf.mxu1 }
 0x643   : > { %v8038_v27 = vpop.f32.mrf.mxu1 }
 0x645   : > { %v6772_v28 = vpop.f32.mrf.mxu1 }
 0x647   : > { %v8040_v29 = vpop.f32.mrf.mxu1 }
 0x676   : > { %v6787_v31 = vpop.f32.mrf.mxu1 }
 0x678   : > { %v1031_v32 = vpop.f32.mrf.mxu1 }
 0x67a   : > { %v6788_v33 = vpop.f32.mrf.mxu1 }
 0x67c   : > { %v1034_v34 = vpop.f32.mrf.mxu1 }
 0x67d   : > { %v7232_v63 = vpack.i.bf16 %v1034_v34, %v1031_v32 }
 0x686   : > { %v6795_v35 = vpop.f32.mrf.mxu1 }
 0x687   : > { %v1115_v40 = vsel %vm531_vm3, %v6795_v35, -1e+30 }
 0x688   : > { %v1099_v36 = vpop.f32.mrf.mxu1  ;;  %v1122_v45 = vsel %vm772_vm4, %v1115_v40, -inf }
 0x689   : > { %v1113_v37 = vsel %vm531_vm3, %v1099_v36, -1e+30 }
 0x68a   : > { %v6796_v38 = vpop.f32.mrf.mxu1  ;;  %v1116_v39 = vsel %vm772_vm4, %v1113_v37, -inf }
 0x68b   : > { %1117 = vmax.xlane.f32.xlu0 %v1116_v39 }
 0x68c   : > { %v1102_v41 = vpop.f32.mrf.mxu1 }
 0x68d   : > { %v1114_v43 = vsel %vm531_vm3, %v1102_v41, -1e+30 }
 0x68e   : > { %v1119_v46 = vsel %vm772_vm4, %v1114_v43, -inf }
 0x68f   : > { %1123 = vmax.xlane.f32.xlu0 %v1122_v45  ;;  %1120 = vmax.xlane.f32.xlu1 %v1119_v46 }
 0x714   : > { %v1118_v47 = vpop.xlane.xlu0 %1117 }
 0x715   : > { %v1125_v48 = vsub.f32 %v1113_v37, %v1118_v47 }
 0x717   : > { %v1128_v49 = vmul.f32 1.442695, %v1125_v48 }
 0x718   : > { %v1124_v50 = vpop.xlane.xlu0 %1123  ;;  %v1121_v51 = vpop.xlane.xlu1 %1120 }
 0x719   : > { %7440 = vpow2.f32 %v1128_v49  ;;  %v1127_v52 = vsub.f32 %v1115_v40, %v1124_v50  ;;  %v1126_v53 = vsub.f32 %v1114_v43, %v1121_v51 }
 0x71b   : > { %v1132_v54 = vmul.f32 1.442695, %v1127_v52  ;;  %v1130_v55 = vmul.f32 1.442695, %v1126_v53  ;;  %v6197_v52 = vld [vmem:[%s9466_s1 + $0x28] ss:$0 sm:$0xff] }
 0x71d   : > { %7442 = vpow2.f32 %v1132_v54 }
 0x71e   : > { %7444 = vpow2.f32 %v1130_v55 }
 0x726   : > { %v7441_v56 = vpop.eup %7440 }
 0x727   : > { %v1134_v22 = vmul.f32 %v7441_v56, %v7991_v26 }
 0x729   : > { %v1137_v17 = vsel %vm772_vm4, %v1134_v22, 0.0 }
 0x72a   : > { %v7443_v57 = vpop.eup %7442  ;;  %1138 = vadd.xlane.f32.xlu0 %v1137_v17 }
 0x72b   : > { %v7445_v58 = vpop.eup %7444  ;;  %v1136_v59 = vmul.f32 %v7443_v57, %v7991_v26 }
 0x72c   : > { %v1135_v60 = vmul.f32 %v7445_v58, %v7991_v26 }
 0x72d   : > { %v1143_v61 = vsel %vm772_vm4, %v1136_v59, 0.0 }
 0x72e   : > { %1144 = vadd.xlane.f32.xlu1 %v1143_v61  ;;  %v1140_v62 = vsel %vm772_vm4, %v1135_v60, 0.0 }
 0x72f   : > { %1141 = vadd.xlane.f32.xlu0 %v1140_v62 }
 0x73f   : > { %1218 = vrot.lane.b32.xlu1 %v6787_v31, %s9480_s16 }
 0x745   : > { %7233 = vrot.lane.b32.xlu0 %v7232_v63, %s9480_s16  ;;  %s9514_s16 = smov 112  }
 0x7b3   : > { %v1139_v0 = vpop.xlane.xlu0 %1138 }
 0x7b4   : > { %7446 = vrcp.f32 %v1139_v0 }
 0x7b7   : > { %v1145_v1 = vpop.xlane.xlu1 %1144 }
 0x7b8   : > { %v1142_v2 = vpop.xlane.xlu0 %1141  ;;  %7448 = vrcp.f32 %v1145_v1 }
 0x7b9   : > { %7450 = vrcp.f32 %v1142_v2 }
 0x7bb   : > { %v1219_v33 = vpop.permute.xlu1 %1218 }
 0x7bc   : > { %v7234_v32 = vpop.permute.xlu0 %7233  ;;  %v1237_v45 = vsel %vm707_vm1, %v8036_v24, %v1219_v33 }
 0x7bd   : > { %v7236_v34 = vunpack.i.h.bf16 %v7234_v32  ;;  %v7235_v35 = vunpack.i.l.bf16 %v7234_v32 }
 0x7bf   : > { %v1236_v39 = vsel %vm707_vm1, %v8040_v29, %v7236_v34  ;;  %v1235_v40 = vsel %vm707_vm1, %v8038_v27, %v7235_v35 }
 0x7c1   : > { %v7447_v3 = vpop.eup %7446 }
 0x7c2   : > { %v1149_v9 = vmul.f32 %v7447_v3, %v1134_v22 }
 0x7c5   : > { %v7449_v4 = vpop.eup %7448 }
 0x7c6   : > { %v7451_v7 = vpop.eup %7450  ;;  %v1151_v8 = vmul.f32 %v7449_v4, %v1136_v59 }
 0x7c7   : > { %v1150_v10 = vmul.f32 %v7451_v7, %v1135_v60 }
 0x7c8   : > { %v1153_v12 = vpack.c.bf16 %v1151_v8, %v1151_v8 }
 0x7c9   : > { %v1152_v14 = vpack.c.bf16 %v1150_v10, %v1149_v9  ;;  %v7289_v9 = vld [vmem:[%s9472_s7 + $0x24] ss:$8 sps:$4 sm:$0xff]   ;;  %v7287_v10 = vld [vmem:[%s9472_s7 + $0x20] ss:$8 sps:$4 sm:$0xff]  }
 0x7ca   : > { %1455 = vmatprep.subr.bf16.mxu1 %v7289_v9 }
 0x7cb   : > { %6801 = vmatprep.mubr.msk.bf16.mxu0 %vm772_vm4, %v1152_v14  ;;  %1456 = vmatpush1.bf16.msra.mxu1 %v7287_v10  ;;  %v7290_v14 = vld [vmem:[%s9472_s7 + $0x10] ss:$8 sps:$4 sm:$0xff]  }
 0x7cc   : > { %6802 = vmatmul.mubr.msk.bf16.vlgmr.msra.gmra.mxu0 %vm772_vm4, %v1153_v12  ;;  %v7292_v12 = vld [vmem:[%s9472_s7 + $0x14] ss:$8 sps:$4 sm:$0xff]  }
 0x7cd   : > { %6806 = vmatpush3.bf16.msra.mxu0 %v7284_v15  ;;  %v7295_v15 = vld [vmem:[%s9472_s7 + $0x4] ss:$8 sps:$4 sm:$0xff]   ;;  %1457 = vmatprep.subr.bf16.mxu1 %v7292_v12 }
 0x7ce   : > { %6807 = vmatprep.subr.bf16.mxu0 %v7285_v16 }
 0x7cf   : > { %1458 = vmatpush1.bf16.msra.mxu1 %v7290_v14 }
 0x7d0   : > { %1459 = vmatprep.subr.bf16.mxu1 %v7295_v15 }
 0x7d1   : > { %6808 = vmatpush3.bf16.msra.mxu0 %v7285_v16  ;;  %v7293_v16 = vld [vmem:[%s9472_s7] ss:$8 sps:$4 sm:$0xff]  }
 0x7d2   : > { %6809 = vmatprep.subr.bf16.mxu0 %v7286_v18 }
 0x7d3   : > { %1460 = vmatpush1.bf16.msra.mxu1 %v7293_v16 }
 0x7d5   : > { %6810 = vmatpush3.bf16.msra.mxu0 %v7286_v18  ;;  %v7296_v18 = vld [vmem:[%s9473_s8 + $0x38] sm:$0xff]  }
 0x7d6   : > { %1633 = vmatprep.subr.bf16.mxu0 %v7718_v42 }
 0x88c   : > { %v6803_v20 = vpop.f32.mrf.mxu0 }
 0x88e   : > { %v1197_v21 = vpop.f32.mrf.mxu0 }
 0x890   : > { %v6804_v23 = vpop.f32.mrf.mxu0 }
 0x891   : > { %v7299_v23 = vld [vmem:[%s9473_s8 + $0x20] sm:$0xff]  }
 0x892   : > { %v1200_v28 = vpop.f32.mrf.mxu0 }
 0x893   : > { %v7237_v31 = vpack.i.bf16 %v1200_v28, %v1197_v21  ;;  %v7298_v21 = vld [vmem:[%s9473_s8 + $0x28] sm:$0xff]  }
 0x895   : > { %7238 = vrot.lane.b32.xlu1 %v7237_v31, %s9490_s15 }
 0x899   : > { %1230 = vrot.lane.b32.xlu1 %v6803_v20, %s9490_s15  ;;  %v7297_v20 = vld [vmem:[%s9473_s8 + $0x30] sm:$0xff]   ;;  %s9518_s15 = smov 16  }
 0x907   : > { %v7239_v36 = vpop.permute.xlu1 %7238 }
 0x908   : > { %v7241_v37 = vunpack.i.h.bf16 %v7239_v36  ;;  %v7240_v38 = vunpack.i.l.bf16 %v7239_v36 }
 0x90a   : > { %v1240_v41 = vsel %vm1238_vm5, %v1236_v39, %v7241_v37  ;;  %v1239_v43 = vsel %vm1238_vm5, %v1235_v40, %v7240_v38 }
 0x90b   : > { %v1231_v46 = vpop.permute.xlu1 %1230  ;;  %v1249_v47 = vpack.c.bf16 %v1240_v41, %v1239_v43  ;;  %v6198_v41 = vld [vmem:[%s9466_s1 + $0x20] ss:$0 sm:$0xff] }
 0x90c   : > { %v1241_v48 = vsel %vm1238_vm5, %v1237_v45, %v1231_v46 }
 0x90d   : > { %v1250_v49 = vpack.c.bf16 %v1241_v48, %v1241_v48  ;;  %6811 = vmatprep.mubr.msk.bf16.mxu0 %vm468_vm0, %v1249_v47  ;;  %v6199_v48 = vld [vmem:[%s9466_s1 + $0x24] ss:$0 sm:$0xff] }
 0x90f   : > { %6812 = vmatmul.mubr.msk.bf16.vlgmr.msra.gmra.mxu0 %vm468_vm0, %v1250_v49 }
 0x910   : > { %1634 = vmatpush1.bf16.msra.mxu0 %v7296_v18 }
 0x911   : > { %1635 = vmatprep.subr.bf16.mxu0 %v7718_v42 }
 0x914   : > { %1636 = vmatpush1.bf16.msra.mxu0 %v7297_v20 }
 0x915   : > { %1637 = vmatprep.subr.bf16.mxu0 %v7718_v42 }
 0x918   : > { %1638 = vmatpush1.bf16.msra.mxu0 %v7298_v21 }
 0x919   : > { %1639 = vmatprep.subr.bf16.mxu0 %v7718_v42 }
 0x91c   : > { %1640 = vmatpush1.bf16.msra.mxu0 %v7299_v23 }
 0x91d   : > { %1641 = vmatprep.subr.bf16.mxu0 %v7718_v42 }
 0x9cf   : > { %v6813_v29 = vpop.f32.mrf.mxu0 }
 0x9d0   : > { %v1325_v27 = vadd.f32 %v6813_v29, %v7869_v11 }
 0x9d1   : > { %v1309_v50 = vpop.f32.mrf.mxu0 }
 0x9d2   : > { %v1323_v51 = vadd.f32 %v1309_v50, %v7871_v13  ;;  %v8091_v55 = vadd.f32 %v6197_v52, %v1325_v27 }
 0x9d3   : > { %v6814_v24 = vpop.f32.mrf.mxu0 }
 0x9d4   : > { %v8089_v53 = vadd.f32 %v6197_v52, %v1323_v51  ;;  %v1342_v11 = vsel %vm468_vm0, %v8091_v55, 0.0 }
 0x9d5   : > { %v1312_v54 = vpop.f32.mrf.mxu0 }
 0x9d6   : > { %v1324_v56 = vadd.f32 %v1312_v54, %v7880_v19  ;;  %v1336_v22 = vsel %vm468_vm0, %v8089_v53, 0.0 }
 0x9d7   : > { %1337 = vadd.xlane.f32.xlu0 %v1336_v22  ;;  %v7301_v22 = vld [vmem:[%s9473_s8 + $0x10] sm:$0xff]  }
 0x9d8   : > { %v8096_v17 = vadd.f32 %v6197_v52, %v1324_v56  ;;  %v7300_v56 = vld [vmem:[%s9473_s8 + $0x18] sm:$0xff]  }
 0x9d9   : > { %1642 = vmatpush1.bf16.msra.mxu0 %v7300_v56 }
 0x9da   : > { %v1339_v13 = vsel %vm468_vm0, %v8096_v17, 0.0  ;;  %1643 = vmatprep.subr.bf16.mxu0 %v7718_v42 }
 0x9db   : > { %1343 = vadd.xlane.f32.xlu0 %v1342_v11  ;;  %1340 = vadd.xlane.f32.xlu1 %v1339_v13  ;;  %v7302_v11 = vld [vmem:[%s9473_s8 + $0x8] sm:$0xff]   ;;  %v7303_v13 = vld [vmem:[%s9473_s8] sm:$0xff]  }
 0x9dd   : > { %1644 = vmatpush1.bf16.msra.mxu0 %v7301_v22 }
 0x9de   : > { %1645 = vmatprep.subr.bf16.mxu0 %v7718_v42 }
 0x9e1   : > { %1646 = vmatpush1.bf16.msra.mxu0 %v7302_v11 }
 0x9e2   : > { %1647 = vmatprep.subr.bf16.mxu0 %v7718_v42 }
 0x9e5   : > { %1648 = vmatpush1.bf16.msra.mxu0 %v7303_v13 }
 0x9e6   : > { %1657 = vmatprep.subr.bf16.mxu0 %v7718_v42 }
 0xa60   : > { %v1338_v57 = vpop.xlane.xlu0 %1337 }
 0xa61   : > { %v1345_v58 = vmul.f32 0.020833334, %v1338_v57  ;;  %v7304_v57 = vld [vmem:[%s9473_s8 + $0x58] sm:$0xff]  }
 0xa62   : > { %1658 = vmatpush2.bf16.msra.mxu0 %v7304_v57 }
 0xa63   : > { %v1348_v59 = vsub.f32 %v8089_v53, %v1345_v58  ;;  %1659 = vmatprep.subr.bf16.mxu0 %v7718_v42  ;;  %v7305_v58 = vld [vmem:[%s9473_s8 + $0x50] sm:$0xff]  }
 0xa64   : > { %v1344_v60 = vpop.xlane.xlu0 %1343  ;;  %v1341_v19 = vpop.xlane.xlu1 %1340 }
 0xa65   : > { %v1347_v61 = vmul.f32 0.020833334, %v1344_v60  ;;  %v1346_v62 = vmul.f32 0.020833334, %v1341_v19  ;;  %v1351_v63 = vmul.f32 %v1348_v59, %v1348_v59  ;;  %v7307_v60 = vld [vmem:[%s9473_s8 + $0x40] sm:$0xff]  }
 0xa66   : > { %1660 = vmatpush2.bf16.msra.mxu0 %v7305_v58  ;;  %v1397_v19 = vld [vmem:[%s9469_s4] ss:$4 sm:$0x3] }
 0xa67   : > { %v1350_v0 = vsub.f32 %v8091_v55, %v1347_v61  ;;  %v1349_v1 = vsub.f32 %v8096_v17, %v1346_v62  ;;  %v1354_v2 = vsel %vm468_vm0, %v1351_v63, 0.0  ;;  %1661 = vmatprep.subr.bf16.mxu0 %v7718_v42  ;;  %v1402_v61 = vrot.slane %v1397_v19, %v7921_v6 }
 0xa68   : > { %1355 = vadd.xlane.f32.xlu0 %v1354_v2  ;;  %v1406_v62 = vrot.slane %v1397_v19, %v7951_v30 }
 0xa69   : > { %v1353_v3 = vmul.f32 %v1350_v0, %v1350_v0  ;;  %v1352_v4 = vmul.f32 %v1349_v1, %v1349_v1 }
 0xa6b   : > { %v1360_v7 = vsel %vm468_vm0, %v1353_v3, 0.0  ;;  %v1357_v8 = vsel %vm468_vm0, %v1352_v4, 0.0 }
 0xa6c   : > { %1361 = vadd.xlane.f32.xlu1 %v1360_v7  ;;  %1358 = vadd.xlane.f32.xlu0 %v1357_v8 }
 0xaf1   : > { %v1356_v28 = vpop.xlane.xlu0 %1355 }
 0xaf2   : > { %v1363_v31 = vmul.f32 0.020833334, %v1356_v28 }
 0xaf4   : > { %v1366_v32 = vadd.f32 1e-06, %v1363_v31 }
 0xaf5   : > { %v1359_v33 = vpop.xlane.xlu0 %1358  ;;  %v1362_v34 = vpop.xlane.xlu1 %1361 }
 0xaf6   : > { %7452 = vrsqrt.f32 %v1366_v32  ;;  %v1364_v35 = vmul.f32 0.020833334, %v1359_v33  ;;  %v1365_v36 = vmul.f32 0.020833334, %v1362_v34 }
 0xaf8   : > { %v1367_v37 = vadd.f32 1e-06, %v1364_v35  ;;  %v1368_v38 = vadd.f32 1e-06, %v1365_v36 }
 0xafa   : > { %7454 = vrsqrt.f32 %v1367_v37 }
 0xafb   : > { %7456 = vrsqrt.f32 %v1368_v38 }
 0xb03   : > { %v7453_v39 = vpop.eup %7452 }
 0xb04   : > { %v1372_v40 = vmul.f32 %v7453_v39, %v1348_v59  ;;  %v7306_v59 = vld [vmem:[%s9473_s8 + $0x48] sm:$0xff]  }
 0xb05   : > { %1662 = vmatpush2.bf16.msra.mxu0 %v7306_v59  ;;  %v6222_v59 = vld [vmem:[%s9466_s1 + $0x2c] ss:$0 sm:$0xff] }
 0xb06   : > { %v1379_v47 = vmul.f32 %v6198_v41, %v1372_v40  ;;  %1663 = vmatprep.subr.bf16.mxu0 %v7718_v42 }
 0xb07   : > { %v7455_v43 = vpop.eup %7454 }
 0xb08   : > { %v7457_v45 = vpop.eup %7456  ;;  %v1373_v46 = vmul.f32 %v7455_v43, %v1349_v1  ;;  %v1386_v50 = vadd.f32 %v6199_v48, %v1379_v47 }
 0xb09   : > { %v1374_v29 = vmul.f32 %v7457_v45, %v1350_v0  ;;  %1664 = vmatpush2.bf16.msra.mxu0 %v7307_v60 }
 0xb0a   : > { %v1380_v49 = vmul.f32 %v6198_v41, %v1373_v46 }
 0xb0b   : > { %v1381_v52 = vmul.f32 %v6198_v41, %v1374_v29 }
 0xb0c   : > { %v1387_v27 = vadd.f32 %v6199_v48, %v1380_v49 }
 0xb0d   : > { %v1388_v24 = vadd.f32 %v6199_v48, %v1381_v52 }
 0xb0e   : > { %v1395_v51 = vpack.c.bf16 %v1387_v27, %v1386_v50 }
 0xb0f   : > { %v1396_v54 = vpack.c.bf16 %v1388_v24, %v1388_v24 }
 0xb10   : > { %6206 = vmatmul.mubr.msk.bf16.vlgmr.msra.gmra.mxu1 %vm468_vm0, %v1395_v51 }
 0xb11   : > { %1487 = vmatprep.mubr.bf16.mxu1 %v7718_v42 }
 0xb18   : > { %6207 = vmatmul.mubr.msk.bf16.gmra.mxu1 %vm468_vm0, %v1396_v54 }
 0xb19   : > { %1837 = vmatprep.mubr.bf16.mxu1 %v7718_v42 }
 0xbd0   : > { %v1479_v63 = vpop.f32.mrf.mxu1 }
 0xbd1   : > { %v1480_v0 = vadd.f32 %v1479_v63, %v1402_v61 }
 0xbd2   : > { %v1481_v1 = vpop.f32.mrf.mxu1 }
 0xbd3   : > { %v1482_v2 = vadd.f32 %v1481_v1, %v1406_v62  ;;  %v1502_v3 = vmul.f32 0.70710677, %v1480_v0  ;;  %v1496_v45 = vmul.f32 0.5, %v1480_v0 }
 0xbd4   : > { %v1483_v4 = vpop.f32.mrf.mxu1 }
 0xbd5   : > { %v1503_v7 = vmul.f32 0.70710677, %v1482_v2  ;;  %v1484_v8 = vadd.f32 %v1483_v4, %v1402_v61  ;;  %v1497_v40 = vmul.f32 0.5, %v1482_v2 }
 0xbd6   : > { %v1485_v9 = vpop.f32.mrf.mxu1 }
 0xbd7   : > { %7458 = verf.f32 %v1503_v7  ;;  %v1504_v10 = vmul.f32 0.70710677, %v1484_v8  ;;  %v1486_v12 = vadd.f32 %v1485_v9, %v1406_v62  ;;  %v1498_v39 = vmul.f32 0.5, %v1484_v8 }
 0xbd8   : > { %7460 = verf.f32 %v1502_v3  ;;  %v1489_v14 = vpop.f32.mrf.mxu1 }
 0xbd9   : > { %7462 = verf.f32 %v1504_v10  ;;  %v1505_v15 = vmul.f32 0.70710677, %v1486_v12  ;;  %v1490_v16 = vadd.f32 %v1489_v14, %v1402_v61  ;;  %v1499_v41 = vmul.f32 0.5, %v1486_v12 }
 0xbda   : > { %v1491_v18 = vpop.f32.mrf.mxu1 }
 0xbdb   : > { %7464 = verf.f32 %v1505_v15  ;;  %v1506_v20 = vmul.f32 0.70710677, %v1490_v16  ;;  %v1492_v21 = vadd.f32 %v1491_v18, %v1406_v62  ;;  %v1500_v22 = vmul.f32 0.5, %v1490_v16 }
 0xbdc   : > { %v1493_v23 = vpop.f32.mrf.mxu1 }
 0xbdd   : > { %v1507_v28 = vmul.f32 0.70710677, %v1492_v21  ;;  %7466 = verf.f32 %v1506_v20  ;;  %v1501_v51 = vmul.f32 0.5, %v1492_v21 }
 0xbde   : > { %v1494_v31 = vpop.f32.mrf.mxu1 }
 0xbdf   : > { %7468 = verf.f32 %v1507_v28 }
 0xbe4   : > { %v7459_v32 = vpop.eup %7458 }
 0xbe5   : > { %v7461_v33 = vpop.eup %7460  ;;  %v1515_v35 = vadd.f32 1.0, %v7459_v32 }
 0xbe6   : > { %v7463_v34 = vpop.eup %7462  ;;  %v1514_v38 = vadd.f32 1.0, %v7461_v33 }
 0xbe7   : > { %v1516_v36 = vadd.f32 1.0, %v7463_v34  ;;  %v1521_v48 = vmul.f32 %v1515_v35, %v1497_v40  ;;  %v7314_v40 = vld [vmem:[%s9471_s6 + $0x30] ss:$8 sps:$4 sm:$0xff]  }
 0xbe8   : > { %v7465_v37 = vpop.eup %7464  ;;  %v1520_v50 = vmul.f32 %v1514_v38, %v1496_v45  ;;  %v7313_v38 = vld [vmem:[%s9471_s6 + $0x44] ss:$8 sps:$4 sm:$0xff]  }
 0xbe9   : > { %v1517_v43 = vadd.f32 1.0, %v7465_v37  ;;  %v1522_v46 = vmul.f32 %v1516_v36, %v1498_v39  ;;  %v7310_v36 = vld [vmem:[%s9471_s6 + $0x54] ss:$8 sps:$4 sm:$0xff]   ;;  %v7308_v37 = vld [vmem:[%s9471_s6 + $0x50] ss:$8 sps:$4 sm:$0xff]  }
 0xbea   : > { %v7467_v47 = vpop.eup %7466  ;;  %1815 = vmatprep.subr.bf16.mxu1 %v7310_v36  ;;  %v7311_v39 = vld [vmem:[%s9471_s6 + $0x40] ss:$8 sps:$4 sm:$0xff]  }
 0xbeb   : > { %v1523_v49 = vmul.f32 %v1517_v43, %v1499_v41  ;;  %v1550_v24 = vpack.c.bf16 %v1522_v46, %v1520_v50  ;;  %v1518_v54 = vadd.f32 1.0, %v7467_v47  ;;  %1816 = vmatpush1.bf16.msra.mxu1 %v7308_v37  ;;  %v7316_v41 = vld [vmem:[%s9471_s6 + $0x34] ss:$8 sps:$4 sm:$0xff]  }
 0xbec   : > { %v7469_v29 = vpop.eup %7468  ;;  %1817 = vmatprep.subr.bf16.mxu1 %v7313_v38 }
 0xbed   : > { %v1551_v27 = vpack.c.bf16 %v1523_v49, %v1521_v48  ;;  %v1519_v52 = vadd.f32 1.0, %v7469_v29  ;;  %v1524_v13 = vmul.f32 %v1518_v54, %v1500_v22 }
 0xbef   : > { %v1525_v56 = vmul.f32 %v1519_v52, %v1501_v51  ;;  %6220 = vmatprep.mubr.msk.bf16.mxu0 %vm1626_vm6, %v1551_v27  ;;  %v1552_v57 = vpack.c.bf16 %v1524_v13, %v1524_v13  ;;  %1818 = vmatpush1.bf16.msra.mxu1 %v7311_v39 }
 0xbf0   : > { %1666 = vmatmul.mubr.bf16.vlgmr.msra.gmra.mxu0 %v1550_v24  ;;  %1819 = vmatprep.subr.bf16.mxu1 %v7316_v41  ;;  %v6223_v24 = vld [vmem:[%s9466_s1 + $0x19] ss:$0 sm:$0xff] }
 0xbf1   : > { %v1553_v11 = vpack.c.bf16 %v1525_v56, %v1525_v56 }
 0xbf3   : > { %6221 = vmatprep.mubr.msk.bf16.mxu0 %vm1626_vm6, %v1553_v11  ;;  %1820 = vmatpush1.bf16.msra.mxu1 %v7314_v40  ;;  %v6224_v11 = vld [vmem:[%s9466_s1 + $0x1d] ss:$0 sm:$0xff] }
 0xbf8   : > { %1674 = vmatmul.mubr.bf16.gmra.mxu0 %v1552_v57 }
 0xcb0   : > { %v1667_v58 = vpop.f32.mrf.mxu0 }
 0xcb1   : > { %v1681_v60 = vadd.f32 %v1667_v58, %v8089_v53 }
 0xcb2   : > { %v1669_v19 = vpop.f32.mrf.mxu0 }
 0xcb3   : > { %v8194_v61 = vadd.f32 %v6222_v59, %v1681_v60 }
 0xcb4   : > { %v1670_v62 = vpop.f32.mrf.mxu0 }
 0xcb5   : > { %v1682_v63 = vadd.f32 %v1670_v62, %v8096_v17  ;;  %v1694_v0 = vsel %vm468_vm0, %v8194_v61, 0.0 }
 0xcb6   : > { %1695 = vadd.xlane.f32.xlu0 %v1694_v0  ;;  %v1672_v1 = vpop.f32.mrf.mxu0 }
 0xcb7   : > { %v8199_v2 = vadd.f32 %v6222_v59, %v1682_v63  ;;  %v6231_v1 = vld [vmem:[%s9468_s3 + $0x1] ss:$4 sm:$0x3] }
 0xcb8   : > { %v1675_v3 = vpop.f32.mrf.mxu0 }
 0xcb9   : > { %v1683_v4 = vadd.f32 %v1675_v3, %v8091_v55  ;;  %v1697_v7 = vsel %vm468_vm0, %v8199_v2, 0.0 }
 0xcba   : > { %1698 = vadd.xlane.f32.xlu1 %v1697_v7  ;;  %v1677_v53 = vpop.f32.mrf.mxu0 }
 0xcbb   : > { %v8204_v8 = vadd.f32 %v6222_v59, %v1683_v4  ;;  %v1762_v4 = vrot.slane %v6231_v1, %v7921_v6  ;;  %v8246_v53 = vrot.slane %v6231_v1, %v7951_v30 }
 0xcbc   : > { %v1678_v9 = vpop.f32.mrf.mxu0 }
 0xcbd   : > { %v1700_v17 = vsel %vm468_vm0, %v8204_v8, 0.0 }
 0xcbe   : > { %1701 = vadd.xlane.f32.xlu0 %v1700_v17  ;;  %v1679_v10 = vpop.f32.mrf.mxu0 }
 0xd3f   : > { %v1696_v12 = vpop.xlane.xlu0 %1695 }
 0xd40   : > { %v1703_v14 = vmul.f32 0.020833334, %v1696_v12 }
 0xd42   : > { %v1706_v15 = vsub.f32 %v8194_v61, %v1703_v14 }
 0xd43   : > { %v1699_v16 = vpop.xlane.xlu1 %1698 }
 0xd44   : > { %v1704_v18 = vmul.f32 0.020833334, %v1699_v16  ;;  %v1709_v55 = vmul.f32 %v1706_v15, %v1706_v15 }
 0xd46   : > { %v1707_v20 = vsub.f32 %v8199_v2, %v1704_v18  ;;  %v1712_v21 = vsel %vm468_vm0, %v1709_v55, 0.0 }
 0xd47   : > { %1713 = vadd.xlane.f32.xlu1 %v1712_v21  ;;  %v1702_v23 = vpop.xlane.xlu0 %1701 }
 0xd48   : > { %v1705_v28 = vmul.f32 0.020833334, %v1702_v23  ;;  %v1710_v31 = vmul.f32 %v1707_v20, %v1707_v20 }
 0xd4a   : > { %v1708_v32 = vsub.f32 %v8204_v8, %v1705_v28  ;;  %v1715_v33 = vsel %vm468_vm0, %v1710_v31, 0.0 }
 0xd4b   : > { %1716 = vadd.xlane.f32.xlu0 %v1715_v33 }
 0xd4c   : > { %v1711_v34 = vmul.f32 %v1708_v32, %v1708_v32 }
 0xd4e   : > { %v1718_v35 = vsel %vm468_vm0, %v1711_v34, 0.0 }
 0xd4f   : > { %1719 = vadd.xlane.f32.xlu1 %v1718_v35 }
 0xdd0   : > { %v1714_v43 = vpop.xlane.xlu1 %1713 }
 0xdd1   : > { %v1721_v45 = vmul.f32 0.020833334, %v1714_v43 }
 0xdd3   : > { %v1724_v46 = vadd.f32 1e-06, %v1721_v45 }
 0xdd4   : > { %v1717_v47 = vpop.xlane.xlu0 %1716 }
 0xdd5   : > { %7470 = vrsqrt.f32 %v1724_v46  ;;  %v1722_v48 = vmul.f32 0.020833334, %v1717_v47 }
 0xdd7   : > { %v1725_v49 = vadd.f32 1e-06, %v1722_v48 }
 0xdd8   : > { %v1720_v29 = vpop.xlane.xlu1 %1719 }
 0xdd9   : > { %7472 = vrsqrt.f32 %v1725_v49  ;;  %v1723_v50 = vmul.f32 0.020833334, %v1720_v29 }
 0xddb   : > { %v1726_v27 = vadd.f32 1e-06, %v1723_v50 }
 0xddd   : > { %7474 = vrsqrt.f32 %v1726_v27 }
 0xde2   : > { %v7471_v51 = vpop.eup %7470 }
 0xde3   : > { %v1730_v52 = vmul.f32 %v7471_v51, %v1706_v15 }
 0xde5   : > { %v1737_v56 = vmul.f32 %v6223_v24, %v1730_v52 }
 0xde6   : > { %v7473_v54 = vpop.eup %7472 }
 0xde7   : > { %v1731_v22 = vmul.f32 %v7473_v54, %v1707_v20  ;;  %v1744_v58 = vadd.f32 %v6224_v11, %v1737_v56 }
 0xde9   : > { %v1738_v13 = vmul.f32 %v6223_v24, %v1731_v22 }
 0xdea   : > { %v7475_v57 = vpop.eup %7474 }
 0xdeb   : > { %v1745_v59 = vadd.f32 %v6224_v11, %v1738_v13  ;;  %v1732_v60 = vmul.f32 %v7475_v57, %v1708_v32 }
 0xded   : > { %v1754_v19 = vpack.c.bf16 %v1745_v59, %v1744_v58  ;;  %v1739_v62 = vmul.f32 %v6223_v24, %v1732_v60 }
 0xdef   : > { %6238 = vmatmul.mubr.msk.bf16.vlgmr.msra.gmra.mxu1 %vm468_vm0, %v1754_v19  ;;  %v1746_v63 = vadd.f32 %v6224_v11, %v1739_v62 }
 0xdf0   : > { %1847 = vmatprep.mubr.bf16.mxu1 %v7718_v42 }
 0xdf1   : > { %v1755_v0 = vpack.c.bf16 %v1746_v63, %v1746_v63 }
 0xdf7   : > { %6239 = vmatmul.mubr.msk.bf16.gmra.mxu1 %vm468_vm0, %v1755_v0 }
 0xeaf   : > { %v1839_v3 = vpop.f32.mrf.mxu1 }
 0xeb0   : > { %v1840_v17 = vadd.f32 %v1839_v3, %v1762_v4 }
 0xeb1   : > { %v1841_v7 = vpop.f32.mrf.mxu1 }
 0xeb2   : > { %v1842_v14 = vadd.f32 %v1841_v7, %v8246_v53 }
 0xeb3   : > { %v1843_v9 = vpop.f32.mrf.mxu1 }
 0xeb4   : > { %v1844_v10 = vadd.f32 %v1843_v9, %v1762_v4 }
 0xeb5   : > { %v1845_v12 = vpop.f32.mrf.mxu1 }
 0xeb6   : > { %v8249_v15 = vpack.c.bf16 %v1844_v10, %v1840_v17  ;;  %v1846_v16 = vadd.f32 %v1845_v12, %v8246_v53 }
 0xeb7   : > { %v1849_v18 = vpop.f32.mrf.mxu1 }
 0xeb8   : > { %v8252_v55 = vpack.c.bf16 %v1846_v16, %v1842_v14  ;;  %v1850_v20 = vadd.f32 %v1849_v18, %v1762_v4  ;;  %1862 = vrot.lane.b32.xlu1 %v8249_v15, %s9512_s27  ;;  %6819 = vmatprep.mubr.msk.bf16.mxu1 %vm707_vm1, %v8249_v15 }
 0xeb9   : > { %v8258_v21 = vpop.f32.mrf.mxu1 }
 0xeba   : > { %v8260_v23 = vpack.c.bf16 %v1850_v20, %v1850_v20 }
 0xebb   : > { %v1853_v28 = vpop.f32.mrf.mxu1 }
 0xebc   : > { %1864 = vrot.lane.b32.xlu0 %v8260_v23, %s9512_s27 }
 0xebd   : > { %v1854_v31 = vpop.f32.mrf.mxu1 }
 0xf2a   : > { %v1863_v34 = vpop.permute.xlu1 %1862 }
 0xf2b   : > { %v1873_v35 = vsel %vm707_vm1, %v1863_v34, 0 }
 0xf2e   : > { %v1865_v32 = vpop.permute.xlu0 %1864 }
 0xf2f   : > { %7173 = vmatprep.subr.msk.bf16.mxu1 %vm707_vm1, %v1865_v32  ;;  %v1876_v33 = vsel %vm707_vm1, %v1865_v32, 0 }
 0xf30   : > { %6816 = vmatpush3.bf16.xpose.msra.mxu1 %v1876_v33 }
 0xf31   : > { %7174 = vmatprep.subr.msk.bf16.mxu1 %vm707_vm1, %v1863_v34 }
 0xf38   : > { %6818 = vmatpush3.bf16.xpose.msra.mxu1 %v1873_v35 }
 0xf3f   : > { %6820 = vmatmul.mubr.msk.bf16.vlgmr.msra.gmra.mxu1 %vm707_vm1, %v8260_v23 }
 0xfff   : > { %v6821_v36 = vpop.f32.mrf.mxu1 }
0x1000   : > { %v1928_v46 = vsel %vm531_vm3, %v6821_v36, -1e+30 }
0x1001   : > { %v1912_v37 = vpop.f32.mrf.mxu1  ;;  %v1935_v47 = vsel %vm772_vm4, %v1928_v46, -inf }
0x1002   : > { %v1926_v38 = vsel %vm531_vm3, %v1912_v37, -1e+30 }
0x1003   : > { %v6822_v39 = vpop.f32.mrf.mxu1  ;;  %v1929_v40 = vsel %vm772_vm4, %v1926_v38, -inf }
0x1004   : > { %1930 = vmax.xlane.f32.xlu1 %v1929_v40 }
0x1005   : > { %v1915_v41 = vpop.f32.mrf.mxu1 }
0x1006   : > { %v1927_v43 = vsel %vm531_vm3, %v1915_v41, -1e+30 }
0x1007   : > { %v1932_v45 = vsel %vm772_vm4, %v1927_v43, -inf }
0x1008   : > { %1933 = vmax.xlane.f32.xlu0 %v1932_v45 }
0x100c   : > { %1936 = vmax.xlane.f32.xlu0 %v1935_v47 }
0x108d   : > { %v1931_v48 = vpop.xlane.xlu1 %1930 }
0x108e   : > { %v1938_v49 = vsub.f32 %v1926_v38, %v1931_v48 }
0x1090   : > { %v1941_v51 = vmul.f32 1.442695, %v1938_v49 }
0x1091   : > { %v1934_v29 = vpop.xlane.xlu0 %1933 }
0x1092   : > { %v1939_v50 = vsub.f32 %v1927_v43, %v1934_v29 }
0x1094   : > { %v1943_v27 = vmul.f32 1.442695, %v1939_v50 }
0x1095   : > { %v1937_v52 = vpop.xlane.xlu0 %1936 }
0x1096   : > { %7476 = vpow2.f32 %v1943_v27  ;;  %v1940_v24 = vsub.f32 %v1928_v46, %v1937_v52 }
0x1097   : > { %7478 = vpow2.f32 %v1941_v51 }
0x1098   : > { %v1945_v54 = vmul.f32 1.442695, %v1940_v24 }
0x109a   : > { %7480 = vpow2.f32 %v1945_v54 }
0x10a3   : > { %v7477_v56 = vpop.eup %7476 }
0x10a4   : > { %v1948_v22 = vmul.f32 %v7477_v56, %v7991_v26  ;;  %v7479_v11 = vpop.eup %7478 }
0x10a5   : > { %v1947_v60 = vmul.f32 %v7479_v11, %v7991_v26 }
0x10a6   : > { %v1953_v13 = vsel %vm772_vm4, %v1948_v22, 0.0 }
0x10a7   : > { %v7481_v57 = vpop.eup %7480  ;;  %1954 = vadd.xlane.f32.xlu0 %v1953_v13  ;;  %v1950_v19 = vsel %vm772_vm4, %v1947_v60, 0.0 }
0x10a8   : > { %v1949_v58 = vmul.f32 %v7481_v57, %v7991_v26 }
0x10aa   : > { %v1956_v59 = vsel %vm772_vm4, %v1949_v58, 0.0 }
0x10ab   : > { %1957 = vadd.xlane.f32.xlu1 %v1956_v59 }
0x10af   : > { %1951 = vadd.xlane.f32.xlu1 %v1950_v19 }
0x10bd   : > { %1969 = vrot.lane.b32.xlu0 %v8260_v23, %s9513_s17 }
0x10c0   : > { %1967 = vrot.lane.b32.xlu1 %v8249_v15, %s9513_s17 }
0x10c1   : > { %2029 = vrot.lane.b32.xlu0 %v8249_v15, %s9514_s16 }
0x10c4   : > { %2035 = vrot.lane.b32.xlu1 %v8260_v23, %s9515_s24 }
0x10c5   : > { %2031 = vrot.lane.b32.xlu0 %v8260_v23, %s9514_s16 }
0x10c8   : > { %2033 = vrot.lane.b32.xlu1 %v8249_v15, %s9515_s24 }
0x10c9   : > { %2200 = vrot.lane.b32.xlu0 %v8249_v15, %s9516_s23 }
0x10cc   : > { %2206 = vrot.lane.b32.xlu1 %v8260_v23, %s9517_s30 }
0x10d0   : > { %2204 = vrot.lane.b32.xlu1 %v8249_v15, %s9517_s30 }
0x10d4   : > { %2202 = vrot.lane.b32.xlu1 %v8260_v23, %s9516_s23 }
0x1130   : > { %v1955_v62 = vpop.xlane.xlu0 %1954 }
0x1134   : > { %v1958_v63 = vpop.xlane.xlu1 %1957  ;;  %v1970_v0 = vpop.permute.xlu0 %1969 }
0x1135   : > { %7175 = vmatprep.subr.msk.bf16.mxu1 %vm822_vm2, %v1970_v0  ;;  %v1979_v1 = vsel %vm822_vm2, %v1970_v0, 0  ;;  %7482 = vrcp.f32 %v1958_v63 }
0x1136   : > { %6824 = vmatpush3.bf16.msra.mxu1 %v1979_v1  ;;  %7484 = vrcp.f32 %v1955_v62 }
0x1138   : > { %v1952_v3 = vpop.xlane.xlu1 %1951  ;;  %v2030_v28 = vpop.permute.xlu0 %2029 }
0x1139   : > { %7486 = vrcp.f32 %v1952_v3 }
0x113c   : > { %v1968_v4 = vpop.permute.xlu1 %1967  ;;  %v2032_v35 = vpop.permute.xlu0 %2031 }
0x113d   : > { %6825 = vmatprep.subr.bf16.mxu1 %v1968_v4 }
0x113e   : > { %6826 = vmatpush3.bf16.msra.mxu1 %v1968_v4 }
0x1140   : > { %v2036_v7 = vpop.permute.xlu1 %2035  ;;  %v2201_v36 = vpop.permute.xlu0 %2200 }
0x1141   : > { %7176 = vmatprep.subr.msk.bf16.mxu1 %vm707_vm1, %v2036_v7  ;;  %v2047_v31 = vsel %vm707_vm1, %v2036_v7, 0 }
0x1142   : > { %v7483_v9 = vpop.eup %7482 }
0x1143   : > { %v7485_v17 = vpop.eup %7484  ;;  %v1964_v12 = vmul.f32 %v7483_v9, %v1949_v58 }
0x1144   : > { %v1963_v16 = vmul.f32 %v7485_v17, %v1948_v22  ;;  %v2034_v32 = vpop.permute.xlu1 %2033 }
0x1145   : > { %v1966_v20 = vpack.c.bf16 %v1964_v12, %v1964_v12  ;;  %v2044_v33 = vsel %vm707_vm1, %v2034_v32, 0 }
0x1146   : > { %v7487_v10 = vpop.eup %7486 }
0x1147   : > { %v1962_v14 = vmul.f32 %v7487_v10, %v1947_v60 }
0x1148   : > { %v2207_v34 = vpop.permute.xlu1 %2206 }
0x1149   : > { %v1965_v18 = vpack.c.bf16 %v1963_v16, %v1962_v14  ;;  %v2218_v37 = vsel %vm707_vm1, %v2207_v34, 0 }
0x114b   : > { %6827 = vmatprep.mubr.msk.bf16.mxu1 %vm772_vm4, %v1965_v18 }
0x114c   : > { %6828 = vmatmul.mubr.msk.bf16.vlgmr.msra.gmra.mxu1 %vm772_vm4, %v1966_v20  ;;  %v2205_v38 = vpop.permute.xlu1 %2204 }
0x114d   : > { %6832 = vmatpush3.bf16.xpose.msra.mxu1 %v2047_v31  ;;  %6835 = vmatprep.mubr.msk.bf16.mxu1 %vm707_vm1, %v2030_v28  ;;  %v2215_v39 = vsel %vm707_vm1, %v2205_v38, 0 }
0x114e   : > { %7177 = vmatprep.subr.msk.bf16.mxu1 %vm707_vm1, %v2034_v32 }
0x1150   : > { %v2203_v40 = vpop.permute.xlu1 %2202 }
0x1155   : > { %6834 = vmatpush3.bf16.xpose.msra.mxu1 %v2044_v33 }
0x1156   : > { %7179 = vmatprep.subr.msk.bf16.mxu1 %vm707_vm1, %v2207_v34 }
0x115c   : > { %6836 = vmatmul.mubr.msk.bf16.vlgmr.msra.gmra.mxu1 %vm707_vm1, %v2032_v35 }
0x115d   : > { %6848 = vmatpush3.bf16.xpose.msra.mxu1 %v2218_v37  ;;  %6851 = vmatprep.mubr.msk.bf16.mxu1 %vm707_vm1, %v2201_v36 }
0x115e   : > { %7180 = vmatprep.subr.msk.bf16.mxu1 %vm707_vm1, %v2205_v38 }
0x1165   : > { %6850 = vmatpush3.bf16.xpose.msra.mxu1 %v2215_v39 }
0x116c   : > { %6852 = vmatmul.mubr.msk.bf16.vlgmr.msra.gmra.mxu1 %vm707_vm1, %v2203_v40 }
0x116d   : > { %2633 = vmatprep.mubr.bf16.mxu1 %v7718_v42 }
0x120c   : > { %v8322_v41 = vpop.f32.mrf.mxu1 }
0x120e   : > { %v8324_v43 = vpop.f32.mrf.mxu1 }
0x1210   : > { %v6830_v45 = vpop.f32.mrf.mxu1 }
0x1212   : > { %v8326_v46 = vpop.f32.mrf.mxu1 }
0x121c   : > { %v6837_v47 = vpop.f32.mrf.mxu1 }
0x121d   : > { %v2099_v27 = vsel %vm531_vm3, %v6837_v47, -1e+30 }
0x121e   : > { %v2083_v48 = vpop.f32.mrf.mxu1  ;;  %v2106_v24 = vsel %vm772_vm4, %v2099_v27, -inf }
0x121f   : > { %v2097_v49 = vsel %vm531_vm3, %v2083_v48, -1e+30 }
0x1220   : > { %v6838_v29 = vpop.f32.mrf.mxu1  ;;  %v2100_v50 = vsel %vm772_vm4, %v2097_v49, -inf }
0x1221   : > { %2101 = vmax.xlane.f32.xlu0 %v2100_v50 }
0x1222   : > { %v2086_v51 = vpop.f32.mrf.mxu1 }
0x1223   : > { %v2098_v52 = vsel %vm531_vm3, %v2086_v51, -1e+30 }
0x1224   : > { %v2103_v54 = vsel %vm772_vm4, %v2098_v52, -inf }
0x1225   : > { %2107 = vmax.xlane.f32.xlu0 %v2106_v24  ;;  %2104 = vmax.xlane.f32.xlu1 %v2103_v54 }
0x122c   : > { %v6853_v56 = vpop.f32.mrf.mxu1 }
0x122d   : > { %v2270_v22 = vsel %vm531_vm3, %v6853_v56, -1e+30 }
0x122e   : > { %v2254_v11 = vpop.f32.mrf.mxu1  ;;  %v2277_v13 = vsel %vm772_vm4, %v2270_v22, -inf }
0x122f   : > { %v2268_v57 = vsel %vm531_vm3, %v2254_v11, -1e+30  ;;  %2278 = vmax.xlane.f32.xlu1 %v2277_v13 }
0x1230   : > { %v6854_v58 = vpop.f32.mrf.mxu1  ;;  %v2271_v59 = vsel %vm772_vm4, %v2268_v57, -inf }
0x1231   : > { %2272 = vmax.xlane.f32.xlu0 %v2271_v59 }
0x1232   : > { %v2257_v60 = vpop.f32.mrf.mxu1 }
0x1233   : > { %v2269_v19 = vsel %vm531_vm3, %v2257_v60, -1e+30 }
0x1234   : > { %v2274_v62 = vsel %vm772_vm4, %v2269_v19, -inf }
0x1235   : > { %2275 = vmax.xlane.f32.xlu0 %v2274_v62 }
0x12aa   : > { %v2102_v63 = vpop.xlane.xlu0 %2101 }
0x12ab   : > { %v2109_v0 = vsub.f32 %v2097_v49, %v2102_v63 }
0x12ad   : > { %v2112_v1 = vmul.f32 1.442695, %v2109_v0 }
0x12ae   : > { %v2105_v3 = vpop.xlane.xlu1 %2104  ;;  %v2108_v4 = vpop.xlane.xlu0 %2107 }
0x12af   : > { %v2110_v7 = vsub.f32 %v2098_v52, %v2105_v3  ;;  %v2111_v9 = vsub.f32 %v2099_v27, %v2108_v4  ;;  %7488 = vpow2.f32 %v2112_v1 }
0x12b1   : > { %v2114_v17 = vmul.f32 1.442695, %v2110_v7  ;;  %v2116_v10 = vmul.f32 1.442695, %v2111_v9 }
0x12b3   : > { %7490 = vpow2.f32 %v2114_v17 }
0x12b4   : > { %7492 = vpow2.f32 %v2116_v10 }
0x12b8   : > { %v2279_v12 = vpop.xlane.xlu1 %2278 }
0x12b9   : > { %v2282_v14 = vsub.f32 %v2270_v22, %v2279_v12 }
0x12ba   : > { %v2273_v16 = vpop.xlane.xlu0 %2272 }
0x12bb   : > { %v2287_v18 = vmul.f32 1.442695, %v2282_v14  ;;  %v2280_v20 = vsub.f32 %v2268_v57, %v2273_v16 }
0x12bc   : > { %v7489_v32 = vpop.eup %7488 }
0x12bd   : > { %7494 = vpow2.f32 %v2287_v18  ;;  %v2283_v28 = vmul.f32 1.442695, %v2280_v20  ;;  %v2118_v45 = vmul.f32 %v7489_v32, %v7991_v26  ;;  %v7318_v32 = vld [vmem:[%s9470_s5 + $0x38] sm:$0xff]  }
0x12be   : > { %v2276_v31 = vpop.xlane.xlu0 %2275 }
0x12bf   : > { %7496 = vpow2.f32 %v2283_v28  ;;  %v2281_v33 = vsub.f32 %v2269_v19, %v2276_v31  ;;  %v2121_v47 = vsel %vm772_vm4, %v2118_v45, 0.0  ;;  %v7317_v28 = vld [vmem:[%s9470_s5 + $0x40] sm:$0xff]  }
0x12c0   : > { %v7491_v34 = vpop.eup %7490 }
0x12c1   : > { %v7493_v35 = vpop.eup %7492  ;;  %v2285_v36 = vmul.f32 1.442695, %v2281_v33  ;;  %v2119_v37 = vmul.f32 %v7491_v34, %v7991_v26  ;;  %v7319_v34 = vld [vmem:[%s9470_s5 + $0x30] sm:$0xff]  }
0x12c2   : > { %v2120_v38 = vmul.f32 %v7493_v35, %v7991_v26 }
0x12c3   : > { %7498 = vpow2.f32 %v2285_v36  ;;  %v2124_v39 = vsel %vm772_vm4, %v2119_v37, 0.0 }
0x12c4   : > { %2125 = vadd.xlane.f32.xlu1 %v2124_v39  ;;  %v2127_v40 = vsel %vm772_vm4, %v2120_v38, 0.0 }
0x12c5   : > { %2128 = vadd.xlane.f32.xlu0 %v2127_v40 }
0x12c9   : > { %2122 = vadd.xlane.f32.xlu0 %v2121_v47 }
0x12ca   : > { %v7495_v48 = vpop.eup %7494 }
0x12cb   : > { %v2291_v49 = vmul.f32 %v7495_v48, %v7991_v26 }
0x12cc   : > { %v7497_v29 = vpop.eup %7496 }
0x12cd   : > { %v2298_v50 = vsel %vm772_vm4, %v2291_v49, 0.0  ;;  %v2289_v27 = vmul.f32 %v7497_v29, %v7991_v26 }
0x12ce   : > { %2299 = vadd.xlane.f32.xlu1 %v2298_v50 }
0x12cf   : > { %v2292_v52 = vsel %vm772_vm4, %v2289_v27, 0.0 }
0x12d0   : > { %v7499_v51 = vpop.eup %7498 }
0x12d1   : > { %v2290_v24 = vmul.f32 %v7499_v51, %v7991_v26 }
0x12d2   : > { %2293 = vadd.xlane.f32.xlu1 %v2292_v52 }
0x12d3   : > { %v2295_v54 = vsel %vm772_vm4, %v2290_v24, 0.0 }
0x12d4   : > { %2296 = vadd.xlane.f32.xlu0 %v2295_v54 }
0x12e3   : > { %2138 = vrot.lane.b32.xlu1 %v8249_v15, %s9518_s15 }
0x12ea   : > { %2140 = vrot.lane.b32.xlu0 %v8260_v23, %s9518_s15  ;;  %v1852_v23 = vadd.f32 %v8258_v21, %v8246_v53 }
0x12ec   : > { %v1859_v7 = vpack.c.bf16 %v1852_v23, %v1852_v23 }
0x12ee   : > { %v2316_v53 = vsel %vm822_vm2, %v1859_v7, 0 }
0x134d   : > { %v2126_v56 = vpop.xlane.xlu1 %2125 }
0x134e   : > { %v2129_v22 = vpop.xlane.xlu0 %2128  ;;  %7500 = vrcp.f32 %v2126_v56 }
0x1352   : > { %v2123_v11 = vpop.xlane.xlu0 %2122 }
0x1353   : > { %7502 = vrcp.f32 %v2123_v11 }
0x1354   : > { %7504 = vrcp.f32 %v2129_v22 }
0x1357   : > { %v2300_v13 = vpop.xlane.xlu1 %2299 }
0x1358   : > { %7506 = vrcp.f32 %v2300_v13 }
0x135b   : > { %v2294_v57 = vpop.xlane.xlu1 %2293  ;;  %v7501_v59 = vpop.eup %7500 }
0x135c   : > { %7508 = vrcp.f32 %v2294_v57  ;;  %v2134_v63 = vmul.f32 %v7501_v59, %v2119_v37 }
0x135d   : > { %v2297_v58 = vpop.xlane.xlu0 %2296 }
0x135e   : > { %7510 = vrcp.f32 %v2297_v58 }
0x135f   : > { %v2139_v1 = vpop.permute.xlu1 %2138 }
0x1360   : > { %v7503_v60 = vpop.eup %7502 }
0x1361   : > { %v7505_v19 = vpop.eup %7504  ;;  %v2141_v62 = vpop.permute.xlu0 %2140  ;;  %v2133_v15 = vmul.f32 %v7503_v60, %v2118_v45 }
0x1362   : > { %7178 = vmatprep.subr.msk.bf16.mxu0 %vm822_vm2, %v2141_v62  ;;  %v2150_v0 = vsel %vm822_vm2, %v2141_v62, 0  ;;  %v2135_v4 = vmul.f32 %v7505_v19, %v2120_v38 }
0x1363   : > { %6840 = vmatpush3.bf16.msra.mxu0 %v2150_v0  ;;  %v2136_v3 = vpack.c.bf16 %v2134_v63, %v2133_v15 }
0x1364   : > { %6841 = vmatprep.subr.bf16.mxu0 %v2139_v1  ;;  %v2137_v17 = vpack.c.bf16 %v2135_v4, %v2135_v4 }
0x1365   : > { %6843 = vmatprep.mubr.msk.bf16.mxu0 %vm772_vm4, %v2136_v3  ;;  %v7507_v9 = vpop.eup %7506 }
0x1366   : > { %v2306_v16 = vmul.f32 %v7507_v9, %v2291_v49 }
0x1367   : > { %6842 = vmatpush3.bf16.msra.mxu0 %v2139_v1 }
0x1368   : > { %7181 = vmatprep.subr.msk.bf16.mxu0 %vm822_vm2, %v1859_v7  ;;  %v2308_v20 = vpack.c.bf16 %v2306_v16, %v2306_v16 }
0x1369   : > { %v7509_v10 = vpop.eup %7508 }
0x136a   : > { %6844 = vmatmul.mubr.msk.bf16.vlgmr.msra.gmra.mxu0 %vm772_vm4, %v2137_v17  ;;  %v2304_v12 = vmul.f32 %v7509_v10, %v2289_v27 }
0x136b   : > { %v7511_v21 = vpop.eup %7510  ;;  %6856 = vmatpush3.bf16.msra.mxu0 %v2316_v53 }
0x136c   : > { %6857 = vmatprep.subr.bf16.mxu0 %v8252_v55  ;;  %v2305_v14 = vmul.f32 %v7511_v21, %v2290_v24 }
0x136e   : > { %v2307_v18 = vpack.c.bf16 %v2305_v14, %v2304_v12 }
0x136f   : > { %6858 = vmatpush3.bf16.msra.mxu0 %v8252_v55 }
0x1370   : > { %6859 = vmatprep.mubr.msk.bf16.mxu0 %vm772_vm4, %v2307_v18  ;;  %6863 = vmatprep.subr.bf16.mxu0 %v7317_v28 }
0x1372   : > { %6860 = vmatmul.mubr.msk.bf16.vlgmr.msra.gmra.mxu0 %vm772_vm4, %v2308_v20 }
0x1373   : > { %6864 = vmatpush3.bf16.msra.mxu0 %v7317_v28 }
0x1374   : > { %6865 = vmatprep.subr.bf16.mxu0 %v7318_v32 }
0x1377   : > { %6866 = vmatpush3.bf16.msra.mxu0 %v7318_v32  ;;  %v7320_v32 = vld [vmem:[%s9472_s7 + $0x50] ss:$8 sps:$4 sm:$0xff]  }
0x1378   : > { %6867 = vmatprep.subr.bf16.mxu0 %v7319_v34 }
0x137b   : > { %6868 = vmatpush3.bf16.msra.mxu0 %v7319_v34  ;;  %v7328_v34 = vld [vmem:[%s9472_s7 + $0x34] ss:$8 sps:$4 sm:$0xff]  }
0x137c   : > { %2789 = vmatprep.subr.bf16.mxu0 %v7718_v42 }
0x142a   : > { %v6845_v31 = vpop.f32.mrf.mxu0 }
0x142b   : > { %2373 = vrot.lane.b32.xlu1 %v6845_v31, %s9518_s15  ;;  %v7322_v31 = vld [vmem:[%s9472_s7 + $0x54] ss:$8 sps:$4 sm:$0xff]  }
0x142c   : > { %v2186_v33 = vpop.f32.mrf.mxu0  ;;  %2611 = vmatprep.subr.bf16.mxu1 %v7322_v31 }
0x142d   : > { %2612 = vmatpush1.bf16.msra.mxu1 %v7320_v32 }
0x142e   : > { %v6846_v55 = vpop.f32.mrf.mxu0 }
0x142f   : > { %v7323_v55 = vld [vmem:[%s9472_s7 + $0x40] ss:$8 sps:$4 sm:$0xff]  }
0x1430   : > { %v2189_v35 = vpop.f32.mrf.mxu0 }
0x1431   : > { %v7242_v36 = vpack.i.bf16 %v2189_v35, %v2186_v33  ;;  %v7325_v33 = vld [vmem:[%s9472_s7 + $0x44] ss:$8 sps:$4 sm:$0xff]   ;;  %v7326_v35 = vld [vmem:[%s9472_s7 + $0x30] ss:$8 sps:$4 sm:$0xff]  }
0x1432   : > { %v6861_v37 = vpop.f32.mrf.mxu0  ;;  %2613 = vmatprep.subr.bf16.mxu1 %v7325_v33 }
0x1433   : > { %7243 = vrot.lane.b32.xlu1 %v7242_v36, %s9518_s15  ;;  %2614 = vmatpush1.bf16.msra.mxu1 %v7323_v55  ;;  %v7329_v36 = vld [vmem:[%s9473_s8 + $0x98] sm:$0xff]  }
0x1434   : > { %v2352_v38 = vpop.f32.mrf.mxu0  ;;  %2615 = vmatprep.subr.bf16.mxu1 %v7328_v34 }
0x1436   : > { %v6862_v39 = vpop.f32.mrf.mxu0 }
0x1437   : > { %2385 = vrot.lane.b32.xlu1 %v6861_v37, %s9513_s17  ;;  %2616 = vmatpush1.bf16.msra.mxu1 %v7326_v35  ;;  %v7330_v37 = vld [vmem:[%s9473_s8 + $0x90] sm:$0xff]   ;;  %v7332_v39 = vld [vmem:[%s9473_s8 + $0x80] sm:$0xff]  }
0x1438   : > { %v2355_v40 = vpop.f32.mrf.mxu0  ;;  %6873 = vmatprep.subr.mxu1 %v7724_v25 }
0x1439   : > { %v7247_v45 = vpack.i.bf16 %v2355_v40, %v2352_v38  ;;  %v7331_v38 = vld [vmem:[%s9473_s8 + $0x88] sm:$0xff]  }
0x143b   : > { %7248 = vrot.lane.b32.xlu0 %v7247_v45, %s9513_s17 }
0x149d   : > { %v2374_v47 = vpop.permute.xlu1 %2373 }
0x149e   : > { %v2392_v51 = vsel %vm707_vm1, %v8322_v41, %v2374_v47 }
0x14a5   : > { %v7244_v48 = vpop.permute.xlu1 %7243 }
0x14a6   : > { %v7246_v49 = vunpack.i.h.bf16 %v7244_v48  ;;  %v7245_v29 = vunpack.i.l.bf16 %v7244_v48 }
0x14a8   : > { %v2391_v54 = vsel %vm707_vm1, %v8326_v46, %v7246_v49  ;;  %v2390_v56 = vsel %vm707_vm1, %v8324_v43, %v7245_v29  ;;  %v6263_v43 = vld [vmem:[%s9466_s1 + $0x29] ss:$0 sm:$0xff] }
0x14a9   : > { %v2386_v50 = vpop.permute.xlu1 %2385 }
0x14aa   : > { %v2395_v22 = vsel %vm1238_vm5, %v2392_v51, %v2386_v50 }
0x14ab   : > { %v2404_v58 = vpack.c.bf16 %v2395_v22, %v2395_v22 }
0x14ad   : > { %v7249_v27 = vpop.permute.xlu0 %7248 }
0x14ae   : > { %v7251_v52 = vunpack.i.h.bf16 %v7249_v27  ;;  %v7250_v24 = vunpack.i.l.bf16 %v7249_v27 }
0x14b0   : > { %v2394_v11 = vsel %vm1238_vm5, %v2391_v54, %v7251_v52  ;;  %v2393_v13 = vsel %vm1238_vm5, %v2390_v56, %v7250_v24  ;;  %v6264_v54 = vld [vmem:[%s9466_s1 + $0x21] ss:$0 sm:$0xff] }
0x14b1   : > { %v2403_v57 = vpack.c.bf16 %v2394_v11, %v2393_v13 }
0x14b3   : > { %6869 = vmatprep.mubr.msk.bf16.mxu0 %vm468_vm0, %v2403_v57  ;;  %v6265_v57 = vld [vmem:[%s9466_s1 + $0x25] ss:$0 sm:$0xff] }
0x14b4   : > { %6870 = vmatmul.mubr.msk.bf16.vlgmr.msra.gmra.mxu0 %vm468_vm0, %v2404_v58 }
0x14b5   : > { %2790 = vmatpush1.bf16.msra.mxu0 %v7329_v36 }
0x14b6   : > { %2791 = vmatprep.subr.bf16.mxu0 %v7718_v42 }
0x14b9   : > { %2792 = vmatpush1.bf16.msra.mxu0 %v7330_v37 }
0x14ba   : > { %2793 = vmatprep.subr.bf16.mxu0 %v7718_v42 }
0x14bd   : > { %2794 = vmatpush1.bf16.msra.mxu0 %v7331_v38 }
0x14be   : > { %2795 = vmatprep.subr.bf16.mxu0 %v7718_v42 }
0x14c1   : > { %2796 = vmatpush1.bf16.msra.mxu0 %v7332_v39 }
0x14c2   : > { %2797 = vmatprep.subr.bf16.mxu0 %v7718_v42 }
0x1574   : > { %v6871_v41 = vpop.f32.mrf.mxu0 }
0x1575   : > { %v2479_v60 = vadd.f32 %v6871_v41, %v8204_v8 }
0x1576   : > { %v2463_v59 = vpop.f32.mrf.mxu0 }
0x1577   : > { %v2477_v46 = vadd.f32 %v2463_v59, %v8194_v61  ;;  %v8406_v63 = vadd.f32 %v6263_v43, %v2479_v60 }
0x1578   : > { %v6872_v19 = vpop.f32.mrf.mxu0 }
0x1579   : > { %v8404_v62 = vadd.f32 %v6263_v43, %v2477_v46  ;;  %v2496_v61 = vsel %vm468_vm0, %v8406_v63, 0.0 }
0x157a   : > { %v2466_v15 = vpop.f32.mrf.mxu0 }
0x157b   : > { %v2478_v23 = vadd.f32 %v2466_v15, %v8199_v2  ;;  %v2490_v0 = vsel %vm468_vm0, %v8404_v62, 0.0 }
0x157c   : > { %2491 = vadd.xlane.f32.xlu0 %v2490_v0  ;;  %v7334_v0 = vld [vmem:[%s9473_s8 + $0x70] sm:$0xff]  }
0x157d   : > { %v8411_v1 = vadd.f32 %v6263_v43, %v2478_v23  ;;  %v7333_v23 = vld [vmem:[%s9473_s8 + $0x78] sm:$0xff]  }
0x157e   : > { %2798 = vmatpush1.bf16.msra.mxu0 %v7333_v23 }
0x157f   : > { %v2493_v8 = vsel %vm468_vm0, %v8411_v1, 0.0  ;;  %2799 = vmatprep.subr.bf16.mxu0 %v7718_v42 }
0x1580   : > { %2497 = vadd.xlane.f32.xlu0 %v2496_v61  ;;  %2494 = vadd.xlane.f32.xlu1 %v2493_v8  ;;  %v7335_v61 = vld [vmem:[%s9473_s8 + $0x68] sm:$0xff]   ;;  %v7336_v8 = vld [vmem:[%s9473_s8 + $0x60] sm:$0xff]  }
0x1582   : > { %2800 = vmatpush1.bf16.msra.mxu0 %v7334_v0 }
0x1583   : > { %2801 = vmatprep.subr.bf16.mxu0 %v7718_v42 }
0x1586   : > { %2802 = vmatpush1.bf16.msra.mxu0 %v7335_v61 }
0x1587   : > { %2803 = vmatprep.subr.bf16.mxu0 %v7718_v42 }
0x158a   : > { %2804 = vmatpush1.bf16.msra.mxu0 %v7336_v8 }
0x158b   : > { %2813 = vmatprep.subr.bf16.mxu0 %v7718_v42 }
0x1605   : > { %v2492_v3 = vpop.xlane.xlu0 %2491 }
0x1606   : > { %v2499_v4 = vmul.f32 0.020833334, %v2492_v3  ;;  %v7337_v3 = vld [vmem:[%s9473_s8 + $0xb8] sm:$0xff]  }
0x1607   : > { %2814 = vmatpush2.bf16.msra.mxu0 %v7337_v3 }
0x1608   : > { %v2502_v7 = vsub.f32 %v8404_v62, %v2499_v4  ;;  %2815 = vmatprep.subr.bf16.mxu0 %v7718_v42  ;;  %v7338_v4 = vld [vmem:[%s9473_s8 + $0xb0] sm:$0xff]  }
0x1609   : > { %v2498_v9 = vpop.xlane.xlu0 %2497  ;;  %v2495_v2 = vpop.xlane.xlu1 %2494 }
0x160a   : > { %v2501_v17 = vmul.f32 0.020833334, %v2498_v9  ;;  %v2500_v10 = vmul.f32 0.020833334, %v2495_v2  ;;  %v2505_v53 = vmul.f32 %v2502_v7, %v2502_v7  ;;  %v7340_v9 = vld [vmem:[%s9473_s8 + $0xa0] sm:$0xff]  }
0x160b   : > { %2816 = vmatpush2.bf16.msra.mxu0 %v7338_v4  ;;  %v6272_v2 = vld [vmem:[%s9469_s4 + $0x1] ss:$4 sm:$0x3] }
0x160c   : > { %v2504_v21 = vsub.f32 %v8406_v63, %v2501_v17  ;;  %v2503_v12 = vsub.f32 %v8411_v1, %v2500_v10  ;;  %v2508_v14 = vsel %vm468_vm0, %v2505_v53, 0.0  ;;  %2817 = vmatprep.subr.bf16.mxu0 %v7718_v42  ;;  %v2558_v17 = vrot.slane %v6272_v2, %v7921_v6 }
0x160d   : > { %2509 = vadd.xlane.f32.xlu0 %v2508_v14  ;;  %v2562_v10 = vrot.slane %v6272_v2, %v7951_v30 }
0x160e   : > { %v2507_v16 = vmul.f32 %v2504_v21, %v2504_v21  ;;  %v2506_v18 = vmul.f32 %v2503_v12, %v2503_v12 }
0x1610   : > { %v2514_v20 = vsel %vm468_vm0, %v2507_v16, 0.0  ;;  %v2511_v28 = vsel %vm468_vm0, %v2506_v18, 0.0 }
0x1611   : > { %2515 = vadd.xlane.f32.xlu1 %v2514_v20  ;;  %2512 = vadd.xlane.f32.xlu0 %v2511_v28 }
0x1696   : > { %v2510_v40 = vpop.xlane.xlu0 %2509 }
0x1697   : > { %v2517_v45 = vmul.f32 0.020833334, %v2510_v40 }
0x1699   : > { %v2520_v47 = vadd.f32 1e-06, %v2517_v45 }
0x169a   : > { %v2513_v48 = vpop.xlane.xlu0 %2512  ;;  %v2516_v49 = vpop.xlane.xlu1 %2515 }
0x169b   : > { %7512 = vrsqrt.f32 %v2520_v47  ;;  %v2518_v29 = vmul.f32 0.020833334, %v2513_v48  ;;  %v2519_v50 = vmul.f32 0.020833334, %v2516_v49 }
0x169d   : > { %v2521_v27 = vadd.f32 1e-06, %v2518_v29  ;;  %v2522_v51 = vadd.f32 1e-06, %v2519_v50 }
0x169f   : > { %7514 = vrsqrt.f32 %v2521_v27 }
0x16a0   : > { %7516 = vrsqrt.f32 %v2522_v51 }
0x16a8   : > { %v7513_v52 = vpop.eup %7512 }
0x16a9   : > { %v2526_v24 = vmul.f32 %v7513_v52, %v2502_v7  ;;  %v7339_v7 = vld [vmem:[%s9473_s8 + $0xa8] sm:$0xff]  }
0x16aa   : > { %2818 = vmatpush2.bf16.msra.mxu0 %v7339_v7 }
0x16ab   : > { %v2533_v13 = vmul.f32 %v6264_v54, %v2526_v24  ;;  %2819 = vmatprep.subr.bf16.mxu0 %v7718_v42 }
0x16ac   : > { %v7515_v56 = vpop.eup %7514 }
0x16ad   : > { %v7517_v22 = vpop.eup %7516  ;;  %v2527_v11 = vmul.f32 %v7515_v56, %v2503_v12  ;;  %v2540_v59 = vadd.f32 %v6265_v57, %v2533_v13 }
0x16ae   : > { %v2528_v41 = vmul.f32 %v7517_v22, %v2504_v21  ;;  %2820 = vmatpush2.bf16.msra.mxu0 %v7340_v9 }
0x16af   : > { %v2534_v58 = vmul.f32 %v6264_v54, %v2527_v11  ;;  %6945 = vmatprep.subr.mxu0 %v7724_v25 }
0x16b0   : > { %v2535_v43 = vmul.f32 %v6264_v54, %v2528_v41 }
0x16b1   : > { %v2541_v60 = vadd.f32 %v6265_v57, %v2534_v58 }
0x16b2   : > { %v2542_v19 = vadd.f32 %v6265_v57, %v2535_v43 }
0x16b3   : > { %v2550_v46 = vpack.c.bf16 %v2541_v60, %v2540_v59 }
0x16b4   : > { %v2551_v15 = vpack.c.bf16 %v2542_v19, %v2542_v19 }
0x16b5   : > { %6279 = vmatmul.mubr.msk.bf16.vlgmr.msra.gmra.mxu1 %vm468_vm0, %v2550_v46 }
0x16b6   : > { %2643 = vmatprep.mubr.bf16.mxu1 %v7718_v42 }
0x16bd   : > { %6280 = vmatmul.mubr.msk.bf16.gmra.mxu1 %vm468_vm0, %v2551_v15 }
0x16be   : > { %6879 = vmatprep.mubr.msk.f32.mxu1 %vm7727_vm7, %v7724_v25 }
0x1775   : > { %v2635_v53 = vpop.f32.mrf.mxu1 }
0x1776   : > { %v2636_v21 = vadd.f32 %v2635_v53, %v2558_v17 }
0x1777   : > { %v2637_v12 = vpop.f32.mrf.mxu1 }
0x1778   : > { %v2638_v14 = vadd.f32 %v2637_v12, %v2562_v10  ;;  %v2658_v16 = vmul.f32 0.70710677, %v2636_v21  ;;  %v2652_v22 = vmul.f32 0.5, %v2636_v21  ;;  %v6319_v21 = vld [vmem:[%s9466_s1 + $0x2d] ss:$0 sm:$0xff] }
0x1779   : > { %v2639_v18 = vpop.f32.mrf.mxu1 }
0x177a   : > { %v2659_v20 = vmul.f32 0.70710677, %v2638_v14  ;;  %v2640_v28 = vadd.f32 %v2639_v18, %v2558_v17  ;;  %v2653_v24 = vmul.f32 0.5, %v2638_v14 }
0x177b   : > { %v2641_v31 = vpop.f32.mrf.mxu1 }
0x177c   : > { %7518 = verf.f32 %v2659_v20  ;;  %v2660_v32 = vmul.f32 0.70710677, %v2640_v28  ;;  %v2642_v33 = vadd.f32 %v2641_v31, %v2562_v10  ;;  %v2654_v52 = vmul.f32 0.5, %v2640_v28  ;;  %v2950_v31 = vld [vmem:[%s9474_s9 + $0x20] sm:$0xff] }
0x177d   : > { %7520 = verf.f32 %v2658_v16  ;;  %v2645_v55 = vpop.f32.mrf.mxu1 }
0x177e   : > { %7522 = verf.f32 %v2660_v32  ;;  %v2661_v34 = vmul.f32 0.70710677, %v2642_v33  ;;  %v2646_v35 = vadd.f32 %v2645_v55, %v2558_v17  ;;  %v2655_v54 = vmul.f32 0.5, %v2642_v33  ;;  %v8546_v32 = vld [vmem:[%s9467_s2 + $0x8] sm:$0xff]  ;;  %v2949_v33 = vld [vmem:[%s9474_s9 + $0x18] sm:$0xff]  ;;  %v2948_v55 = vld [vmem:[%s9474_s9 + $0x10] sm:$0xff] }
0x177f   : > { %v2647_v36 = vpop.f32.mrf.mxu1 }
0x1780   : > { %7524 = verf.f32 %v2661_v34  ;;  %v2662_v37 = vmul.f32 0.70710677, %v2646_v35  ;;  %v2648_v38 = vadd.f32 %v2647_v36, %v2562_v10  ;;  %v2656_v0 = vmul.f32 0.5, %v2646_v35  ;;  %v8563_v34 = vld [vmem:[%s9467_s2 + $0x10] sm:$0xff]  ;;  %v2947_v35 = vld [vmem:[%s9474_s9 + $0x8] sm:$0xff]  ;;  %v2946_v36 = vld [vmem:[%s9474_s9] sm:$0xff] }
0x1781   : > { %v2649_v39 = vpop.f32.mrf.mxu1 }
0x1782   : > { %v2663_v40 = vmul.f32 0.70710677, %v2648_v38  ;;  %7526 = verf.f32 %v2662_v37  ;;  %v2657_v46 = vmul.f32 0.5, %v2648_v38 }
0x1783   : > { %v2650_v45 = vpop.f32.mrf.mxu1 }
0x1784   : > { %7528 = verf.f32 %v2663_v40 }
0x1789   : > { %v7519_v47 = vpop.eup %7518 }
0x178a   : > { %v7521_v48 = vpop.eup %7520  ;;  %v2671_v29 = vadd.f32 1.0, %v7519_v47 }
0x178b   : > { %v7523_v49 = vpop.eup %7522  ;;  %v2670_v51 = vadd.f32 1.0, %v7521_v48 }
0x178c   : > { %v2672_v50 = vadd.f32 1.0, %v7523_v49  ;;  %v2677_v57 = vmul.f32 %v2671_v29, %v2653_v24  ;;  %v6323_v29 = vld [vmem:[%s9466_s1 + $0x32] ss:$0 sm:$0xff] }
0x178d   : > { %v7525_v27 = vpop.eup %7524  ;;  %v2676_v59 = vmul.f32 %v2670_v51, %v2652_v22 }
0x178e   : > { %v2673_v56 = vadd.f32 1.0, %v7525_v27  ;;  %v2678_v11 = vmul.f32 %v2672_v50, %v2654_v52 }
0x178f   : > { %v7527_v13 = vpop.eup %7526 }
0x1790   : > { %v2679_v58 = vmul.f32 %v2673_v56, %v2655_v54  ;;  %v2707_v19 = vpack.c.bf16 %v2678_v11, %v2676_v59  ;;  %v2674_v15 = vadd.f32 1.0, %v7527_v13 }
0x1791   : > { %v7529_v41 = vpop.eup %7528 }
0x1792   : > { %v2708_v60 = vpack.c.bf16 %v2679_v58, %v2677_v57  ;;  %v2675_v43 = vadd.f32 1.0, %v7529_v41  ;;  %v2680_v8 = vmul.f32 %v2674_v15, %v2656_v0 }
0x1794   : > { %v2681_v23 = vmul.f32 %v2675_v43, %v2657_v46  ;;  %6317 = vmatprep.mubr.msk.bf16.mxu0 %vm1626_vm6, %v2708_v60  ;;  %v2709_v3 = vpack.c.bf16 %v2680_v8, %v2680_v8 }
0x1795   : > { %2822 = vmatmul.mubr.bf16.vlgmr.msra.gmra.mxu0 %v2707_v19 }
0x1796   : > { %v2710_v61 = vpack.c.bf16 %v2681_v23, %v2681_v23 }
0x1798   : > { %6318 = vmatprep.mubr.msk.bf16.mxu0 %vm1626_vm6, %v2710_v61 }
0x179d   : > { %2830 = vmatmul.mubr.bf16.gmra.mxu0 %v2709_v3 }
0x179e   : > { %6951 = vmatprep.mubr.msk.f32.mxu0 %vm7727_vm7, %v7724_v25 }
0x1855   : > { %v2823_v4 = vpop.f32.mrf.mxu0 }
0x1856   : > { %v2837_v14 = vadd.f32 %v2823_v4, %v8404_v62  ;;  %v2951_v62 = vld [vmem:[%s9474_s9 + $0x28] sm:$0xff] }
0x1857   : > { %v2825_v7 = vpop.f32.mrf.mxu0 }
0x1859   : > { %v2826_v9 = vpop.f32.mrf.mxu0 }
0x185a   : > { %v2838_v10 = vadd.f32 %v2826_v9, %v8411_v1  ;;  %v8522_v1 = vadd.f32 %v6319_v21, %v2837_v14 }
0x185b   : > { %v2828_v2 = vpop.f32.mrf.mxu0 }
0x185c   : > { %v8518_v20 = vadd.f32 %v6319_v21, %v2838_v10 }
0x185d   : > { %v2831_v17 = vpop.f32.mrf.mxu0 }
0x185e   : > { %v2839_v53 = vadd.f32 %v2831_v17, %v8406_v63  ;;  %v8528_v63 = vld [vmem:[%s9467_s2] sm:$0xff] }
0x185f   : > { %v2833_v12 = vpop.f32.mrf.mxu0 }
0x1860   : > { %v8516_v16 = vadd.f32 %v6319_v21, %v2839_v53 }
0x1861   : > { %v2834_v18 = vpop.f32.mrf.mxu0 }
0x1862   : > { %6874 = vmatpush3.msra.mxu1 %v8516_v16 }
0x1863   : > { %v2835_v28 = vpop.f32.mrf.mxu0  ;;  %6875 = vmatprep.subr.mxu1 %v7724_v25 }
0x1864   : > { %6876 = vmatpush3.msra.mxu1 %v8518_v20 }
0x1865   : > { %6877 = vmatprep.subr.mxu1 %v7724_v25 }
0x1866   : > { %6878 = vmatpush3.msra.mxu1 %v8522_v1 }
0x1867   : > { %6880 = vmatmul.mubr.msk.f32.vlgmr.msra.gmra.mxu1 %vm772_vm4, %v8528_v63  ;;  %6888 = vmatprep.subr.mxu1 %v7724_v25 }
0x1868   : > { %6882 = vmatprep.mubr.msk.f32.mxu1 %vm7727_vm7, %v7724_v25  ;;  %6889 = vmatpush3.msra.mxu1 %v2951_v62 }
0x1869   : > { %6890 = vmatprep.subr.mxu1 %v7724_v25 }
0x186a   : > { %6891 = vmatpush3.msra.mxu1 %v2950_v31 }
0x186b   : > { %6883 = vmatmul.mubr.msk.f32.gmra.mxu1 %vm772_vm4, %v8546_v32  ;;  %6892 = vmatprep.subr.mxu1 %v7724_v25 }
0x186c   : > { %6885 = vmatprep.mubr.msk.f32.mxu1 %vm7727_vm7, %v7724_v25  ;;  %6893 = vmatpush3.msra.mxu1 %v2949_v33 }
0x186d   : > { %6894 = vmatprep.subr.mxu1 %v7724_v25 }
0x186e   : > { %6895 = vmatpush3.msra.mxu1 %v2948_v55 }
0x186f   : > { %6886 = vmatmul.mubr.msk.f32.gmra.mxu1 %vm772_vm4, %v8563_v34  ;;  %6896 = vmatprep.subr.mxu1 %v7724_v25 }
0x1870   : > { %6897 = vmatpush3.msra.mxu1 %v2947_v35  ;;  %6900 = vmatprep.mubr.msk.f32.mxu1 %vm7727_vm7, %v7724_v25 }
0x1871   : > { %6898 = vmatprep.subr.mxu1 %v7724_v25 }
0x1872   : > { %6899 = vmatpush3.msra.mxu1 %v2946_v36 }
0x1873   : > { %6909 = vmatprep.subr.mxu1 %v7724_v25 }
0x1927   : > { %v2932_v37 = vpop.f32.mrf.mxu1 }
0x1928   : > { %6901 = vmatmul.mubr.msk.f32.vlgmr.msra.gmra.mxu1 %vm468_vm0, %v2932_v37 }
0x1929   : > { %v6881_v38 = vpop.f32.mrf.mxu1  ;;  %6903 = vmatprep.mubr.msk.f32.mxu1 %vm7727_vm7, %v7724_v25 }
0x192b   : > { %v2937_v39 = vpop.f32.mrf.mxu1 }
0x192c   : > { %6904 = vmatmul.mubr.msk.f32.gmra.mxu1 %vm468_vm0, %v2937_v39 }
0x192d   : > { %v6884_v40 = vpop.f32.mrf.mxu1  ;;  %6906 = vmatprep.mubr.msk.f32.mxu1 %vm7727_vm7, %v7724_v25 }
0x192f   : > { %v2942_v45 = vpop.f32.mrf.mxu1 }
0x1930   : > { %6907 = vmatmul.mubr.msk.f32.gmra.mxu1 %vm468_vm0, %v2942_v45 }
0x1931   : > { %v6887_v47 = vpop.f32.mrf.mxu1  ;;  %6915 = vmatprep.mubr.msk.f32.mxu1 %vm7727_vm7, %v7724_v25 }
0x19e8   : > { %v3031_v48 = vpop.f32.mrf.mxu1 }
0x19e9   : > { %v3032_v54 = vadd.f32 %v6323_v29, %v3031_v48 }
0x19ea   : > { %v6902_v49 = vpop.f32.mrf.mxu1 }
0x19eb   : > { %v3045_v57 = vmul.f32 %v3032_v54, %v3032_v54 }
0x19ec   : > { %v3036_v50 = vpop.f32.mrf.mxu1 }
0x19ed   : > { %v3037_v27 = vadd.f32 %v6323_v29, %v3036_v50  ;;  %v3048_v41 = vsel %vm468_vm0, %v3045_v57, 0.0 }
0x19ee   : > { %v6905_v51 = vpop.f32.mrf.mxu1 }
0x19ef   : > { %v3046_v52 = vmul.f32 %v3037_v27, %v3037_v27 }
0x19f0   : > { %v3041_v24 = vpop.f32.mrf.mxu1 }
0x19f1   : > { %v3042_v56 = vadd.f32 %v6323_v29, %v3041_v24  ;;  %v3051_v22 = vsel %vm468_vm0, %v3046_v52, 0.0 }
0x19f2   : > { %3052 = vadd.xlane.f32.xlu1 %v3051_v22  ;;  %v6908_v11 = vpop.f32.mrf.mxu1  ;;  %v8603_v22 = vld [vmem:[%s9466_s1 + $0x35] ss:$0 sm:$0xff] }
0x19f3   : > { %v3047_v13 = vmul.f32 %v3042_v56, %v3042_v56 }
0x19f5   : > { %v3054_v58 = vsel %vm468_vm0, %v3047_v13, 0.0 }
0x19f6   : > { %3055 = vadd.xlane.f32.xlu0 %v3054_v58 }
0x19fa   : > { %3049 = vadd.xlane.f32.xlu0 %v3048_v41  ;;  %v8610_v41 = vld [vmem:[%s9466_s1 + $0x36] ss:$0 sm:$0xff] }
0x1a7b   : > { %v3053_v59 = vpop.xlane.xlu1 %3052 }
0x1a7c   : > { %v3058_v60 = vmax.f32 %v3053_v59, 1e-24 }
0x1a7e   : > { %7530 = vrsqrt.f32 %v3058_v60 }
0x1a7f   : > { %v3056_v46 = vpop.xlane.xlu0 %3055 }
0x1a80   : > { %v3059_v43 = vmax.f32 %v3056_v46, 1e-24 }
0x1a82   : > { %7532 = vrsqrt.f32 %v3059_v43 }
0x1a83   : > { %v3050_v19 = vpop.xlane.xlu0 %3049 }
0x1a84   : > { %v3057_v15 = vmax.f32 %v3050_v19, 1e-24 }
0x1a86   : > { %7534 = vrsqrt.f32 %v3057_v15  ;;  %v6337_v15 = vld [vmem:[%s9474_s9 + $0x58] sm:$0xff] }
0x1a8b   : > { %v7531_v23 = vpop.eup %7530 }
0x1a8c   : > { %v3064_v0 = vmul.f32 %v7531_v23, %v3037_v27  ;;  %v6336_v23 = vld [vmem:[%s9474_s9 + $0x50] sm:$0xff] }
0x1a8e   : > { %v3067_v61 = vmax.f32 %v3064_v0, 0.0  ;;  %v6335_v0 = vld [vmem:[%s9474_s9 + $0x48] sm:$0xff] }
0x1a8f   : > { %v7533_v8 = vpop.eup %7532 }
0x1a90   : > { %v3072_v3 = vsel %vm468_vm0, %v3067_v61, 0.0  ;;  %v3065_v4 = vmul.f32 %v7533_v8, %v3042_v56  ;;  %v6333_v8 = vld [vmem:[%s9474_s9 + $0x38] sm:$0xff] }
0x1a91   : > { %3073 = vadd.xlane.f32.xlu0 %v3072_v3  ;;  %v6332_v3 = vld [vmem:[%s9474_s9 + $0x30] sm:$0xff] }
0x1a92   : > { %v3068_v7 = vmax.f32 %v3065_v4, 0.0 }
0x1a93   : > { %v7535_v9 = vpop.eup %7534 }
0x1a94   : > { %v3075_v2 = vsel %vm468_vm0, %v3068_v7, 0.0  ;;  %v3063_v17 = vmul.f32 %v7535_v9, %v3032_v54 }
0x1a95   : > { %3076 = vadd.xlane.f32.xlu1 %v3075_v2 }
0x1a96   : > { %v3066_v10 = vmax.f32 %v3063_v17, 0.0 }
0x1a98   : > { %v3069_v53 = vsel %vm468_vm0, %v3066_v10, 0.0 }
0x1a99   : > { %3070 = vadd.xlane.f32.xlu1 %v3069_v53 }
0x1b1a   : > { %v3074_v21 = vpop.xlane.xlu0 %3073 }
0x1b1b   : > { %v3079_v12 = vmul.f32 0.020833334, %v3074_v21 }
0x1b1d   : > { %v3082_v14 = vsub.f32 %v3067_v61, %v3079_v12  ;;  %v6334_v61 = vld [vmem:[%s9474_s9 + $0x40] sm:$0xff]  ;;  %v6338_v12 = vld [vmem:[%s9466_s1 + $0x33] ss:$0 sm:$0xff] }
0x1b1e   : > { %v3077_v18 = vpop.xlane.xlu1 %3076 }
0x1b1f   : > { %v3080_v28 = vmul.f32 0.020833334, %v3077_v18  ;;  %v3085_v62 = vmul.f32 %v3082_v14, %v3082_v14 }
0x1b21   : > { %v3083_v31 = vsub.f32 %v3068_v7, %v3080_v28  ;;  %v3090_v33 = vsel %vm468_vm0, %v3085_v62, 0.0 }
0x1b22   : > { %v3071_v55 = vpop.xlane.xlu1 %3070  ;;  %3091 = vadd.xlane.f32.xlu1 %v3090_v33 }
0x1b23   : > { %v3078_v35 = vmul.f32 0.020833334, %v3071_v55  ;;  %v3086_v36 = vmul.f32 %v3083_v31, %v3083_v31 }
0x1b25   : > { %v3081_v37 = vsub.f32 %v3066_v10, %v3078_v35  ;;  %v3093_v38 = vsel %vm468_vm0, %v3086_v36, 0.0 }
0x1b26   : > { %3094 = vadd.xlane.f32.xlu0 %v3093_v38 }
0x1b27   : > { %v3084_v39 = vmul.f32 %v3081_v37, %v3081_v37 }
0x1b29   : > { %v3087_v40 = vsel %vm468_vm0, %v3084_v39, 0.0 }
0x1b2a   : > { %3088 = vadd.xlane.f32.xlu0 %v3087_v40 }
0x1bab   : > { %v3092_v45 = vpop.xlane.xlu1 %3091 }
0x1bac   : > { %v3097_v47 = vmul.f32 0.020833334, %v3092_v45 }
0x1bae   : > { %v3100_v48 = vadd.f32 1e-05, %v3097_v47 }
0x1baf   : > { %v3095_v49 = vpop.xlane.xlu0 %3094 }
0x1bb0   : > { %7536 = vrsqrt.f32 %v3100_v48  ;;  %v3098_v29 = vmul.f32 0.020833334, %v3095_v49 }
0x1bb2   : > { %v3101_v50 = vadd.f32 1e-05, %v3098_v29 }
0x1bb3   : > { %v3089_v27 = vpop.xlane.xlu0 %3088 }
0x1bb4   : > { %7538 = vrsqrt.f32 %v3101_v50  ;;  %v3096_v51 = vmul.f32 0.020833334, %v3089_v27 }
0x1bb6   : > { %v3099_v52 = vadd.f32 1e-05, %v3096_v51 }
0x1bb8   : > { %7540 = vrsqrt.f32 %v3099_v52 }
0x1bbd   : > { %v7537_v24 = vpop.eup %7536 }
0x1bbe   : > { %v3106_v54 = vmul.f32 %v7537_v24, %v3082_v14 }
0x1bc0   : > { %v3113_v57 = vmul.f32 %v8603_v22, %v3106_v54 }
0x1bc1   : > { %v7539_v56 = vpop.eup %7538 }
0x1bc2   : > { %v3107_v11 = vmul.f32 %v7539_v56, %v3083_v31  ;;  %v8617_v46 = vadd.f32 %v8610_v41, %v3113_v57 }
0x1bc4   : > { %v3114_v13 = vmul.f32 %v8603_v22, %v3107_v11 }
0x1bc5   : > { %v7541_v58 = vpop.eup %7540 }
0x1bc6   : > { %v8613_v59 = vadd.f32 %v8610_v41, %v3114_v13  ;;  %v3105_v60 = vmul.f32 %v7541_v58, %v3081_v37 }
0x1bc8   : > { %6910 = vmatpush3.msra.mxu1 %v8613_v59  ;;  %v3112_v43 = vmul.f32 %v8603_v22, %v3105_v60 }
0x1bc9   : > { %6911 = vmatprep.subr.mxu1 %v7724_v25 }
0x1bca   : > { %6912 = vmatpush3.msra.mxu1 %v8617_v46  ;;  %v8623_v19 = vadd.f32 %v8610_v41, %v3112_v43 }
0x1bcb   : > { %6913 = vmatprep.subr.mxu1 %v7724_v25 }
0x1bcc   : > { %6914 = vmatpush3.msra.mxu1 %v8623_v19 }
0x1bcd   : > { %6916 = vmatmul.mubr.msk.f32.vlgmr.msra.gmra.mxu1 %vm772_vm4, %v8528_v63  ;;  %6924 = vmatprep.subr.mxu1 %v7724_v25 }
0x1bce   : > { %6918 = vmatprep.mubr.msk.f32.mxu1 %vm7727_vm7, %v7724_v25  ;;  %6925 = vmatpush3.msra.mxu1 %v6337_v15 }
0x1bcf   : > { %6926 = vmatprep.subr.mxu1 %v7724_v25 }
0x1bd0   : > { %6927 = vmatpush3.msra.mxu1 %v6336_v23 }
0x1bd1   : > { %6919 = vmatmul.mubr.msk.f32.gmra.mxu1 %vm772_vm4, %v8546_v32  ;;  %6928 = vmatprep.subr.mxu1 %v7724_v25 }
0x1bd2   : > { %6921 = vmatprep.mubr.msk.f32.mxu1 %vm7727_vm7, %v7724_v25  ;;  %6929 = vmatpush3.msra.mxu1 %v6335_v0 }
0x1bd3   : > { %6930 = vmatprep.subr.mxu1 %v7724_v25 }
0x1bd4   : > { %6931 = vmatpush3.msra.mxu1 %v6334_v61 }
0x1bd5   : > { %6922 = vmatmul.mubr.msk.f32.gmra.mxu1 %vm772_vm4, %v8563_v34  ;;  %6932 = vmatprep.subr.mxu1 %v7724_v25 }
0x1bd6   : > { %6933 = vmatpush3.msra.mxu1 %v6333_v8  ;;  %6936 = vmatprep.mubr.msk.f32.mxu1 %vm7727_vm7, %v7724_v25 }
0x1bd7   : > { %6934 = vmatprep.subr.mxu1 %v7724_v25 }
0x1bd8   : > { %6935 = vmatpush3.msra.mxu1 %v6332_v3 }
0x1bd9   : > { %6960 = vmatprep.subr.mxu1 %v7724_v25 }
0x1c8d   : > { %v3188_v4 = vpop.f32.mrf.mxu1 }
0x1c8e   : > { %6937 = vmatmul.mubr.msk.f32.vlgmr.msra.gmra.mxu1 %vm468_vm0, %v3188_v4 }
0x1c8f   : > { %v6917_v7 = vpop.f32.mrf.mxu1  ;;  %6939 = vmatprep.mubr.msk.f32.mxu1 %vm7727_vm7, %v7724_v25 }
0x1c91   : > { %v3193_v9 = vpop.f32.mrf.mxu1 }
0x1c92   : > { %6940 = vmatmul.mubr.msk.f32.gmra.mxu1 %vm468_vm0, %v3193_v9 }
0x1c93   : > { %v6920_v2 = vpop.f32.mrf.mxu1  ;;  %6942 = vmatprep.mubr.msk.f32.mxu1 %vm7727_vm7, %v7724_v25 }
0x1c95   : > { %v3198_v17 = vpop.f32.mrf.mxu1 }
0x1c96   : > { %6943 = vmatmul.mubr.msk.f32.gmra.mxu1 %vm468_vm0, %v3198_v17 }
0x1c97   : > { %v6923_v10 = vpop.f32.mrf.mxu1  ;;  %6972 = vmatprep.mubr.msk.f32.mxu1 %vm7727_vm7, %v7724_v25 }
0x1d4e   : > { %v3288_v53 = vpop.f32.mrf.mxu1 }
0x1d4f   : > { %v3289_v33 = vadd.f32 %v6338_v12, %v3288_v53 }
0x1d50   : > { %v6938_v21 = vpop.f32.mrf.mxu1 }
0x1d51   : > { %v3302_v38 = vmul.f32 %v3289_v33, %v3289_v33 }
0x1d52   : > { %v3293_v14 = vpop.f32.mrf.mxu1 }
0x1d53   : > { %v3294_v18 = vadd.f32 %v6338_v12, %v3293_v14  ;;  %v3305_v40 = vsel %vm468_vm0, %v3302_v38, 0.0  ;;  %v6350_v14 = vld [vmem:[%s9474_s9 + $0x88] sm:$0xff] }
0x1d54   : > { %v6941_v28 = vpop.f32.mrf.mxu1  ;;  %6961 = vmatpush3.msra.mxu1 %v6350_v14 }
0x1d55   : > { %v3303_v62 = vmul.f32 %v3294_v18, %v3294_v18  ;;  %6962 = vmatprep.subr.mxu1 %v7724_v25  ;;  %v6348_v28 = vld [vmem:[%s9474_s9 + $0x78] sm:$0xff] }
0x1d56   : > { %v3298_v31 = vpop.f32.mrf.mxu1 }
0x1d57   : > { %v3299_v55 = vadd.f32 %v6338_v12, %v3298_v31  ;;  %v3308_v35 = vsel %vm468_vm0, %v3303_v62, 0.0  ;;  %v6347_v62 = vld [vmem:[%s9474_s9 + $0x70] sm:$0xff]  ;;  %v6346_v31 = vld [vmem:[%s9474_s9 + $0x68] sm:$0xff] }
0x1d58   : > { %3309 = vadd.xlane.f32.xlu0 %v3308_v35  ;;  %v6944_v36 = vpop.f32.mrf.mxu1 }
0x1d59   : > { %v3304_v37 = vmul.f32 %v3299_v55, %v3299_v55 }
0x1d5b   : > { %v3311_v39 = vsel %vm468_vm0, %v3304_v37, 0.0 }
0x1d5c   : > { %3312 = vadd.xlane.f32.xlu1 %v3311_v39 }
0x1d60   : > { %3306 = vadd.xlane.f32.xlu1 %v3305_v40 }
0x1de1   : > { %v3310_v45 = vpop.xlane.xlu0 %3309 }
0x1de2   : > { %v3315_v47 = vmax.f32 %v3310_v45, 1e-24 }
0x1de4   : > { %7542 = vrsqrt.f32 %v3315_v47 }
0x1de5   : > { %v3313_v48 = vpop.xlane.xlu1 %3312 }
0x1de6   : > { %v3316_v49 = vmax.f32 %v3313_v48, 1e-24 }
0x1de8   : > { %7544 = vrsqrt.f32 %v3316_v49 }
0x1de9   : > { %v3307_v29 = vpop.xlane.xlu1 %3306 }
0x1dea   : > { %v3314_v50 = vmax.f32 %v3307_v29, 1e-24 }
0x1dec   : > { %7546 = vrsqrt.f32 %v3314_v50 }
0x1df1   : > { %v7543_v27 = vpop.eup %7542 }
0x1df2   : > { %v3321_v51 = vmul.f32 %v7543_v27, %v3294_v18  ;;  %v6349_v18 = vld [vmem:[%s9474_s9 + $0x80] sm:$0xff] }
0x1df3   : > { %6963 = vmatpush3.msra.mxu1 %v6349_v18 }
0x1df4   : > { %v3324_v52 = vmax.f32 %v3321_v51, 0.0  ;;  %6964 = vmatprep.subr.mxu1 %v7724_v25 }
0x1df5   : > { %v7545_v24 = vpop.eup %7544  ;;  %6965 = vmatpush3.msra.mxu1 %v6348_v28 }
0x1df6   : > { %v3329_v54 = vsel %vm468_vm0, %v3324_v52, 0.0  ;;  %v3322_v56 = vmul.f32 %v7545_v24, %v3299_v55  ;;  %6966 = vmatprep.subr.mxu1 %v7724_v25 }
0x1df7   : > { %3330 = vadd.xlane.f32.xlu1 %v3329_v54  ;;  %6967 = vmatpush3.msra.mxu1 %v6347_v62 }
0x1df8   : > { %v3325_v11 = vmax.f32 %v3322_v56, 0.0  ;;  %6968 = vmatprep.subr.mxu1 %v7724_v25 }
0x1df9   : > { %v7547_v13 = vpop.eup %7546  ;;  %6969 = vmatpush3.msra.mxu1 %v6346_v31 }
0x1dfa   : > { %v3332_v57 = vsel %vm468_vm0, %v3325_v11, 0.0  ;;  %v3320_v58 = vmul.f32 %v7547_v13, %v3289_v33  ;;  %v6345_v33 = vld [vmem:[%s9474_s9 + $0x60] sm:$0xff]  ;;  %6970 = vmatprep.subr.mxu1 %v7724_v25 }
0x1dfb   : > { %3333 = vadd.xlane.f32.xlu0 %v3332_v57  ;;  %6971 = vmatpush3.msra.mxu1 %v6345_v33  ;;  %v6360_v57 = vld [vmem:[%s9475_s10 + $0x58] sm:$0xff] }
0x1dfc   : > { %v3323_v60 = vmax.f32 %v3320_v58, 0.0  ;;  %7002 = vmatprep.subr.mxu1 %v7724_v25  ;;  %v6356_v58 = vld [vmem:[%s9475_s10 + $0x38] sm:$0xff] }
0x1dfe   : > { %v3326_v43 = vsel %vm468_vm0, %v3323_v60, 0.0 }
0x1dff   : > { %3327 = vadd.xlane.f32.xlu0 %v3326_v43  ;;  %v3576_v43 = vld [vmem:[%s9475_s10 + $0x20] sm:$0xff] }
0x1e80   : > { %v3331_v15 = vpop.xlane.xlu1 %3330 }
0x1e81   : > { %v3336_v23 = vmul.f32 0.020833334, %v3331_v15 }
0x1e83   : > { %v3339_v0 = vsub.f32 %v3324_v52, %v3336_v23  ;;  %v3575_v23 = vld [vmem:[%s9475_s10 + $0x18] sm:$0xff] }
0x1e84   : > { %v3334_v61 = vpop.xlane.xlu0 %3333 }
0x1e85   : > { %v3337_v8 = vmul.f32 0.020833334, %v3334_v61  ;;  %v3342_v3 = vmul.f32 %v3339_v0, %v3339_v0  ;;  %v3574_v61 = vld [vmem:[%s9475_s10 + $0x10] sm:$0xff] }
0x1e87   : > { %v3340_v4 = vsub.f32 %v3325_v11, %v3337_v8  ;;  %v3347_v7 = vsel %vm468_vm0, %v3342_v3, 0.0  ;;  %v3573_v3 = vld [vmem:[%s9475_s10 + $0x8] sm:$0xff] }
0x1e88   : > { %v3328_v9 = vpop.xlane.xlu0 %3327  ;;  %3348 = vadd.xlane.f32.xlu0 %v3347_v7  ;;  %v3572_v7 = vld [vmem:[%s9475_s10] sm:$0xff] }
0x1e89   : > { %v3335_v2 = vmul.f32 0.020833334, %v3328_v9  ;;  %v3343_v17 = vmul.f32 %v3340_v4, %v3340_v4 }
0x1e8b   : > { %v3338_v10 = vsub.f32 %v3323_v60, %v3335_v2  ;;  %v3350_v53 = vsel %vm468_vm0, %v3343_v17, 0.0 }
0x1e8c   : > { %3351 = vadd.xlane.f32.xlu1 %v3350_v53  ;;  %v6351_v53 = vld [vmem:[%s9466_s1 + $0x34] ss:$0 sm:$0xff] }
0x1e8d   : > { %v3341_v21 = vmul.f32 %v3338_v10, %v3338_v10 }
0x1e8f   : > { %v3344_v12 = vsel %vm468_vm0, %v3341_v21, 0.0 }
0x1e90   : > { %3345 = vadd.xlane.f32.xlu1 %v3344_v12 }
0x1f11   : > { %v3349_v55 = vpop.xlane.xlu0 %3348 }
0x1f12   : > { %v3354_v35 = vmul.f32 0.020833334, %v3349_v55 }
0x1f14   : > { %v3357_v36 = vadd.f32 1e-05, %v3354_v35 }
0x1f15   : > { %v3352_v37 = vpop.xlane.xlu1 %3351 }
0x1f16   : > { %7548 = vrsqrt.f32 %v3357_v36  ;;  %v3355_v38 = vmul.f32 0.020833334, %v3352_v37 }
0x1f18   : > { %v3358_v39 = vadd.f32 1e-05, %v3355_v38 }
0x1f19   : > { %v3346_v40 = vpop.xlane.xlu1 %3345 }
0x1f1a   : > { %7550 = vrsqrt.f32 %v3358_v39  ;;  %v3353_v45 = vmul.f32 0.020833334, %v3346_v40 }
0x1f1c   : > { %v3356_v47 = vadd.f32 1e-05, %v3353_v45 }
0x1f1e   : > { %7552 = vrsqrt.f32 %v3356_v47 }
0x1f23   : > { %v7549_v48 = vpop.eup %7548 }
0x1f24   : > { %v3363_v49 = vmul.f32 %v7549_v48, %v3339_v0 }
0x1f26   : > { %v3366_v51 = vmul.f32 %v8603_v22, %v3363_v49  ;;  %v6372_v49 = vld [vmem:[%s9475_s10 + $0x88] sm:$0xff] }
0x1f27   : > { %v7551_v29 = vpop.eup %7550 }
0x1f28   : > { %v3364_v50 = vmul.f32 %v7551_v29, %v3340_v4  ;;  %v3369_v56 = vadd.f32 %v8610_v41, %v3366_v51  ;;  %v6371_v29 = vld [vmem:[%s9475_s10 + $0x80] sm:$0xff]  ;;  %v6368_v51 = vld [vmem:[%s9475_s10 + $0x68] sm:$0xff] }
0x1f2a   : > { %v3367_v27 = vmul.f32 %v8603_v22, %v3364_v50  ;;  %v6370_v50 = vld [vmem:[%s9475_s10 + $0x78] sm:$0xff] }
0x1f2b   : > { %v7553_v52 = vpop.eup %7552 }
0x1f2c   : > { %v3370_v24 = vadd.f32 %v8610_v41, %v3367_v27  ;;  %v3362_v54 = vmul.f32 %v7553_v52, %v3338_v10  ;;  %v6369_v27 = vld [vmem:[%s9475_s10 + $0x70] sm:$0xff]  ;;  %v6367_v52 = vld [vmem:[%s9475_s10 + $0x60] sm:$0xff] }
0x1f2e   : > { %6946 = vmatpush3.msra.mxu0 %v3370_v24  ;;  %v3365_v11 = vmul.f32 %v8603_v22, %v3362_v54  ;;  %v6359_v22 = vld [vmem:[%s9475_s10 + $0x50] sm:$0xff] }
0x1f2f   : > { %6947 = vmatprep.subr.mxu0 %v7724_v25 }
0x1f30   : > { %6948 = vmatpush3.msra.mxu0 %v3369_v56  ;;  %v3368_v13 = vadd.f32 %v8610_v41, %v3365_v11  ;;  %v6358_v41 = vld [vmem:[%s9475_s10 + $0x48] sm:$0xff] }
0x1f31   : > { %6949 = vmatprep.subr.mxu0 %v7724_v25 }
0x1f32   : > { %6950 = vmatpush3.msra.mxu0 %v3368_v13 }
0x1f33   : > { %6952 = vmatmul.mubr.msk.f32.vlgmr.msra.gmra.mxu0 %vm772_vm4, %v8528_v63  ;;  %6981 = vmatprep.subr.mxu0 %v7724_v25  ;;  %v6357_v63 = vld [vmem:[%s9475_s10 + $0x40] sm:$0xff] }
0x1f34   : > { %6982 = vmatpush3.msra.mxu0 %v6360_v57  ;;  %6954 = vmatprep.mubr.msk.f32.mxu0 %vm7727_vm7, %v7724_v25 }
0x1f35   : > { %6983 = vmatprep.subr.mxu0 %v7724_v25 }
0x1f36   : > { %6984 = vmatpush3.msra.mxu0 %v6359_v22 }
0x1f37   : > { %6955 = vmatmul.mubr.msk.f32.gmra.mxu0 %vm772_vm4, %v8546_v32  ;;  %6985 = vmatprep.subr.mxu0 %v7724_v25  ;;  %v6355_v32 = vld [vmem:[%s9475_s10 + $0x30] sm:$0xff] }
0x1f38   : > { %6986 = vmatpush3.msra.mxu0 %v6358_v41  ;;  %6957 = vmatprep.mubr.msk.f32.mxu0 %vm7727_vm7, %v7724_v25 }
0x1f39   : > { %6987 = vmatprep.subr.mxu0 %v7724_v25 }
0x1f3a   : > { %6988 = vmatpush3.msra.mxu0 %v6357_v63 }
0x1f3b   : > { %6958 = vmatmul.mubr.msk.f32.gmra.mxu0 %vm772_vm4, %v8563_v34  ;;  %6989 = vmatprep.subr.mxu0 %v7724_v25  ;;  %v3577_v34 = vld [vmem:[%s9475_s10 + $0x28] sm:$0xff] }
0x1f3c   : > { %6990 = vmatpush3.msra.mxu0 %v6356_v58  ;;  %6993 = vmatprep.mubr.msk.f32.mxu0 %vm7727_vm7, %v7724_v25 }
0x1f3d   : > { %6991 = vmatprep.subr.mxu0 %v7724_v25 }
0x1f3e   : > { %6992 = vmatpush3.msra.mxu0 %v6355_v32 }
0x1f3f   : > { %6994 = vmatmul.mubr.msk.f32.vlgmr.msra.gmra.mxu0 %vm468_vm0, %v3368_v13  ;;  %7023 = vmatprep.subr.mxu0 %v7724_v25 }
0x1f40   : > { %6996 = vmatprep.mubr.msk.f32.mxu0 %vm7727_vm7, %v7724_v25  ;;  %7024 = vmatpush3.msra.mxu0 %v6372_v49 }
0x1f41   : > { %7025 = vmatprep.subr.mxu0 %v7724_v25 }
0x1f42   : > { %7026 = vmatpush3.msra.mxu0 %v6371_v29  ;;  %v6379_v29 = vsel %vm3925_vm11, 1.0, %v7724_v25 }
0x1f43   : > { %6997 = vmatmul.mubr.msk.f32.gmra.mxu0 %vm468_vm0, %v3369_v56  ;;  %7027 = vmatprep.subr.mxu0 %v7724_v25 }
0x1f44   : > { %6999 = vmatprep.mubr.msk.f32.mxu0 %vm7727_vm7, %v7724_v25  ;;  %7028 = vmatpush3.msra.mxu0 %v6370_v50 }
0x1f45   : > { %7029 = vmatprep.subr.mxu0 %v7724_v25 }
0x1f46   : > { %7030 = vmatpush3.msra.mxu0 %v6369_v27  ;;  %v3905_v27 = vadd.s32 16, %v7918_v5 }
0x1f47   : > { %7000 = vmatmul.mubr.msk.f32.gmra.mxu0 %vm468_vm0, %v3370_v24  ;;  %7031 = vmatprep.subr.mxu0 %v7724_v25 }
0x1f48   : > { %7035 = vmatprep.mubr.msk.f32.mxu0 %vm7727_vm7, %v7724_v25  ;;  %7032 = vmatpush3.msra.mxu0 %v6368_v51  ;;  %vm3911_vm12 = vcmp.lt.s32.totalorder %v3905_v27, 17 }
0x1f49   : > { %7033 = vmatprep.subr.mxu0 %v7724_v25 }
0x1f4a   : > { %7034 = vmatpush3.msra.mxu0 %v6367_v52 }
0x1ff3   : > { %v3437_v60 = vpop.f32.mrf.mxu0 }
0x1ff4   : > { %6973 = vmatmul.mubr.msk.f32.vlgmr.msra.gmra.mxu1 %vm468_vm0, %v3437_v60 }
0x1ff5   : > { %7003 = vmatpush3.msra.mxu1 %v3577_v34  ;;  %v6953_v15 = vpop.f32.mrf.mxu0  ;;  %6975 = vmatprep.mubr.msk.f32.mxu1 %vm7727_vm7, %v7724_v25 }
0x1ff6   : > { %7004 = vmatprep.subr.mxu1 %v7724_v25 }
0x1ff7   : > { %7005 = vmatpush3.msra.mxu1 %v3576_v43  ;;  %v3442_v0 = vpop.f32.mrf.mxu0  ;;  %v6376_v43 = vld [vmem:[%s9466_s1 + $0x37] ss:$0 sm:$0xff] }
0x1ff8   : > { %7006 = vmatprep.subr.mxu1 %v7724_v25  ;;  %6976 = vmatmul.mubr.msk.f32.gmra.mxu1 %vm468_vm0, %v3442_v0 }
0x1ff9   : > { %7007 = vmatpush3.msra.mxu1 %v3575_v23  ;;  %v6956_v8 = vpop.f32.mrf.mxu0  ;;  %6978 = vmatprep.mubr.msk.f32.mxu1 %vm7727_vm7, %v7724_v25 }
0x1ffa   : > { %7008 = vmatprep.subr.mxu1 %v7724_v25 }
0x1ffb   : > { %7009 = vmatpush3.msra.mxu1 %v3574_v61  ;;  %v3447_v4 = vpop.f32.mrf.mxu0 }
0x1ffc   : > { %7010 = vmatprep.subr.mxu1 %v7724_v25  ;;  %6979 = vmatmul.mubr.msk.f32.gmra.mxu1 %vm468_vm0, %v3447_v4 }
0x1ffd   : > { %7011 = vmatpush3.msra.mxu1 %v3573_v3  ;;  %v6959_v9 = vpop.f32.mrf.mxu0  ;;  %7014 = vmatprep.mubr.msk.f32.mxu1 %vm7727_vm7, %v7724_v25 }
0x1ffe   : > { %7012 = vmatprep.subr.mxu1 %v7724_v25 }
0x1fff   : > { %7013 = vmatpush3.msra.mxu1 %v3572_v7  ;;  %v8795_v2 = vpop.f32.mrf.mxu0 }
0x2000   : > { %7044 = vmatprep.subr.mxu1 %v8516_v16  ;;  %7015 = vmatmul.mubr.msk.f32.vlgmr.msra.gmra.mxu1 %vm468_vm0, %v8623_v19 }
0x2001   : > { %7045 = vmatpush3.msra.mxu1 %v8516_v16  ;;  %v6995_v17 = vpop.f32.mrf.mxu0  ;;  %7017 = vmatprep.mubr.msk.f32.mxu1 %vm7727_vm7, %v7724_v25 }
0x2002   : > { %7046 = vmatprep.subr.mxu1 %v8518_v20 }
0x2003   : > { %7047 = vmatpush3.msra.mxu1 %v8518_v20  ;;  %v8805_v10 = vpop.f32.mrf.mxu0 }
0x2004   : > { %7048 = vmatprep.subr.mxu1 %v8522_v1  ;;  %7018 = vmatmul.mubr.msk.f32.gmra.mxu1 %vm468_vm0, %v8617_v46 }
0x2005   : > { %7049 = vmatpush3.msra.mxu1 %v8522_v1  ;;  %v6998_v19 = vpop.f32.mrf.mxu0  ;;  %7020 = vmatprep.mubr.msk.f32.mxu1 %vm7727_vm7, %v7724_v25 }
0x2006   : > { %7053 = vmatprep.subr.mxu1 %v7724_v25 }
0x2007   : > { %v8814_v16 = vpop.f32.mrf.mxu0 }
0x2008   : > { %7021 = vmatmul.mubr.msk.f32.gmra.mxu1 %vm468_vm0, %v8613_v59 }
0x2009   : > { %v7001_v20 = vpop.f32.mrf.mxu0 }
0x20b4   : > { %v3537_v21 = vpop.f32.mrf.mxu1 }
0x20b5   : > { %v3538_v46 = vadd.f32 %v6351_v53, %v3537_v21 }
0x20b6   : > { %v6974_v12 = vpop.f32.mrf.mxu1 }
0x20b7   : > { %v3551_v1 = vmul.f32 %v3538_v46, %v3538_v46 }
0x20b8   : > { %v3542_v14 = vpop.f32.mrf.mxu1 }
0x20b9   : > { %v3543_v18 = vadd.f32 %v6351_v53, %v3542_v14  ;;  %v3554_v28 = vsel %vm468_vm0, %v3551_v1, 0.0 }
0x20ba   : > { %3555 = vadd.xlane.f32.xlu0 %v3554_v28  ;;  %v6977_v62 = vpop.f32.mrf.mxu1 }
0x20bb   : > { %v3552_v31 = vmul.f32 %v3543_v18, %v3543_v18 }
0x20bc   : > { %v3547_v33 = vpop.f32.mrf.mxu1 }
0x20bd   : > { %v3548_v55 = vadd.f32 %v6351_v53, %v3547_v33  ;;  %v3557_v59 = vsel %vm468_vm0, %v3552_v31, 0.0 }
0x20be   : > { %3558 = vadd.xlane.f32.xlu1 %v3557_v59  ;;  %v6980_v35 = vpop.f32.mrf.mxu1 }
0x20bf   : > { %v3553_v36 = vmul.f32 %v3548_v55, %v3548_v55 }
0x20c0   : > { %v3749_v37 = vpop.f32.mrf.mxu1 }
0x20c1   : > { %v3560_v38 = vsel %vm468_vm0, %v3553_v36, 0.0  ;;  %v3750_v60 = vadd.f32 %v3749_v37, %v8795_v2 }
0x20c2   : > { %3561 = vadd.xlane.f32.xlu0 %v3560_v38  ;;  %v7016_v39 = vpop.f32.mrf.mxu1 }
0x20c4   : > { %v3754_v40 = vpop.f32.mrf.mxu1 }
0x20c5   : > { %v3755_v61 = vadd.f32 %v3754_v40, %v8805_v10 }
0x20c6   : > { %v7019_v45 = vpop.f32.mrf.mxu1 }
0x20c8   : > { %v3759_v47 = vpop.f32.mrf.mxu1 }
0x20c9   : > { %v3760_v17 = vadd.f32 %v3759_v47, %v8814_v16 }
0x20ca   : > { %v7022_v48 = vpop.f32.mrf.mxu1 }
0x20cb   : > { %v6377_v48 = vsel %vm3906_vm10, 1.0, %v7724_v25 }
0x2143   : > { %v3556_v24 = vpop.xlane.xlu0 %3555 }
0x2144   : > { %v3563_v54 = vmax.f32 %v3556_v24, 1e-24 }
0x2146   : > { %7554 = vrsqrt.f32 %v3563_v54 }
0x2147   : > { %v3559_v56 = vpop.xlane.xlu1 %3558 }
0x2148   : > { %v3564_v11 = vmax.f32 %v3559_v56, 1e-24 }
0x214a   : > { %7556 = vrsqrt.f32 %v3564_v11  ;;  %v6378_v11 = vsel %vm3911_vm12, 1.0, %v7724_v25 }
0x214b   : > { %v3562_v13 = vpop.xlane.xlu0 %3561 }
0x214c   : > { %v3565_v57 = vmax.f32 %v3562_v13, 1e-24 }
0x214e   : > { %7558 = vrsqrt.f32 %v3565_v57 }
0x2153   : > { %v7555_v22 = vpop.eup %7554 }
0x2154   : > { %v3569_v41 = vmul.f32 %v7555_v22, %v3538_v46 }
0x2156   : > { %7036 = vmatmul.mubr.msk.f32.vlgmr.msra.gmra.mxu0 %vm468_vm0, %v3569_v41 }
0x2157   : > { %v7557_v63 = vpop.eup %7556  ;;  %7038 = vmatprep.mubr.msk.f32.mxu0 %vm7727_vm7, %v7724_v25 }
0x2158   : > { %v3570_v58 = vmul.f32 %v7557_v63, %v3543_v18 }
0x215a   : > { %7039 = vmatmul.mubr.msk.f32.gmra.mxu0 %vm468_vm0, %v3570_v58 }
0x215b   : > { %v7559_v32 = vpop.eup %7558  ;;  %7041 = vmatprep.mubr.msk.f32.mxu0 %vm7727_vm7, %v7724_v25 }
0x215c   : > { %v3571_v34 = vmul.f32 %v7559_v32, %v3548_v55 }
0x215e   : > { %7042 = vmatmul.mubr.msk.f32.gmra.mxu0 %vm468_vm0, %v3571_v34 }
0x215f   : > { %4252 = vmatprep.mubr.bf16.mxu0 %v7718_v42 }
0x2216   : > { %v3845_v15 = vpop.f32.mrf.mxu0 }
0x2217   : > { %v3859_v23 = vadd.f32 %v3845_v15, %v3750_v60 }
0x2218   : > { %v7037_v0 = vpop.f32.mrf.mxu0 }
0x2219   : > { %v3866_v8 = vadd.f32 %v6376_v43, %v3859_v23 }
0x221a   : > { %v3850_v3 = vpop.f32.mrf.mxu0 }
0x221b   : > { %v3860_v4 = vadd.f32 %v3850_v3, %v3755_v61  ;;  %v3869_v7 = vsel %vm707_vm1, %v3866_v8, -inf  ;;  %v7343_v3 = vld [vmem:[%s9471_s6 + $0x84] ss:$8 sps:$4 sm:$0xff]  }
0x221c   : > { %3870 = vmax.xlane.f32.xlu1 %v3869_v7  ;;  %v7040_v9 = vpop.f32.mrf.mxu0  ;;  %4230 = vmatprep.subr.bf16.mxu0 %v7343_v3  ;;  %v7346_v7 = vld [vmem:[%s9471_s6 + $0x74] ss:$8 sps:$4 sm:$0xff]  }
0x221d   : > { %v3867_v19 = vadd.f32 %v6376_v43, %v3860_v4  ;;  %v7341_v4 = vld [vmem:[%s9471_s6 + $0x80] ss:$8 sps:$4 sm:$0xff]   ;;  %v7344_v9 = vld [vmem:[%s9471_s6 + $0x70] ss:$8 sps:$4 sm:$0xff]  }
0x221e   : > { %v3855_v2 = vpop.f32.mrf.mxu0  ;;  %4231 = vmatpush1.bf16.msra.mxu0 %v7341_v4 }
0x221f   : > { %v3861_v20 = vadd.f32 %v3855_v2, %v3760_v17  ;;  %v3872_v53 = vsel %vm707_vm1, %v3867_v19, -inf  ;;  %4232 = vmatprep.subr.bf16.mxu0 %v7346_v7  ;;  %v7347_v17 = vld [vmem:[%s9471_s6 + $0x60] ss:$8 sps:$4 sm:$0xff]  }
0x2220   : > { %3873 = vmax.xlane.f32.xlu0 %v3872_v53  ;;  %v7043_v21 = vpop.f32.mrf.mxu0 }
0x2221   : > { %v3868_v46 = vadd.f32 %v6376_v43, %v3861_v20 }
0x2222   : > { %4233 = vmatpush1.bf16.msra.mxu0 %v7344_v9 }
0x2223   : > { %v3875_v12 = vsel %vm707_vm1, %v3868_v46, -inf }
0x2224   : > { %3876 = vmax.xlane.f32.xlu1 %v3875_v12 }
0x22a5   : > { %v3871_v10 = vpop.xlane.xlu1 %3870 }
0x22a6   : > { %v3878_v1 = vsub.f32 %v3866_v8, %v3871_v10 }
0x22a8   : > { %v3881_v14 = vmul.f32 1.442695, %v3878_v1 }
0x22a9   : > { %v3874_v18 = vpop.xlane.xlu0 %3873 }
0x22aa   : > { %7560 = vpow2.f32 %v3881_v14  ;;  %v3879_v28 = vsub.f32 %v3867_v19, %v3874_v18  ;;  %v7349_v19 = vld [vmem:[%s9471_s6 + $0x64] ss:$8 sps:$4 sm:$0xff]   ;;  %v6383_v14 = vld [vmem:[%s9466_s1 + $0x1a] ss:$0 sm:$0xff] }
0x22ab   : > { %4234 = vmatprep.subr.bf16.mxu0 %v7349_v19 }
0x22ac   : > { %v3883_v62 = vmul.f32 1.442695, %v3879_v28  ;;  %4235 = vmatpush1.bf16.msra.mxu0 %v7347_v17 }
0x22ad   : > { %v3877_v31 = vpop.xlane.xlu1 %3876  ;;  %7068 = vmatprep.subr.bf16.mxu0 %v7724_v25 }
0x22ae   : > { %7562 = vpow2.f32 %v3883_v62  ;;  %v3880_v16 = vsub.f32 %v3868_v46, %v3877_v31  ;;  %v6384_v31 = vld [vmem:[%s9466_s1 + $0x1e] ss:$0 sm:$0xff] }
0x22b0   : > { %v3885_v33 = vmul.f32 1.442695, %v3880_v16 }
0x22b2   : > { %7564 = vpow2.f32 %v3885_v33 }
0x22b7   : > { %v7561_v55 = vpop.eup %7560 }
0x22b8   : > { %v3887_v59 = vsel %vm707_vm1, %v7561_v55, 0.0 }
0x22b9   : > { %3888 = vadd.xlane.f32.xlu0 %v3887_v59 }
0x22bb   : > { %v7563_v35 = vpop.eup %7562 }
0x22bc   : > { %v3890_v36 = vsel %vm707_vm1, %v7563_v35, 0.0 }
0x22bd   : > { %3891 = vadd.xlane.f32.xlu1 %v3890_v36 }
0x22bf   : > { %v7565_v37 = vpop.eup %7564 }
0x22c0   : > { %v3893_v38 = vsel %vm707_vm1, %v7565_v37, 0.0 }
0x22c1   : > { %3894 = vadd.xlane.f32.xlu0 %v3893_v38 }
0x2342   : > { %v3889_v39 = vpop.xlane.xlu0 %3888 }
0x2343   : > { %7566 = vrcp.f32 %v3889_v39 }
0x2346   : > { %v3892_v40 = vpop.xlane.xlu1 %3891 }
0x2347   : > { %7568 = vrcp.f32 %v3892_v40 }
0x234a   : > { %v3895_v45 = vpop.xlane.xlu0 %3894 }
0x234b   : > { %7570 = vrcp.f32 %v3895_v45 }
0x2350   : > { %v7567_v47 = vpop.eup %7566 }
0x2351   : > { %v3899_v49 = vmul.f32 %v7567_v47, %v7561_v55 }
0x2353   : > { %v3934_v50 = vmul.f32 %v6377_v48, %v3899_v49 }
0x2354   : > { %v7569_v52 = vpop.eup %7568 }
0x2355   : > { %v3937_v51 = vadd.f32 %v6379_v29, %v3934_v50  ;;  %v3900_v54 = vmul.f32 %v7569_v52, %v7563_v35  ;;  %v8928_v35 = vld [vmem:[%s9468_s3 + $0x2] ss:$4 sm:$0x3] }
0x2357   : > { %3940 = vxpose.xlu1.b32.start [1/3] (short) (narrow) %v3937_v51, 16 }
0x2358   : > { %v7571_v24 = vpop.eup %7570 }
0x2359   : > { %v3901_v56 = vmul.f32 %v7571_v24, %v7565_v37  ;;  %v4180_v37 = vrot.slane %v8928_v35, %v7921_v6 }
0x235b   : > { %3941 = vxpose.xlu1.b32.cont [2/3] (short) (narrow) %v3900_v54, 16  ;;  %v3936_v13 = vmul.f32 %v6378_v11, %v3901_v56 }
0x235f   : > { %3942 = vxpose.xlu1.b32.end [3/3] (short) (narrow) %v3936_v13, 16 }
0x23d3   : > { %v3956_v57 = vpop.trf.xlu1 }
0x23d4   : > { %7050 = vmatprep.mubr.msk.f32.mxu1 %vm772_vm4, %v3956_v57 }
0x23d7   : > { %v3957_v22 = vpop.trf.xlu1 }
0x23d8   : > { %7051 = vmatmul.mubr.msk.f32.vlgmr.msra.gmra.mxu1 %vm772_vm4, %v3957_v22 }
0x23d9   : > { %7054 = vmatpush3.msra.mxu1 %v3936_v13  ;;  %7059 = vmatprep.mubr.msk.f32.mxu1 %vm7727_vm7, %v7724_v25 }
0x23da   : > { %7055 = vmatprep.subr.mxu1 %v7724_v25 }
0x23db   : > { %7056 = vmatpush3.msra.mxu1 %v3900_v54 }
0x23dc   : > { %7057 = vmatprep.subr.mxu1 %v7724_v25 }
0x23dd   : > { %7058 = vmatpush3.msra.mxu1 %v3937_v51 }
0x23de   : > { %7062 = vmatprep.subr.bf16.mxu1 %v7724_v25  ;;  %7060 = vmatmul.mubr.msk.f32.vlgmr.msra.gmra.mxu1 %vm772_vm4, %v7991_v26 }
0x23df   : > { %7064 = vmatprep.mubr.msk.bf16.mxu1 %vm7727_vm7, %v7724_v25 }
0x2498   : > { %v8885_v5 = vpop.f32.mrf.mxu1 }
0x2499   : > { %v4131_v58 = vsel %vm468_vm0, %v8885_v5, 0.0 }
0x249a   : > { %v8887_v41 = vpop.f32.mrf.mxu1 }
0x249b   : > { %v4128_v63 = vsel %vm468_vm0, %v8887_v41, 0.0 }
0x249c   : > { %4129 = vadd.xlane.f32.xlu0 %v4128_v63 }
0x249e   : > { %v8942_v48 = vpop.f32.mrf.mxu1 }
0x24a0   : > { %4132 = vadd.xlane.f32.xlu0 %v4131_v58  ;;  %v7061_v49 = vpop.f32.mrf.mxu1 }
0x2525   : > { %v4130_v32 = vpop.xlane.xlu0 %4129 }
0x2526   : > { %v4134_v34 = vmul.f32 0.020833334, %v4130_v32 }
0x2528   : > { %v4136_v60 = vsub.f32 %v8887_v41, %v4134_v34 }
0x2529   : > { %v4133_v26 = vpop.xlane.xlu0 %4132 }
0x252a   : > { %v4135_v43 = vmul.f32 0.020833334, %v4133_v26  ;;  %v4138_v15 = vmul.f32 %v4136_v60, %v4136_v60 }
0x252c   : > { %v4137_v23 = vsub.f32 %v8885_v5, %v4135_v43  ;;  %v4140_v0 = vsel %vm468_vm0, %v4138_v15, 0.0 }
0x252d   : > { %4141 = vadd.xlane.f32.xlu0 %v4140_v0 }
0x252e   : > { %v4139_v61 = vmul.f32 %v4137_v23, %v4137_v23 }
0x2530   : > { %v4143_v8 = vsel %vm468_vm0, %v4139_v61, 0.0 }
0x2531   : > { %4144 = vadd.xlane.f32.xlu0 %v4143_v8 }
0x25b6   : > { %v4142_v2 = vpop.xlane.xlu0 %4141 }
0x25b7   : > { %v4146_v20 = vmul.f32 0.020833334, %v4142_v2 }
0x25b9   : > { %v4148_v53 = vadd.f32 1e-06, %v4146_v20 }
0x25ba   : > { %v4145_v21 = vpop.xlane.xlu0 %4144 }
0x25bb   : > { %7572 = vrsqrt.f32 %v4148_v53  ;;  %v4147_v46 = vmul.f32 0.020833334, %v4145_v21 }
0x25bd   : > { %v4149_v12 = vadd.f32 1e-06, %v4147_v46 }
0x25bf   : > { %7574 = vrsqrt.f32 %v4149_v12 }
0x25c8   : > { %v7573_v10 = vpop.eup %7572 }
0x25c9   : > { %v4152_v1 = vmul.f32 %v7573_v10, %v4136_v60 }
0x25cb   : > { %v4158_v28 = vmul.f32 %v6383_v14, %v4152_v1 }
0x25cc   : > { %v7575_v18 = vpop.eup %7574 }
0x25cd   : > { %v4153_v62 = vmul.f32 %v7575_v18, %v4137_v23  ;;  %v4164_v33 = vadd.f32 %v6384_v31, %v4158_v28 }
0x25cf   : > { %v4159_v16 = vmul.f32 %v6383_v14, %v4153_v62 }
0x25d1   : > { %v4165_v55 = vadd.f32 %v6384_v31, %v4159_v16 }
0x25d3   : > { %v4173_v59 = vpack.c.bf16 %v4165_v55, %v4164_v33  ;;  %v8985_v55 = vrot.slane %v8942_v48, %v7921_v6 }
0x25d5   : > { %6398 = vmatmul.mubr.msk.bf16.vlgmr.msra.gmra.mxu0 %vm468_vm0, %v4173_v59 }
0x25d6   : > { %7070 = vmatprep.mubr.msk.bf16.mxu0 %vm7727_vm7, %v7724_v25 }
0x2695   : > { %v4254_v36 = vpop.f32.mrf.mxu0 }
0x2696   : > { %v4255_v40 = vadd.f32 %v4254_v36, %v4180_v37 }
0x2697   : > { %v8932_v38 = vpop.f32.mrf.mxu0 }
0x2699   : > { %v4258_v39 = vpop.f32.mrf.mxu0 }
0x269a   : > { %v4259_v45 = vadd.f32 %v4258_v39, %v4180_v37 }
0x269c   : > { %v8934_v47 = vpack.c.bf16 %v4259_v45, %v4255_v40 }
0x269e   : > { %4271 = vrot.lane.b32.xlu0 %v8934_v47, %s9512_s27 }
0x26a2   : > { %4398 = vrot.lane.b32.xlu0 %v8934_v47, %s9515_s24 }
0x26a6   : > { %4396 = vrot.lane.b32.xlu0 %v8934_v47, %s9514_s16 }
0x26aa   : > { %4523 = vrot.lane.b32.xlu0 %v8934_v47, %s9517_s30 }
0x26ae   : > { %4521 = vrot.lane.b32.xlu0 %v8934_v47, %s9516_s23 }
0x2710   : > { %v4272_v29 = vpop.permute.xlu0 %4271 }
0x2711   : > { %v4277_v50 = vsel %vm707_vm1, %v4272_v29, 0 }
0x2712   : > { %7063 = vmatpush3.bf16.xpose.msra.mxu1 %v4277_v50 }
0x2713   : > { %7074 = vmatprep.subr.bf16.mxu1 %v7724_v25 }
0x2714   : > { %v4399_v27 = vpop.permute.xlu0 %4398 }
0x2715   : > { %v4404_v52 = vsel %vm707_vm1, %v4399_v27, 0 }
0x2718   : > { %v4397_v51 = vpop.permute.xlu0 %4396 }
0x2719   : > { %7065 = vmatmul.mubr.msk.bf16.vlgmr.msra.gmra.mxu1 %vm707_vm1, %v8934_v47 }
0x271a   : > { %7075 = vmatpush3.bf16.xpose.msra.mxu1 %v4404_v52  ;;  %7076 = vmatprep.mubr.msk.bf16.mxu1 %vm7727_vm7, %v7724_v25 }
0x271b   : > { %7086 = vmatprep.subr.bf16.mxu1 %v7724_v25 }
0x271c   : > { %v4524_v24 = vpop.permute.xlu0 %4523 }
0x271d   : > { %v4529_v54 = vsel %vm707_vm1, %v4524_v24, 0 }
0x2720   : > { %v4522_v56 = vpop.permute.xlu0 %4521 }
0x2721   : > { %7077 = vmatmul.mubr.msk.bf16.vlgmr.msra.gmra.mxu1 %vm707_vm1, %v4397_v51 }
0x2722   : > { %7087 = vmatpush3.bf16.xpose.msra.mxu1 %v4529_v54  ;;  %7088 = vmatprep.mubr.msk.bf16.mxu1 %vm7727_vm7, %v7724_v25 }
0x2723   : > { %7098 = vmatprep.subr.bf16.mxu1 %v7724_v25 }
0x2729   : > { %7089 = vmatmul.mubr.msk.bf16.vlgmr.msra.gmra.mxu1 %vm707_vm1, %v4522_v56 }
0x272a   : > { %7104 = vmatprep.mubr.msk.bf16.mxu1 %vm7727_vm7, %v7724_v25 }
0x27d9   : > { %v4313_v11 = vpop.f32.mrf.mxu1 }
0x27da   : > { %v4322_v13 = vsel %vm4265_vm13, %v4313_v11, -1e+30 }
0x27db   : > { %v4324_v57 = vsel %vm707_vm1, %v4322_v13, -inf  ;;  %v7066_v22 = vpop.f32.mrf.mxu1 }
0x27dc   : > { %4325 = vmax.xlane.f32.xlu0 %v4324_v57 }
0x27dd   : > { %v4316_v63 = vpop.f32.mrf.mxu1 }
0x27de   : > { %v4323_v58 = vsel %vm4265_vm13, %v4316_v63, -1e+30 }
0x27df   : > { %v4327_v32 = vsel %vm707_vm1, %v4323_v58, -inf  ;;  %v7067_v34 = vpop.f32.mrf.mxu1 }
0x27e0   : > { %4328 = vmax.xlane.f32.xlu1 %v4327_v32 }
0x27e1   : > { %v4440_v60 = vpop.f32.mrf.mxu1 }
0x27e2   : > { %v4447_v26 = vsel %vm4265_vm13, %v4440_v60, -1e+30 }
0x27e3   : > { %v4449_v43 = vsel %vm707_vm1, %v4447_v26, -inf  ;;  %v7078_v15 = vpop.f32.mrf.mxu1 }
0x27e4   : > { %4450 = vmax.xlane.f32.xlu0 %v4449_v43 }
0x27e5   : > { %v4443_v23 = vpop.f32.mrf.mxu1 }
0x27e6   : > { %v4448_v0 = vsel %vm4265_vm13, %v4443_v23, -1e+30 }
0x27e7   : > { %v4452_v61 = vsel %vm707_vm1, %v4448_v0, -inf  ;;  %v7079_v8 = vpop.f32.mrf.mxu1 }
0x27e8   : > { %4453 = vmax.xlane.f32.xlu0 %v4452_v61 }
0x27e9   : > { %v4565_v3 = vpop.f32.mrf.mxu1 }
0x27ea   : > { %v4572_v4 = vsel %vm4265_vm13, %v4565_v3, -1e+30 }
0x27eb   : > { %v4574_v7 = vsel %vm707_vm1, %v4572_v4, -inf  ;;  %v7090_v9 = vpop.f32.mrf.mxu1 }
0x27ec   : > { %4575 = vmax.xlane.f32.xlu0 %v4574_v7  ;;  %v4260_v9 = vpop.f32.mrf.mxu0 }
0x27ed   : > { %v4568_v17 = vpop.f32.mrf.mxu1 }
0x27ee   : > { %v4573_v19 = vsel %vm4265_vm13, %v4568_v17, -1e+30 }
0x27ef   : > { %v4577_v2 = vsel %vm707_vm1, %v4573_v19, -inf  ;;  %v7091_v20 = vpop.f32.mrf.mxu1 }
0x27f0   : > { %4578 = vmax.xlane.f32.xlu1 %v4577_v2 }
0x2865   : > { %v4326_v53 = vpop.xlane.xlu0 %4325 }
0x2866   : > { %v4330_v21 = vsub.f32 %v4322_v13, %v4326_v53 }
0x2868   : > { %v4332_v46 = vmul.f32 1.442695, %v4330_v21 }
0x2869   : > { %v4329_v12 = vpop.xlane.xlu1 %4328 }
0x286a   : > { %7576 = vpow2.f32 %v4332_v46  ;;  %v4331_v10 = vsub.f32 %v4323_v58, %v4329_v12 }
0x286c   : > { %v4334_v1 = vmul.f32 1.442695, %v4331_v10 }
0x286d   : > { %v4451_v14 = vpop.xlane.xlu0 %4450 }
0x286e   : > { %7578 = vpow2.f32 %v4334_v1  ;;  %v4455_v18 = vsub.f32 %v4447_v26, %v4451_v14 }
0x2870   : > { %v4457_v28 = vmul.f32 1.442695, %v4455_v18 }
0x2871   : > { %v4454_v62 = vpop.xlane.xlu0 %4453 }
0x2872   : > { %7580 = vpow2.f32 %v4457_v28  ;;  %v4456_v31 = vsub.f32 %v4448_v0, %v4454_v62 }
0x2874   : > { %v4459_v16 = vmul.f32 1.442695, %v4456_v31 }
0x2875   : > { %v4576_v33 = vpop.xlane.xlu0 %4575 }
0x2876   : > { %7582 = vpow2.f32 %v4459_v16  ;;  %v4580_v59 = vsub.f32 %v4572_v4, %v4576_v33  ;;  %v7351_v33 = vld [vmem:[%s9470_s5 + $0x50] sm:$0xff]  }
0x2877   : > { %v7577_v36 = vpop.eup %7576 }
0x2878   : > { %v4582_v37 = vmul.f32 1.442695, %v4580_v59  ;;  %v4336_v39 = vmul.f32 %v7577_v36, %v8985_v55 }
0x2879   : > { %v4579_v40 = vpop.xlane.xlu1 %4578 }
0x287a   : > { %7584 = vpow2.f32 %v4582_v37  ;;  %v4581_v45 = vsub.f32 %v4573_v19, %v4579_v40  ;;  %v4338_v49 = vsel %vm707_vm1, %v4336_v39, 0.0  ;;  %v4184_v19 = vrot.slane %v8928_v35, %v7951_v30 }
0x287b   : > { %v7579_v29 = vpop.eup %7578  ;;  %4339 = vadd.xlane.f32.xlu0 %v4338_v49 }
0x287c   : > { %v4584_v50 = vmul.f32 1.442695, %v4581_v45  ;;  %v4337_v27 = vmul.f32 %v7579_v29, %v8985_v55  ;;  %v4261_v20 = vadd.f32 %v4260_v9, %v4184_v19  ;;  %v4257_v46 = vadd.f32 %v8932_v38, %v4184_v19  ;;  %v7350_v38 = vld [vmem:[%s9470_s5 + $0x58] sm:$0xff]  }
0x287d   : > { %7099 = vmatpush3.bf16.msra.mxu1 %v7350_v38 }
0x287e   : > { %7586 = vpow2.f32 %v4584_v50  ;;  %v4341_v48 = vsel %vm707_vm1, %v4337_v27, 0.0  ;;  %v4264_v10 = vpack.c.bf16 %v4261_v20, %v4257_v46  ;;  %7100 = vmatprep.subr.bf16.mxu1 %v7724_v25  ;;  %v7353_v46 = vld [vmem:[%s9472_s7 + $0x80] ss:$8 sps:$4 sm:$0xff]  }
0x287f   : > { %v7581_v51 = vpop.eup %7580  ;;  %4342 = vadd.xlane.f32.xlu1 %v4341_v48 }
0x2880   : > { %v4461_v52 = vmul.f32 %v7581_v51, %v8985_v55 }
0x2881   : > { %7101 = vmatpush3.bf16.msra.mxu1 %v7351_v33 }
0x2882   : > { %v4463_v24 = vsel %vm707_vm1, %v4461_v52, 0.0  ;;  %7102 = vmatprep.subr.bf16.mxu1 %v7724_v25 }
0x2883   : > { %v7583_v54 = vpop.eup %7582  ;;  %4464 = vadd.xlane.f32.xlu0 %v4463_v24 }
0x2884   : > { %v4462_v56 = vmul.f32 %v7583_v54, %v8985_v55 }
0x2886   : > { %v4466_v11 = vsel %vm707_vm1, %v4462_v56, 0.0 }
0x2887   : > { %v7585_v13 = vpop.eup %7584  ;;  %4467 = vadd.xlane.f32.xlu1 %v4466_v11 }
0x2888   : > { %v4586_v57 = vmul.f32 %v7585_v13, %v8985_v55 }
0x288a   : > { %v4588_v22 = vsel %vm707_vm1, %v4586_v57, 0.0 }
0x288b   : > { %v7587_v63 = vpop.eup %7586  ;;  %4589 = vadd.xlane.f32.xlu0 %v4588_v22 }
0x288c   : > { %v4587_v58 = vmul.f32 %v7587_v63, %v8985_v55 }
0x288e   : > { %v4591_v32 = vsel %vm707_vm1, %v4587_v58, 0.0 }
0x288f   : > { %4592 = vadd.xlane.f32.xlu1 %v4591_v32 }
0x28a0   : > { %4474 = vrot.lane.b32.xlu1 %v8934_v47, %s9518_s15 }
0x28a1   : > { %4349 = vrot.lane.b32.xlu0 %v8934_v47, %s9513_s17 }
0x2904   : > { %v4340_v34 = vpop.xlane.xlu0 %4339 }
0x2905   : > { %7588 = vrcp.f32 %v4340_v34 }
0x2908   : > { %v4343_v60 = vpop.xlane.xlu1 %4342 }
0x2909   : > { %7590 = vrcp.f32 %v4343_v60  ;;  %v6415_v60 = vld [vmem:[%s9466_s1 + $0x2a] ss:$0 sm:$0xff] }
0x290c   : > { %v4465_v26 = vpop.xlane.xlu0 %4464 }
0x290d   : > { %7592 = vrcp.f32 %v4465_v26 }
0x2910   : > { %v4468_v43 = vpop.xlane.xlu1 %4467 }
0x2911   : > { %7594 = vrcp.f32 %v4468_v43 }
0x2912   : > { %v7589_v15 = vpop.eup %7588 }
0x2913   : > { %v4346_v61 = vmul.f32 %v7589_v15, %v4336_v39  ;;  %v7352_v39 = vld [vmem:[%s9470_s5 + $0x48] sm:$0xff]  }
0x2914   : > { %v4590_v23 = vpop.xlane.xlu0 %4589  ;;  %7103 = vmatpush3.bf16.msra.mxu1 %v7352_v39 }
0x2915   : > { %7596 = vrcp.f32 %v4590_v23  ;;  %5001 = vmatprep.subr.bf16.mxu1 %v7718_v42 }
0x2916   : > { %v7591_v0 = vpop.eup %7590 }
0x2917   : > { %v4347_v8 = vmul.f32 %v7591_v0, %v4337_v27 }
0x2918   : > { %v4593_v3 = vpop.xlane.xlu1 %4592  ;;  %v4350_v4 = vpop.permute.xlu0 %4349 }
0x2919   : > { %7598 = vrcp.f32 %v4593_v3  ;;  %7069 = vmatpush3.bf16.msra.mxu0 %v4350_v4  ;;  %v4348_v7 = vpack.c.bf16 %v4347_v8, %v4346_v61 }
0x291a   : > { %7080 = vmatprep.subr.bf16.mxu0 %v7724_v25  ;;  %v7593_v47 = vpop.eup %7592 }
0x291b   : > { %v4471_v53 = vmul.f32 %v7593_v47, %v4461_v52 }
0x291c   : > { %v4475_v17 = vpop.permute.xlu1 %4474  ;;  %7071 = vmatmul.mubr.msk.bf16.vlgmr.msra.gmra.mxu0 %vm707_vm1, %v4348_v7 }
0x291d   : > { %7081 = vmatpush3.bf16.msra.mxu0 %v4475_v17  ;;  %7082 = vmatprep.mubr.msk.bf16.mxu0 %vm7727_vm7, %v7724_v25 }
0x291e   : > { %v7595_v2 = vpop.eup %7594  ;;  %7092 = vmatprep.subr.bf16.mxu0 %v7724_v25 }
0x291f   : > { %v4472_v21 = vmul.f32 %v7595_v2, %v4462_v56 }
0x2921   : > { %v4473_v12 = vpack.c.bf16 %v4472_v21, %v4471_v53  ;;  %v7355_v21 = vld [vmem:[%s9472_s7 + $0x84] ss:$8 sps:$4 sm:$0xff]  }
0x2922   : > { %v7597_v1 = vpop.eup %7596 }
0x2923   : > { %v4596_v14 = vmul.f32 %v7597_v1, %v4586_v57  ;;  %v7361_v1 = vld [vmem:[%s9472_s7 + $0x64] ss:$8 sps:$4 sm:$0xff]  }
0x2924   : > { %7083 = vmatmul.mubr.msk.bf16.vlgmr.msra.gmra.mxu0 %vm707_vm1, %v4473_v12  ;;  %v7358_v12 = vld [vmem:[%s9472_s7 + $0x74] ss:$8 sps:$4 sm:$0xff]  }
0x2925   : > { %7093 = vmatpush3.bf16.msra.mxu0 %v4264_v10  ;;  %7094 = vmatprep.mubr.msk.bf16.mxu0 %vm7727_vm7, %v7724_v25  ;;  %v7356_v10 = vld [vmem:[%s9472_s7 + $0x70] ss:$8 sps:$4 sm:$0xff]  }
0x2926   : > { %v7599_v35 = vpop.eup %7598  ;;  %4846 = vmatprep.subr.bf16.mxu0 %v7355_v21 }
0x2927   : > { %v4597_v18 = vmul.f32 %v7599_v35, %v4587_v58  ;;  %v7359_v35 = vld [vmem:[%s9472_s7 + $0x60] ss:$8 sps:$4 sm:$0xff]  }
0x2929   : > { %v4598_v28 = vpack.c.bf16 %v4597_v18, %v4596_v14  ;;  %v7362_v14 = vld [vmem:[%s9473_s8 + $0xf8] sm:$0xff]   ;;  %v7363_v18 = vld [vmem:[%s9473_s8 + $0xf0] sm:$0xff]  }
0x292c   : > { %7095 = vmatmul.mubr.msk.bf16.vlgmr.msra.gmra.mxu0 %vm707_vm1, %v4598_v28  ;;  %v7364_v28 = vld [vmem:[%s9473_s8 + $0xe8] sm:$0xff]  }
0x292d   : > { %4868 = vmatprep.mubr.bf16.mxu0 %v7718_v42  ;;  %4847 = vmatpush1.bf16.msra.mxu0 %v7353_v46 }
0x292e   : > { %4848 = vmatprep.subr.bf16.mxu0 %v7358_v12 }
0x2931   : > { %4849 = vmatpush1.bf16.msra.mxu0 %v7356_v10 }
0x2932   : > { %4850 = vmatprep.subr.bf16.mxu0 %v7361_v1 }
0x2935   : > { %4851 = vmatpush1.bf16.msra.mxu0 %v7359_v35 }
0x29dc   : > { %v4389_v62 = vpop.f32.mrf.mxu0 }
0x29de   : > { %v7072_v31 = vpop.f32.mrf.mxu0 }
0x29e0   : > { %v4392_v16 = vpop.f32.mrf.mxu0 }
0x29e2   : > { %v7073_v59 = vpop.f32.mrf.mxu0 }
0x29e4   : > { %v4514_v36 = vpop.f32.mrf.mxu0 }
0x29e6   : > { %v7084_v37 = vpop.f32.mrf.mxu0 }
0x29e8   : > { %v4517_v40 = vpop.f32.mrf.mxu0 }
0x29e9   : > { %v7252_v45 = vpack.i.bf16 %v4517_v40, %v4514_v36  ;;  %v6416_v40 = vld [vmem:[%s9466_s1 + $0x22] ss:$0 sm:$0xff] }
0x29ea   : > { %v7085_v49 = vpop.f32.mrf.mxu0 }
0x29eb   : > { %7253 = vrot.lane.b32.xlu1 %v7252_v45, %s9518_s15 }
0x29ec   : > { %v4636_v29 = vpop.f32.mrf.mxu0 }
0x29ee   : > { %v7096_v50 = vpop.f32.mrf.mxu0 }
0x29ef   : > { %v6417_v50 = vld [vmem:[%s9466_s1 + $0x26] ss:$0 sm:$0xff] }
0x29f0   : > { %v4639_v27 = vpop.f32.mrf.mxu0 }
0x29f1   : > { %v7257_v48 = vpack.i.bf16 %v4639_v27, %v4636_v29 }
0x29f2   : > { %v7097_v51 = vpop.f32.mrf.mxu0 }
0x29f3   : > { %7258 = vrot.lane.b32.xlu0 %v7257_v48, %s9513_s17 }
0x2a5d   : > { %v7254_v52 = vpop.permute.xlu1 %7253 }
0x2a5e   : > { %v7256_v24 = vunpack.i.h.bf16 %v7254_v52  ;;  %v7255_v54 = vunpack.i.l.bf16 %v7254_v52 }
0x2a60   : > { %v4660_v57 = vsel %vm707_vm1, %v4392_v16, %v7256_v24  ;;  %v4659_v22 = vsel %vm707_vm1, %v4389_v62, %v7255_v54  ;;  %v7365_v62 = vld [vmem:[%s9473_s8 + $0xe0] sm:$0xff]   ;;  %v7366_v24 = vld [vmem:[%s9473_s8 + $0xd8] sm:$0xff]   ;;  %v7367_v54 = vld [vmem:[%s9473_s8 + $0xd0] sm:$0xff]  }
0x2a65   : > { %v7259_v56 = vpop.permute.xlu0 %7258 }
0x2a66   : > { %v7261_v11 = vunpack.i.h.bf16 %v7259_v56  ;;  %v7260_v13 = vunpack.i.l.bf16 %v7259_v56  ;;  %v7368_v56 = vld [vmem:[%s9473_s8 + $0xc8] sm:$0xff]  }
0x2a68   : > { %v4662_v63 = vsel %vm1238_vm5, %v4660_v57, %v7261_v11  ;;  %v4661_v58 = vsel %vm1238_vm5, %v4659_v22, %v7260_v13  ;;  %v7369_v11 = vld [vmem:[%s9473_s8 + $0xc0] sm:$0xff]   ;;  %v7370_v13 = vld [vmem:[%s9473_s8 + $0x118] sm:$0xff]   ;;  %v7371_v57 = vld [vmem:[%s9473_s8 + $0x110] sm:$0xff]  }
0x2a69   : > { %v4670_v32 = vpack.c.bf16 %v4662_v63, %v4661_v58  ;;  %v7372_v22 = vld [vmem:[%s9473_s8 + $0x108] sm:$0xff]   ;;  %v7373_v63 = vld [vmem:[%s9473_s8 + $0x100] sm:$0xff]  }
0x2a6a   : > { %v6424_v58 = vld [vmem:[%s9469_s4 + $0x2] ss:$4 sm:$0x3] }
0x2a6b   : > { %7105 = vmatmul.mubr.msk.bf16.vlgmr.msra.gmra.mxu1 %vm468_vm0, %v4670_v32  ;;  %v4796_v32 = vrot.slane %v6424_v58, %v7921_v6 }
0x2a6c   : > { %5002 = vmatpush1.bf16.msra.mxu1 %v7362_v14 }
0x2a6d   : > { %5003 = vmatprep.subr.bf16.mxu1 %v7718_v42 }
0x2a70   : > { %5004 = vmatpush1.bf16.msra.mxu1 %v7363_v18 }
0x2a71   : > { %5005 = vmatprep.subr.bf16.mxu1 %v7718_v42 }
0x2a74   : > { %5006 = vmatpush1.bf16.msra.mxu1 %v7364_v28 }
0x2a75   : > { %5007 = vmatprep.subr.bf16.mxu1 %v7718_v42 }
0x2a78   : > { %5008 = vmatpush1.bf16.msra.mxu1 %v7365_v62 }
0x2a79   : > { %5009 = vmatprep.subr.bf16.mxu1 %v7718_v42 }
0x2a7c   : > { %5010 = vmatpush1.bf16.msra.mxu1 %v7366_v24 }
0x2a7d   : > { %5011 = vmatprep.subr.bf16.mxu1 %v7718_v42 }
0x2a80   : > { %5012 = vmatpush1.bf16.msra.mxu1 %v7367_v54 }
0x2a81   : > { %5013 = vmatprep.subr.bf16.mxu1 %v7718_v42 }
0x2a84   : > { %5014 = vmatpush1.bf16.msra.mxu1 %v7368_v56 }
0x2a85   : > { %5015 = vmatprep.subr.bf16.mxu1 %v7718_v42 }
0x2a88   : > { %5016 = vmatpush1.bf16.msra.mxu1 %v7369_v11 }
0x2a89   : > { %5025 = vmatprep.subr.bf16.mxu1 %v7718_v42 }
0x2a8c   : > { %5026 = vmatpush2.bf16.msra.mxu1 %v7370_v13  ;;  %v7376_v13 = vld [vmem:[%s9471_s6 + $0xb4] ss:$8 sps:$4 sm:$0xff]  }
0x2a8d   : > { %5027 = vmatprep.subr.bf16.mxu1 %v7718_v42  ;;  %5155 = vmatprep.subr.bf16.mxu0 %v7376_v13 }
0x2a90   : > { %5028 = vmatpush2.bf16.msra.mxu1 %v7371_v57  ;;  %v7374_v57 = vld [vmem:[%s9471_s6 + $0xb0] ss:$8 sps:$4 sm:$0xff]  }
0x2a91   : > { %5029 = vmatprep.subr.bf16.mxu1 %v7718_v42 }
0x2a94   : > { %5030 = vmatpush2.bf16.msra.mxu1 %v7372_v22  ;;  %v7379_v22 = vld [vmem:[%s9471_s6 + $0xa4] ss:$8 sps:$4 sm:$0xff]  }
0x2a95   : > { %5031 = vmatprep.subr.bf16.mxu1 %v7718_v42 }
0x2a98   : > { %5032 = vmatpush2.bf16.msra.mxu1 %v7373_v63  ;;  %v7377_v63 = vld [vmem:[%s9471_s6 + $0xa0] ss:$8 sps:$4 sm:$0xff]  }
0x2a99   : > { %7132 = vmatprep.subr.bf16.mxu1 %v7724_v25 }
0x2b2b   : > { %v4726_v34 = vpop.f32.mrf.mxu1 }
0x2b2c   : > { %v4733_v26 = vadd.f32 %v4726_v34, %v8887_v41  ;;  %v4800_v34 = vrot.slane %v6424_v58, %v7951_v30  ;;  %v7382_v58 = vld [vmem:[%s9471_s6 + $0x94] ss:$8 sps:$4 sm:$0xff]  }
0x2b2d   : > { %v7106_v43 = vpop.f32.mrf.mxu1 }
0x2b2e   : > { %v9039_v15 = vadd.f32 %v6415_v60, %v4733_v26 }
0x2b2f   : > { %v4729_v23 = vpop.f32.mrf.mxu1 }
0x2b30   : > { %v4734_v0 = vadd.f32 %v8885_v5, %v4729_v23  ;;  %v4744_v61 = vsel %vm468_vm0, %v9039_v15, 0.0 }
0x2b31   : > { %4745 = vadd.xlane.f32.xlu1 %v4744_v61  ;;  %v7107_v8 = vpop.f32.mrf.mxu1 }
0x2b32   : > { %v9044_v3 = vadd.f32 %v6415_v60, %v4734_v0 }
0x2b34   : > { %v4747_v4 = vsel %vm468_vm0, %v9044_v3, 0.0 }
0x2b35   : > { %4748 = vadd.xlane.f32.xlu0 %v4747_v4 }
0x2bba   : > { %v4746_v7 = vpop.xlane.xlu1 %4745 }
0x2bbb   : > { %v4750_v47 = vmul.f32 0.020833334, %v4746_v7 }
0x2bbd   : > { %v4752_v41 = vsub.f32 %v9039_v15, %v4750_v47 }
0x2bbe   : > { %v4749_v9 = vpop.xlane.xlu0 %4748 }
0x2bbf   : > { %v4751_v17 = vmul.f32 0.020833334, %v4749_v9  ;;  %v4754_v19 = vmul.f32 %v4752_v41, %v4752_v41 }
0x2bc1   : > { %v4753_v5 = vsub.f32 %v9044_v3, %v4751_v17  ;;  %v4756_v2 = vsel %vm468_vm0, %v4754_v19, 0.0 }
0x2bc2   : > { %4757 = vadd.xlane.f32.xlu0 %v4756_v2 }
0x2bc3   : > { %v4755_v20 = vmul.f32 %v4753_v5, %v4753_v5 }
0x2bc5   : > { %v4759_v53 = vsel %vm468_vm0, %v4755_v20, 0.0 }
0x2bc6   : > { %4760 = vadd.xlane.f32.xlu1 %v4759_v53 }
0x2c4b   : > { %v4758_v31 = vpop.xlane.xlu0 %4757 }
0x2c4c   : > { %v4762_v38 = vmul.f32 0.020833334, %v4758_v31 }
0x2c4e   : > { %v4764_v16 = vadd.f32 1e-06, %v4762_v38 }
0x2c4f   : > { %v4761_v33 = vpop.xlane.xlu1 %4760 }
0x2c50   : > { %7600 = vrsqrt.f32 %v4764_v16  ;;  %v4763_v59 = vmul.f32 0.020833334, %v4761_v33  ;;  %v6469_v33 = vld [vmem:[%s9466_s1 + $0x2e] ss:$0 sm:$0xff] }
0x2c52   : > { %v4765_v36 = vadd.f32 1e-06, %v4763_v59 }
0x2c54   : > { %7602 = vrsqrt.f32 %v4765_v36 }
0x2c5d   : > { %v7601_v37 = vpop.eup %7600 }
0x2c5e   : > { %v4768_v39 = vmul.f32 %v7601_v37, %v4752_v41 }
0x2c60   : > { %v4774_v29 = vmul.f32 %v6416_v40, %v4768_v39 }
0x2c61   : > { %v7603_v45 = vpop.eup %7602 }
0x2c62   : > { %v4769_v49 = vmul.f32 %v7603_v45, %v4753_v5  ;;  %v4780_v48 = vadd.f32 %v6417_v50, %v4774_v29 }
0x2c64   : > { %v4775_v27 = vmul.f32 %v6416_v40, %v4769_v49 }
0x2c66   : > { %v4781_v51 = vadd.f32 %v6417_v50, %v4775_v27 }
0x2c68   : > { %v4789_v52 = vpack.c.bf16 %v4781_v51, %v4780_v48 }
0x2c6a   : > { %6431 = vmatmul.mubr.msk.bf16.vlgmr.msra.gmra.mxu0 %vm468_vm0, %v4789_v52 }
0x2c6b   : > { %5177 = vmatprep.mubr.bf16.mxu0 %v7718_v42  ;;  %5156 = vmatpush1.bf16.msra.mxu0 %v7374_v57 }
0x2c6c   : > { %5157 = vmatprep.subr.bf16.mxu0 %v7379_v22 }
0x2c6f   : > { %5158 = vmatpush1.bf16.msra.mxu0 %v7377_v63 }
0x2c70   : > { %5159 = vmatprep.subr.bf16.mxu0 %v7382_v58 }
0x2d2a   : > { %v4870_v60 = vpop.f32.mrf.mxu0 }
0x2d2b   : > { %v4871_v26 = vadd.f32 %v4870_v60, %v4796_v32 }
0x2d2c   : > { %v4872_v43 = vpop.f32.mrf.mxu0 }
0x2d2d   : > { %v4873_v23 = vadd.f32 %v4872_v43, %v4800_v34  ;;  %v4883_v0 = vmul.f32 0.70710677, %v4871_v26  ;;  %v4879_v35 = vmul.f32 0.5, %v4871_v26 }
0x2d2e   : > { %v4874_v61 = vpop.f32.mrf.mxu0 }
0x2d2f   : > { %v4884_v8 = vmul.f32 0.70710677, %v4873_v23  ;;  %v4875_v4 = vadd.f32 %v4874_v61, %v4796_v32  ;;  %v4880_v12 = vmul.f32 0.5, %v4873_v23  ;;  %v7380_v32 = vld [vmem:[%s9471_s6 + $0x90] ss:$8 sps:$4 sm:$0xff]  }
0x2d30   : > { %v4876_v7 = vpop.f32.mrf.mxu0  ;;  %5160 = vmatpush1.bf16.msra.mxu0 %v7380_v32 }
0x2d31   : > { %7604 = verf.f32 %v4884_v8  ;;  %v4885_v47 = vmul.f32 0.70710677, %v4875_v4  ;;  %v4877_v41 = vadd.f32 %v4876_v7, %v4800_v34  ;;  %v4881_v46 = vmul.f32 0.5, %v4875_v4  ;;  %7108 = vmatprep.subr.bf16.mxu0 %v7724_v25  ;;  %v6470_v4 = vld [vmem:[%s9466_s1 + $0x1b] ss:$0 sm:$0xff] }
0x2d32   : > { %7606 = verf.f32 %v4883_v0 }
0x2d33   : > { %7608 = verf.f32 %v4885_v47  ;;  %v4886_v9 = vmul.f32 0.70710677, %v4877_v41  ;;  %v4882_v10 = vmul.f32 0.5, %v4877_v41 }
0x2d35   : > { %7610 = verf.f32 %v4886_v9  ;;  %v6471_v9 = vld [vmem:[%s9466_s1 + $0x1f] ss:$0 sm:$0xff] }
0x2d3e   : > { %v7605_v17 = vpop.eup %7604 }
0x2d3f   : > { %v7607_v19 = vpop.eup %7606  ;;  %v4892_v2 = vadd.f32 1.0, %v7605_v17 }
0x2d40   : > { %v7609_v5 = vpop.eup %7608  ;;  %v4891_v21 = vadd.f32 1.0, %v7607_v19 }
0x2d41   : > { %v4893_v20 = vadd.f32 1.0, %v7609_v5  ;;  %v4896_v18 = vmul.f32 %v4892_v2, %v4880_v12 }
0x2d42   : > { %v7611_v53 = vpop.eup %7610  ;;  %v4895_v62 = vmul.f32 %v4891_v21, %v4879_v35 }
0x2d43   : > { %v4894_v1 = vadd.f32 1.0, %v7611_v53  ;;  %v4897_v14 = vmul.f32 %v4893_v20, %v4881_v46  ;;  %v9182_v20 = vld [vmem:[%s9468_s3 + $0x3] ss:$4 sm:$0x3] }
0x2d44   : > { %v5105_v21 = vrot.slane %v9182_v20, %v7921_v6 }
0x2d45   : > { %v4898_v28 = vmul.f32 %v4894_v1, %v4882_v10  ;;  %v4924_v38 = vpack.c.bf16 %v4897_v14, %v4895_v62 }
0x2d47   : > { %v4925_v31 = vpack.c.bf16 %v4898_v28, %v4896_v18 }
0x2d49   : > { %6468 = vmatprep.mubr.msk.bf16.mxu1 %vm1626_vm6, %v4925_v31 }
0x2d4a   : > { %5034 = vmatmul.mubr.bf16.vlgmr.msra.gmra.mxu1 %v4924_v38 }
0x2d4b   : > { %7134 = vmatprep.mubr.msk.bf16.mxu1 %vm7727_vm7, %v7724_v25 }
0x2e0a   : > { %v5035_v16 = vpop.f32.mrf.mxu1 }
0x2e0b   : > { %v5042_v59 = vadd.f32 %v5035_v16, %v9039_v15 }
0x2e0c   : > { %v5037_v36 = vpop.f32.mrf.mxu1 }
0x2e0d   : > { %v9138_v37 = vadd.f32 %v6469_v33, %v5042_v59 }
0x2e0e   : > { %v5038_v39 = vpop.f32.mrf.mxu1 }
0x2e0f   : > { %v5043_v40 = vadd.f32 %v5038_v39, %v9044_v3  ;;  %v5053_v45 = vsel %vm468_vm0, %v9138_v37, 0.0 }
0x2e10   : > { %5054 = vadd.xlane.f32.xlu0 %v5053_v45  ;;  %v5040_v49 = vpop.f32.mrf.mxu1 }
0x2e11   : > { %v9143_v29 = vadd.f32 %v6469_v33, %v5043_v40 }
0x2e13   : > { %v5056_v50 = vsel %vm468_vm0, %v9143_v29, 0.0 }
0x2e14   : > { %5057 = vadd.xlane.f32.xlu1 %v5056_v50 }
0x2e99   : > { %v5055_v27 = vpop.xlane.xlu0 %5054 }
0x2e9a   : > { %v5059_v48 = vmul.f32 0.020833334, %v5055_v27 }
0x2e9c   : > { %v5061_v15 = vsub.f32 %v9138_v37, %v5059_v48 }
0x2e9d   : > { %v5058_v51 = vpop.xlane.xlu1 %5057 }
0x2e9e   : > { %v5060_v52 = vmul.f32 0.020833334, %v5058_v51  ;;  %v5063_v24 = vmul.f32 %v5061_v15, %v5061_v15 }
0x2ea0   : > { %v5062_v3 = vsub.f32 %v9143_v29, %v5060_v52  ;;  %v5065_v54 = vsel %vm468_vm0, %v5063_v24, 0.0 }
0x2ea1   : > { %5066 = vadd.xlane.f32.xlu0 %v5065_v54 }
0x2ea2   : > { %v5064_v56 = vmul.f32 %v5062_v3, %v5062_v3 }
0x2ea4   : > { %v5068_v11 = vsel %vm468_vm0, %v5064_v56, 0.0 }
0x2ea5   : > { %5069 = vadd.xlane.f32.xlu1 %v5068_v11 }
0x2f2a   : > { %v5067_v34 = vpop.xlane.xlu0 %5066 }
0x2f2b   : > { %v5071_v60 = vmul.f32 0.020833334, %v5067_v34 }
0x2f2d   : > { %v5073_v26 = vadd.f32 1e-06, %v5071_v60 }
0x2f2e   : > { %v5070_v43 = vpop.xlane.xlu1 %5069 }
0x2f2f   : > { %7612 = vrsqrt.f32 %v5073_v26  ;;  %v5072_v23 = vmul.f32 0.020833334, %v5070_v43 }
0x2f31   : > { %v5074_v0 = vadd.f32 1e-06, %v5072_v23 }
0x2f33   : > { %7614 = vrsqrt.f32 %v5074_v0 }
0x2f3c   : > { %v7613_v61 = vpop.eup %7612 }
0x2f3d   : > { %v5077_v8 = vmul.f32 %v7613_v61, %v5061_v15 }
0x2f3f   : > { %v5083_v41 = vmul.f32 %v6470_v4, %v5077_v8 }
0x2f40   : > { %v7615_v7 = vpop.eup %7614 }
0x2f41   : > { %v5078_v47 = vmul.f32 %v7615_v7, %v5062_v3  ;;  %v5089_v19 = vadd.f32 %v6471_v9, %v5083_v41 }
0x2f43   : > { %v5084_v17 = vmul.f32 %v6470_v4, %v5078_v47 }
0x2f45   : > { %v5090_v5 = vadd.f32 %v6471_v9, %v5084_v17 }
0x2f47   : > { %v5098_v2 = vpack.c.bf16 %v5090_v5, %v5089_v19 }
0x2f49   : > { %6485 = vmatmul.mubr.msk.bf16.vlgmr.msra.gmra.mxu0 %vm468_vm0, %v5098_v2 }
0x2f4a   : > { %7110 = vmatprep.mubr.msk.bf16.mxu0 %vm7727_vm7, %v7724_v25 }
0x3009   : > { %v5179_v53 = vpop.f32.mrf.mxu0 }
0x300a   : > { %v5180_v10 = vadd.f32 %v5179_v53, %v5105_v21 }
0x300b   : > { %v9186_v46 = vpop.f32.mrf.mxu0 }
0x300d   : > { %v5183_v12 = vpop.f32.mrf.mxu0 }
0x300e   : > { %v5184_v1 = vadd.f32 %v5183_v12, %v5105_v21 }
0x300f   : > { %v9211_v33 = vpop.f32.mrf.mxu0 }
0x3010   : > { %v9188_v35 = vpack.c.bf16 %v5184_v1, %v5180_v10 }
0x3012   : > { %5191 = vrot.lane.b32.xlu0 %v9188_v35, %s9512_s27  ;;  %s6098_s27 = sshll.u32 %s432_s20, 4  ;;  %s9426_s27 = int_to_ptr.vmem [resolvable:$true] %s6098_s27 }
0x3016   : > { %5316 = vrot.lane.b32.xlu0 %v9188_v35, %s9515_s24 }
0x301a   : > { %5314 = vrot.lane.b32.xlu0 %v9188_v35, %s9514_s16 }
0x301e   : > { %5441 = vrot.lane.b32.xlu0 %v9188_v35, %s9517_s30 }
0x3022   : > { %5439 = vrot.lane.b32.xlu0 %v9188_v35, %s9516_s23  ;;  %s9520_s23 = sld [smem:[#allocation13_spill]] }
0x3028   : > { %s9424_s30 = scalar_lea.hbm %s9520_s23, %s6564_s19 }
0x3084   : > { %v5192_v14 = vpop.permute.xlu0 %5191 }
0x3085   : > { %v5197_v18 = vsel %vm707_vm1, %v5192_v14, 0 }
0x3086   : > { %7109 = vmatpush3.bf16.xpose.msra.mxu0 %v5197_v18 }
0x3087   : > { %7114 = vmatprep.subr.bf16.mxu0 %v7724_v25 }
0x3088   : > { %v5317_v28 = vpop.permute.xlu0 %5316 }
0x3089   : > { %v5322_v7 = vsel %vm707_vm1, %v5317_v28, 0 }
0x308c   : > { %v5315_v62 = vpop.permute.xlu0 %5314 }
0x308d   : > { %7111 = vmatmul.mubr.msk.bf16.vlgmr.msra.gmra.mxu0 %vm707_vm1, %v9188_v35 }
0x308e   : > { %7116 = vmatprep.mubr.msk.bf16.mxu0 %vm7727_vm7, %v7724_v25 }
0x3090   : > { %v5442_v31 = vpop.permute.xlu0 %5441 }
0x3091   : > { %v5447_v38 = vsel %vm707_vm1, %v5442_v31, 0 }
0x3092   : > { %7133 = vmatpush3.bf16.xpose.msra.mxu1 %v5447_v38 }
0x3093   : > { %7144 = vmatprep.subr.bf16.mxu1 %v7724_v25 }
0x3094   : > { %v5440_v16 = vpop.permute.xlu0 %5439 }
0x3099   : > { %7135 = vmatmul.mubr.msk.bf16.vlgmr.msra.gmra.mxu1 %vm707_vm1, %v5440_v16 }
0x309a   : > { %7150 = vmatprep.mubr.msk.bf16.mxu1 %vm7727_vm7, %v7724_v25 }
0x314d   : > { %v5233_v59 = vpop.f32.mrf.mxu0 }
0x314e   : > { %v5240_v36 = vsel %vm4265_vm13, %v5233_v59, -1e+30 }
0x314f   : > { %v5242_v39 = vsel %vm707_vm1, %v5240_v36, -inf  ;;  %v7112_v40 = vpop.f32.mrf.mxu0 }
0x3150   : > { %5243 = vmax.xlane.f32.xlu1 %v5242_v39 }
0x3151   : > { %v5236_v45 = vpop.f32.mrf.mxu0 }
0x3152   : > { %v5241_v49 = vsel %vm4265_vm13, %v5236_v45, -1e+30 }
0x3153   : > { %v5245_v50 = vsel %vm707_vm1, %v5241_v49, -inf  ;;  %v7113_v27 = vpop.f32.mrf.mxu0 }
0x3154   : > { %5246 = vmax.xlane.f32.xlu1 %v5245_v50 }
0x3159   : > { %v5483_v48 = vpop.f32.mrf.mxu1 }
0x315a   : > { %v5490_v28 = vsel %vm4265_vm13, %v5483_v48, -1e+30 }
0x315b   : > { %v7136_v15 = vpop.f32.mrf.mxu1 }
0x315d   : > { %v5486_v51 = vpop.f32.mrf.mxu1 }
0x315e   : > { %v5491_v21 = vsel %vm4265_vm13, %v5486_v51, -1e+30 }
0x315f   : > { %v7137_v52 = vpop.f32.mrf.mxu1  ;;  %v5495_v1 = vsel %vm707_vm1, %v5491_v21, -inf }
0x31d9   : > { %v5244_v24 = vpop.xlane.xlu1 %5243 }
0x31da   : > { %v5248_v3 = vsub.f32 %v5240_v36, %v5244_v24 }
0x31dc   : > { %v5250_v54 = vmul.f32 1.442695, %v5248_v3 }
0x31dd   : > { %v5247_v56 = vpop.xlane.xlu1 %5246 }
0x31de   : > { %7616 = vpow2.f32 %v5250_v54  ;;  %v5249_v11 = vsub.f32 %v5241_v49, %v5247_v56 }
0x31e0   : > { %v5252_v13 = vmul.f32 1.442695, %v5249_v11 }
0x31e2   : > { %7618 = vpow2.f32 %v5252_v13 }
0x31eb   : > { %v7617_v57 = vpop.eup %7616 }
0x31ec   : > { %v5254_v22 = vmul.f32 %v7617_v57, %v8985_v55 }
0x31ee   : > { %v5256_v63 = vsel %vm707_vm1, %v5254_v22, 0.0 }
0x31ef   : > { %v7619_v58 = vpop.eup %7618  ;;  %5257 = vadd.xlane.f32.xlu1 %v5256_v63 }
0x31f0   : > { %v5255_v32 = vmul.f32 %v7619_v58, %v8985_v55 }
0x31f2   : > { %v5259_v34 = vsel %vm707_vm1, %v5255_v32, 0.0 }
0x31f3   : > { %5260 = vadd.xlane.f32.xlu1 %v5259_v34 }
0x3204   : > { %5267 = vrot.lane.b32.xlu1 %v9188_v35, %s9513_s17 }
0x3278   : > { %v5258_v60 = vpop.xlane.xlu1 %5257 }
0x3279   : > { %7620 = vrcp.f32 %v5258_v60 }
0x327c   : > { %v5261_v26 = vpop.xlane.xlu1 %5260 }
0x327d   : > { %7622 = vrcp.f32 %v5261_v26  ;;  %v5109_v26 = vrot.slane %v9182_v20, %v7951_v30 }
0x3280   : > { %v5268_v43 = vpop.permute.xlu1 %5267 }
0x3281   : > { %7115 = vmatpush3.bf16.msra.mxu0 %v5268_v43 }
0x3282   : > { %7120 = vmatprep.subr.bf16.mxu0 %v7724_v25 }
0x3286   : > { %v7621_v23 = vpop.eup %7620 }
0x3287   : > { %v5264_v61 = vmul.f32 %v7621_v23, %v5254_v22  ;;  %v5186_v23 = vadd.f32 %v9211_v33, %v5109_v26  ;;  %v7384_v33 = vld [vmem:[%s9470_s5 + $0x68] sm:$0xff]  }
0x328a   : > { %v7623_v0 = vpop.eup %7622 }
0x328b   : > { %v5265_v8 = vmul.f32 %v7623_v0, %v5255_v32 }
0x328d   : > { %v5266_v4 = vpack.c.bf16 %v5265_v8, %v5264_v61  ;;  %v5182_v61 = vadd.f32 %v9186_v46, %v5109_v26  ;;  %v7383_v46 = vld [vmem:[%s9470_s5 + $0x70] sm:$0xff]   ;;  %v7391_v26 = vld [vmem:[%s9472_s7 + $0xa4] ss:$8 sps:$4 sm:$0xff]  }
0x328e   : > { %7145 = vmatpush3.bf16.msra.mxu1 %v7383_v46 }
0x328f   : > { %7117 = vmatmul.mubr.msk.bf16.vlgmr.msra.gmra.mxu0 %vm707_vm1, %v5266_v4  ;;  %7146 = vmatprep.subr.bf16.mxu1 %v7724_v25 }
0x3290   : > { %7121 = vmatpush3.bf16.xpose.msra.mxu0 %v5322_v7  ;;  %7122 = vmatprep.mubr.msk.bf16.mxu0 %vm7727_vm7, %v7724_v25  ;;  %v5189_v7 = vpack.c.bf16 %v5186_v23, %v5182_v61  ;;  %v7392_v23 = vld [vmem:[%s9472_s7 + $0x90] ss:$8 sps:$4 sm:$0xff]  }
0x3291   : > { %7126 = vmatprep.subr.bf16.mxu0 %v7724_v25  ;;  %v7396_v61 = vld [vmem:[%s9473_s8 + $0x150] sm:$0xff]  }
0x3292   : > { %7147 = vmatpush3.bf16.msra.mxu1 %v7384_v33 }
0x3293   : > { %7148 = vmatprep.subr.bf16.mxu1 %v7724_v25 }
0x3297   : > { %7123 = vmatmul.mubr.msk.bf16.vlgmr.msra.gmra.mxu0 %vm707_vm1, %v5315_v62  ;;  %v5492_v62 = vsel %vm707_vm1, %v5490_v28, -inf }
0x3298   : > { %7128 = vmatprep.mubr.msk.bf16.mxu0 %vm7727_vm7, %v7724_v25 }
0x334f   : > { %v9234_v47 = vpop.f32.mrf.mxu0 }
0x3351   : > { %v7118_v41 = vpop.f32.mrf.mxu0 }
0x3353   : > { %v9236_v9 = vpop.f32.mrf.mxu0 }
0x3355   : > { %v7119_v17 = vpop.f32.mrf.mxu0 }
0x3357   : > { %v5358_v19 = vpop.f32.mrf.mxu0 }
0x3358   : > { %v5365_v5 = vsel %vm4265_vm13, %v5358_v19, -1e+30 }
0x3359   : > { %v5367_v2 = vsel %vm707_vm1, %v5365_v5, -inf  ;;  %v7124_v53 = vpop.f32.mrf.mxu0 }
0x335a   : > { %5368 = vmax.xlane.f32.xlu1 %v5367_v2  ;;  %v7385_v53 = vld [vmem:[%s9470_s5 + $0x60] sm:$0xff]  }
0x335b   : > { %v5361_v12 = vpop.f32.mrf.mxu0  ;;  %7149 = vmatpush3.bf16.msra.mxu1 %v7385_v53 }
0x335c   : > { %v5366_v10 = vsel %vm4265_vm13, %v5361_v12, -1e+30  ;;  %5919 = vmatprep.subr.bf16.mxu1 %v7718_v42 }
0x335d   : > { %v5370_v14 = vsel %vm707_vm1, %v5366_v10, -inf  ;;  %v7125_v18 = vpop.f32.mrf.mxu0 }
0x335e   : > { %5371 = vmax.xlane.f32.xlu0 %v5370_v14  ;;  %5496 = vmax.xlane.f32.xlu1 %v5495_v1 }
0x3362   : > { %5493 = vmax.xlane.f32.xlu0 %v5492_v62 }
0x33e3   : > { %v5369_v31 = vpop.xlane.xlu1 %5368 }
0x33e4   : > { %v5373_v38 = vsub.f32 %v5365_v5, %v5369_v31 }
0x33e6   : > { %v5375_v16 = vmul.f32 1.442695, %v5373_v38 }
0x33e7   : > { %v5372_v59 = vpop.xlane.xlu0 %5371  ;;  %v5497_v36 = vpop.xlane.xlu1 %5496 }
0x33e8   : > { %7624 = vpow2.f32 %v5375_v16  ;;  %v5374_v39 = vsub.f32 %v5366_v10, %v5372_v59  ;;  %v5499_v40 = vsub.f32 %v5491_v21, %v5497_v36 }
0x33ea   : > { %v5377_v45 = vmul.f32 1.442695, %v5374_v39  ;;  %v5502_v49 = vmul.f32 1.442695, %v5499_v40 }
0x33eb   : > { %v5494_v50 = vpop.xlane.xlu0 %5493 }
0x33ec   : > { %7626 = vpow2.f32 %v5377_v45  ;;  %v5498_v27 = vsub.f32 %v5490_v28, %v5494_v50 }
0x33ed   : > { %7628 = vpow2.f32 %v5502_v49 }
0x33ee   : > { %v5500_v44 = vmul.f32 1.442695, %v5498_v27 }
0x33f0   : > { %7630 = vpow2.f32 %v5500_v44 }
0x33f5   : > { %v7625_v48 = vpop.eup %7624 }
0x33f6   : > { %v5379_v15 = vmul.f32 %v7625_v48, %v8985_v55  ;;  %v6502_v48 = vld [vmem:[%s9466_s1 + $0x2b] ss:$0 sm:$0xff] }
0x33f8   : > { %v5381_v51 = vsel %vm707_vm1, %v5379_v15, 0.0 }
0x33f9   : > { %v7627_v52 = vpop.eup %7626  ;;  %5382 = vadd.xlane.f32.xlu0 %v5381_v51 }
0x33fa   : > { %v7629_v24 = vpop.eup %7628  ;;  %v5380_v3 = vmul.f32 %v7627_v52, %v8985_v55 }
0x33fb   : > { %v5505_v56 = vmul.f32 %v7629_v24, %v8985_v55 }
0x33fc   : > { %v5384_v54 = vsel %vm707_vm1, %v5380_v3, 0.0 }
0x33fd   : > { %v7631_v11 = vpop.eup %7630  ;;  %5385 = vadd.xlane.f32.xlu1 %v5384_v54  ;;  %v5509_v22 = vsel %vm707_vm1, %v5505_v56, 0.0 }
0x33fe   : > { %v5504_v13 = vmul.f32 %v7631_v11, %v8985_v55 }
0x3400   : > { %v5506_v57 = vsel %vm707_vm1, %v5504_v13, 0.0 }
0x3401   : > { %5507 = vadd.xlane.f32.xlu0 %v5506_v57  ;;  %5510 = vadd.xlane.f32.xlu1 %v5509_v22 }
0x3417   : > { %5392 = vrot.lane.b32.xlu0 %v9188_v35, %s9518_s15 }
0x3482   : > { %v5383_v63 = vpop.xlane.xlu0 %5382 }
0x3483   : > { %7632 = vrcp.f32 %v5383_v63 }
0x3486   : > { %v5386_v58 = vpop.xlane.xlu1 %5385 }
0x3487   : > { %7634 = vrcp.f32 %v5386_v58 }
0x348a   : > { %v5508_v32 = vpop.xlane.xlu0 %5507  ;;  %v5511_v34 = vpop.xlane.xlu1 %5510 }
0x348b   : > { %7636 = vrcp.f32 %v5508_v32 }
0x348c   : > { %7638 = vrcp.f32 %v5511_v34 }
0x348e   : > { %v5393_v60 = vpop.permute.xlu0 %5392 }
0x348f   : > { %7127 = vmatpush3.bf16.msra.mxu0 %v5393_v60  ;;  %v7388_v60 = vld [vmem:[%s9472_s7 + $0xb4] ss:$8 sps:$4 sm:$0xff]  }
0x3490   : > { %7138 = vmatprep.subr.bf16.mxu0 %v7724_v25  ;;  %v7633_v55 = vpop.eup %7632 }
0x3491   : > { %v5389_v35 = vmul.f32 %v7633_v55, %v5379_v15  ;;  %v7386_v55 = vld [vmem:[%s9472_s7 + $0xb0] ss:$8 sps:$4 sm:$0xff]  }
0x3494   : > { %v7635_v43 = vpop.eup %7634 }
0x3495   : > { %v5390_v0 = vmul.f32 %v7635_v43, %v5380_v3  ;;  %v7389_v43 = vld [vmem:[%s9472_s7 + $0xa0] ss:$8 sps:$4 sm:$0xff]  }
0x3497   : > { %v5391_v8 = vpack.c.bf16 %v5390_v0, %v5389_v35  ;;  %v7394_v35 = vld [vmem:[%s9472_s7 + $0x94] ss:$8 sps:$4 sm:$0xff]  }
0x3498   : > { %v7637_v4 = vpop.eup %7636  ;;  %v7395_v0 = vld [vmem:[%s9473_s8 + $0x158] sm:$0xff]  }
0x3499   : > { %v7639_v41 = vpop.eup %7638  ;;  %7129 = vmatmul.mubr.msk.bf16.vlgmr.msra.gmra.mxu0 %vm707_vm1, %v5391_v8  ;;  %v5514_v17 = vmul.f32 %v7637_v4, %v5504_v13  ;;  %v7397_v8 = vld [vmem:[%s9473_s8 + $0x148] sm:$0xff]   ;;  %v7398_v4 = vld [vmem:[%s9473_s8 + $0x140] sm:$0xff]  }
0x349a   : > { %7139 = vmatpush3.bf16.msra.mxu0 %v5189_v7  ;;  %7140 = vmatprep.mubr.msk.bf16.mxu0 %vm7727_vm7, %v7724_v25  ;;  %v5515_v19 = vmul.f32 %v7639_v41, %v5505_v56 }
0x349b   : > { %5764 = vmatprep.subr.bf16.mxu0 %v7388_v60 }
0x349c   : > { %v5516_v20 = vpack.c.bf16 %v5515_v19, %v5514_v17 }
0x34a1   : > { %7141 = vmatmul.mubr.msk.bf16.vlgmr.msra.gmra.mxu0 %vm707_vm1, %v5516_v20 }
0x34a2   : > { %5786 = vmatprep.mubr.bf16.mxu0 %v7718_v42  ;;  %5765 = vmatpush1.bf16.msra.mxu0 %v7386_v55 }
0x34a3   : > { %5766 = vmatprep.subr.bf16.mxu0 %v7391_v26 }
0x34a6   : > { %5767 = vmatpush1.bf16.msra.mxu0 %v7389_v43 }
0x34a7   : > { %5768 = vmatprep.subr.bf16.mxu0 %v7394_v35 }
0x34aa   : > { %5769 = vmatpush1.bf16.msra.mxu0 %v7392_v23 }
0x34ab   : > { %7154 = vmatprep.subr.bf16.mxu0 %v7724_v25 }
0x3559   : > { %v5432_v5 = vpop.f32.mrf.mxu0 }
0x355b   : > { %v7130_v2 = vpop.f32.mrf.mxu0 }
0x355c   : > { %v6503_v2 = vld [vmem:[%s9466_s1 + $0x23] ss:$0 sm:$0xff] }
0x355d   : > { %v5435_v21 = vpop.f32.mrf.mxu0 }
0x355e   : > { %v7262_v12 = vpack.i.bf16 %v5435_v21, %v5432_v5 }
0x355f   : > { %v7131_v10 = vpop.f32.mrf.mxu0 }
0x3560   : > { %7263 = vrot.lane.b32.xlu1 %v7262_v12, %s9518_s15  ;;  %v6504_v10 = vld [vmem:[%s9466_s1 + $0x27] ss:$0 sm:$0xff]  ;;  %s7660_s15 = sshll.u32 %s7728_s29, 4  ;;  %s7661_s15 = int_to_ptr.vmem [resolvable:$false] %s7660_s15 }
0x3561   : > { %v5554_v1 = vpop.f32.mrf.mxu0  ;;  %s7662_s22 = scalar_lea.vmem %s7661_s15, 32  ;;  %p7663_p0 = scmp.lt.s32.totalorder %s9426_s27, %s7661_s15 }
0x3563   : > { %v7142_v14 = vpop.f32.mrf.mxu0 }
0x3565   : > { %v5557_v18 = vpop.f32.mrf.mxu0 }
0x3566   : > { %v7267_v28 = vpack.i.bf16 %v5557_v18, %v5554_v1 }
0x3567   : > { %v7143_v62 = vpop.f32.mrf.mxu0 }
0x3568   : > { %7268 = vrot.lane.b32.xlu1 %v7267_v28, %s9513_s17  ;;  %v7399_v62 = vld [vmem:[%s9473_s8 + $0x138] sm:$0xff]   ;;  %s7656_s17 = scalar_lea.vmem %s9426_s27, 16 }
0x3569   : > { %p7657_p11 = scmp.ne.s32.totalorder %s9426_s27, %s7656_s17  ;;  %p7664_p1 = scmp.lt.s32.totalorder %s7662_s22, %s7656_s17 }
0x356b   : > { %p7658_p12 = pnand %p7657_p11, %p7837_p5  ;;  %p7665_p2 = por %p7664_p1, %p7663_p0 }
0x356d   : > { %p7659_p13 = pneg %p7658_p12 }
0x356f   : > { %p7666_p3 = pnand %p7665_p2, %p7659_p13 }
0x35d2   : > { %v7264_v31 = vpop.permute.xlu1 %7263 }
0x35d3   : > { %v7266_v38 = vunpack.i.h.bf16 %v7264_v31  ;;  %v7265_v16 = vunpack.i.l.bf16 %v7264_v31  ;;  %v7400_v31 = vld [vmem:[%s9473_s8 + $0x130] sm:$0xff]  }
0x35d5   : > { %v5578_v40 = vsel %vm707_vm1, %v9236_v9, %v7266_v38  ;;  %v5577_v45 = vsel %vm707_vm1, %v9234_v47, %v7265_v16  ;;  %v7401_v38 = vld [vmem:[%s9473_s8 + $0x128] sm:$0xff]   ;;  %v7402_v16 = vld [vmem:[%s9473_s8 + $0x120] sm:$0xff]  }
0x35da   : > { %v7269_v59 = vpop.permute.xlu1 %7268 }
0x35db   : > { %v7271_v36 = vunpack.i.h.bf16 %v7269_v59  ;;  %v7270_v39 = vunpack.i.l.bf16 %v7269_v59  ;;  %v7403_v59 = vld [vmem:[%s9473_s8 + $0x178] sm:$0xff]  }
0x35dd   : > { %v5579_v49 = vsel %vm1238_vm5, %v5577_v45, %v7270_v39  ;;  %v5580_v50 = vsel %vm1238_vm5, %v5578_v40, %v7271_v36  ;;  %v7404_v36 = vld [vmem:[%s9473_s8 + $0x170] sm:$0xff]   ;;  %v7405_v39 = vld [vmem:[%s9473_s8 + $0x168] sm:$0xff]   ;;  %v7406_v40 = vld [vmem:[%s9473_s8 + $0x160] sm:$0xff]  }
0x35de   : > { %v5588_v27 = vpack.c.bf16 %v5580_v50, %v5579_v49  ;;  %v6511_v45 = vld [vmem:[%s9469_s4 + $0x3] ss:$4 sm:$0x3] }
0x35df   : > { %v5714_v49 = vrot.slane %v6511_v45, %v7921_v6  ;;  %v5718_v50 = vrot.slane %v6511_v45, %v7951_v30 }
0x35e0   : > { %7151 = vmatmul.mubr.msk.bf16.vlgmr.msra.gmra.mxu1 %vm468_vm0, %v5588_v27 }
0x35e1   : > { %5920 = vmatpush1.bf16.msra.mxu1 %v7395_v0 }
0x35e2   : > { %5921 = vmatprep.subr.bf16.mxu1 %v7718_v42 }
0x35e5   : > { %5922 = vmatpush1.bf16.msra.mxu1 %v7396_v61 }
0x35e6   : > { %5923 = vmatprep.subr.bf16.mxu1 %v7718_v42 }
0x35e9   : > { %5924 = vmatpush1.bf16.msra.mxu1 %v7397_v8  ;;  %v6556_v8 = vld [vmem:[%s9466_s1 + $0x2f] ss:$0 sm:$0xff] }
0x35ea   : > { %5925 = vmatprep.subr.bf16.mxu1 %v7718_v42 }
0x35ed   : > { %5926 = vmatpush1.bf16.msra.mxu1 %v7398_v4 }
0x35ee   : > { %5927 = vmatprep.subr.bf16.mxu1 %v7718_v42 }
0x35f1   : > { %5928 = vmatpush1.bf16.msra.mxu1 %v7399_v62  ;;  %v7408_v62 = vld [vmem:[%s9476_s11 + $0x8] sm:$0xff]  }
0x35f2   : > { %5929 = vmatprep.subr.bf16.mxu1 %v7718_v42 }
0x35f5   : > { %5930 = vmatpush1.bf16.msra.mxu1 %v7400_v31  ;;  %v7409_v31 = vld [vmem:[%s9476_s11] sm:$0xff]  }
0x35f6   : > { %5931 = vmatprep.subr.bf16.mxu1 %v7718_v42 }
0x35f9   : > { %5932 = vmatpush1.bf16.msra.mxu1 %v7401_v38 }
0x35fa   : > { %5933 = vmatprep.subr.bf16.mxu1 %v7718_v42 }
0x35fd   : > { %5934 = vmatpush1.bf16.msra.mxu1 %v7402_v16 }
0x35fe   : > { %5943 = vmatprep.subr.bf16.mxu1 %v7718_v42 }
0x3601   : > { %5944 = vmatpush2.bf16.msra.mxu1 %v7403_v59 }
0x3602   : > { %5945 = vmatprep.subr.bf16.mxu1 %v7718_v42 }
0x3605   : > { %5946 = vmatpush2.bf16.msra.mxu1 %v7404_v36 }
0x3606   : > { %5947 = vmatprep.subr.bf16.mxu1 %v7718_v42 }
0x3609   : > { %5948 = vmatpush2.bf16.msra.mxu1 %v7405_v39 }
0x360a   : > { %5949 = vmatprep.subr.bf16.mxu1 %v7718_v42 }
0x360d   : > { %5950 = vmatpush2.bf16.msra.mxu1 %v7406_v40 }
0x36a0   : > { %v5644_v44 = vpop.f32.mrf.mxu1 }
0x36a1   : > { %v5651_v15 = vadd.f32 %v5644_v44, %v9138_v37 }
0x36a2   : > { %v7152_v51 = vpop.f32.mrf.mxu1 }
0x36a3   : > { %v9295_v52 = vadd.f32 %v6502_v48, %v5651_v15 }
0x36a4   : > { %v5647_v9 = vpop.f32.mrf.mxu1 }
0x36a5   : > { %v5652_v47 = vadd.f32 %v5647_v9, %v9143_v29  ;;  %v5662_v24 = vsel %vm468_vm0, %v9295_v52, 0.0 }
0x36a6   : > { %5663 = vadd.xlane.f32.xlu0 %v5662_v24  ;;  %v7153_v3 = vpop.f32.mrf.mxu1 }
0x36a7   : > { %v9300_v54 = vadd.f32 %v6502_v48, %v5652_v47 }
0x36a9   : > { %v5665_v56 = vsel %vm468_vm0, %v9300_v54, 0.0 }
0x36aa   : > { %5666 = vadd.xlane.f32.xlu1 %v5665_v56 }
0x372f   : > { %v5664_v11 = vpop.xlane.xlu0 %5663 }
0x3730   : > { %v5668_v13 = vmul.f32 0.020833334, %v5664_v11 }
0x3732   : > { %v5670_v37 = vsub.f32 %v9295_v52, %v5668_v13 }
0x3733   : > { %v5667_v57 = vpop.xlane.xlu1 %5666 }
0x3734   : > { %v5669_v22 = vmul.f32 0.020833334, %v5667_v57  ;;  %v5672_v63 = vmul.f32 %v5670_v37, %v5670_v37 }
0x3736   : > { %v5671_v29 = vsub.f32 %v9300_v54, %v5669_v22  ;;  %v5674_v58 = vsel %vm468_vm0, %v5672_v63, 0.0 }
0x3737   : > { %5675 = vadd.xlane.f32.xlu0 %v5674_v58 }
0x3738   : > { %v5673_v32 = vmul.f32 %v5671_v29, %v5671_v29 }
0x373a   : > { %v5677_v34 = vsel %vm468_vm0, %v5673_v32, 0.0 }
0x373b   : > { %5678 = vadd.xlane.f32.xlu0 %v5677_v34 }
0x37c0   : > { %v5676_v7 = vpop.xlane.xlu0 %5675 }
0x37c1   : > { %v5680_v41 = vmul.f32 0.020833334, %v5676_v7 }
0x37c3   : > { %v5682_v17 = vadd.f32 1e-06, %v5680_v41 }
0x37c4   : > { %v5679_v19 = vpop.xlane.xlu0 %5678 }
0x37c5   : > { %7640 = vrsqrt.f32 %v5682_v17  ;;  %v5681_v20 = vmul.f32 0.020833334, %v5679_v19 }
0x37c7   : > { %v5683_v46 = vadd.f32 1e-06, %v5681_v20 }
0x37c9   : > { %7642 = vrsqrt.f32 %v5683_v46 }
0x37d2   : > { %v7641_v33 = vpop.eup %7640 }
0x37d3   : > { %v5686_v5 = vmul.f32 %v7641_v33, %v5670_v37 }
0x37d5   : > { %v5692_v21 = vmul.f32 %v6503_v2, %v5686_v5 }
0x37d6   : > { %v7643_v53 = vpop.eup %7642 }
0x37d7   : > { %v5687_v12 = vmul.f32 %v7643_v53, %v5671_v29  ;;  %v5698_v14 = vadd.f32 %v6504_v10, %v5692_v21 }
0x37d9   : > { %v5693_v1 = vmul.f32 %v6503_v2, %v5687_v12 }
0x37db   : > { %v5699_v18 = vadd.f32 %v6504_v10, %v5693_v1 }
0x37dd   : > { %v5707_v28 = vpack.c.bf16 %v5699_v18, %v5698_v14 }
0x37df   : > { %6518 = vmatmul.mubr.msk.bf16.vlgmr.msra.gmra.mxu0 %vm468_vm0, %v5707_v28  ;;  %v7407_v28 = vld [vmem:[%s9476_s11 + $0x10] sm:$0xff]  }
0x37e0   : > { %7160 = vmatprep.mubr.msk.bf16.mxu0 %vm7727_vm7, %v7724_v25  ;;  %7155 = vmatpush3.bf16.msra.mxu0 %v7407_v28 }
0x37e1   : > { %7156 = vmatprep.subr.bf16.mxu0 %v7724_v25 }
0x37e4   : > { %7157 = vmatpush3.bf16.msra.mxu0 %v7408_v62 }
0x37e5   : > { %7158 = vmatprep.subr.bf16.mxu0 %v7724_v25  ;;  %v6557_v25 = vld [vmem:[%s9466_s1 + $0x30] ss:$0 sm:$0xff] }
0x37e8   : > { %7159 = vmatpush3.bf16.msra.mxu0 %v7409_v31 }
0x389f   : > { %v5788_v27 = vpop.f32.mrf.mxu0 }
0x38a0   : > { %v5789_v44 = vadd.f32 %v5788_v27, %v5714_v49 }
0x38a1   : > { %v5790_v48 = vpop.f32.mrf.mxu0 }
0x38a2   : > { %v5791_v15 = vadd.f32 %v5790_v48, %v5718_v50  ;;  %v5801_v51 = vmul.f32 0.70710677, %v5789_v44  ;;  %v5797_v60 = vmul.f32 0.5, %v5789_v44  ;;  %v6558_v48 = vld [vmem:[%s9466_s1 + $0x31] ss:$0 sm:$0xff] }
0x38a3   : > { %v5792_v9 = vpop.f32.mrf.mxu0 }
0x38a4   : > { %v5802_v42 = vmul.f32 0.70710677, %v5791_v15  ;;  %v5793_v47 = vadd.f32 %v5792_v9, %v5714_v49  ;;  %v5798_v58 = vmul.f32 0.5, %v5791_v15 }
0x38a5   : > { %v5794_v24 = vpop.f32.mrf.mxu0 }
0x38a6   : > { %7644 = verf.f32 %v5802_v42  ;;  %v5803_v3 = vmul.f32 0.70710677, %v5793_v47  ;;  %v5795_v56 = vadd.f32 %v5794_v24, %v5718_v50  ;;  %v5799_v29 = vmul.f32 0.5, %v5793_v47  ;;  %v6559_v47 = vld [vmem:[%s9519_s14] ss:$0 sm:$0xff] }
0x38a7   : > { %7646 = verf.f32 %v5801_v51 }
0x38a8   : > { %7648 = verf.f32 %v5803_v3  ;;  %v5804_v11 = vmul.f32 0.70710677, %v5795_v56  ;;  %v5800_v32 = vmul.f32 0.5, %v5795_v56 }
0x38aa   : > { %7650 = verf.f32 %v5804_v11 }
0x38b3   : > { %v7645_v13 = vpop.eup %7644 }
0x38b4   : > { %v7647_v6 = vpop.eup %7646  ;;  %v5810_v30 = vadd.f32 1.0, %v7645_v13 }
0x38b5   : > { %v7649_v37 = vpop.eup %7648  ;;  %v5809_v63 = vadd.f32 1.0, %v7647_v6 }
0x38b6   : > { %v5811_v57 = vadd.f32 1.0, %v7649_v37  ;;  %v5814_v26 = vmul.f32 %v5810_v30, %v5798_v58 }
0x38b7   : > { %v7651_v22 = vpop.eup %7650  ;;  %v5813_v23 = vmul.f32 %v5809_v63, %v5797_v60 }
0x38b8   : > { %v5812_v34 = vadd.f32 1.0, %v7651_v22  ;;  %v5815_v55 = vmul.f32 %v5811_v57, %v5799_v29 }
0x38ba   : > { %v5816_v43 = vmul.f32 %v5812_v34, %v5800_v32  ;;  %v5842_v0 = vpack.c.bf16 %v5815_v55, %v5813_v23 }
0x38bc   : > { %v5843_v35 = vpack.c.bf16 %v5816_v43, %v5814_v26 }
0x38be   : > { %6555 = vmatprep.mubr.msk.bf16.mxu1 %vm1626_vm6, %v5843_v35 }
0x38bf   : > { %5952 = vmatmul.mubr.bf16.vlgmr.msra.gmra.mxu1 %v5842_v0 }
0x397f   : > { %v5953_v61 = vpop.f32.mrf.mxu1 }
0x3980   : > { %v5960_v4 = vadd.f32 %v5953_v61, %v9295_v52 }
0x3981   : > { %v5955_v7 = vpop.f32.mrf.mxu1 }
0x3982   : > { %v5967_v41 = vadd.f32 %v6556_v8, %v5960_v4 }
0x3983   : > { %v5956_v17 = vpop.f32.mrf.mxu1 }
0x3984   : > { %v5961_v19 = vadd.f32 %v5956_v17, %v9300_v54  ;;  %v5971_v20 = vsel %vm468_vm0, %v5967_v41, 0.0 }
0x3985   : > { %5972 = vadd.xlane.f32.xlu1 %v5971_v20  ;;  %v5958_v46 = vpop.f32.mrf.mxu1 }
0x3986   : > { %v5968_v33 = vadd.f32 %v6556_v8, %v5961_v19 }
0x3988   : > { %v5974_v5 = vsel %vm468_vm0, %v5968_v33, 0.0 }
0x3989   : > { %5975 = vadd.xlane.f32.xlu0 %v5974_v5 }
0x3a0e   : > { %v5973_v2 = vpop.xlane.xlu1 %5972 }
0x3a0f   : > { %v5977_v53 = vmul.f32 0.020833334, %v5973_v2 }
0x3a11   : > { %v5979_v21 = vsub.f32 %v5967_v41, %v5977_v53 }
0x3a12   : > { %v5976_v12 = vpop.xlane.xlu0 %5975 }
0x3a13   : > { %v5978_v10 = vmul.f32 0.020833334, %v5976_v12  ;;  %v5981_v1 = vmul.f32 %v5979_v21, %v5979_v21 }
0x3a15   : > { %v5980_v52 = vsub.f32 %v5968_v33, %v5978_v10  ;;  %v5983_v14 = vsel %vm468_vm0, %v5981_v1, 0.0 }
0x3a16   : > { %5984 = vadd.xlane.f32.xlu1 %v5983_v14 }
0x3a17   : > { %v5982_v18 = vmul.f32 %v5980_v52, %v5980_v52 }
0x3a19   : > { %v5986_v54 = vsel %vm468_vm0, %v5982_v18, 0.0 }
0x3a1a   : > { %5987 = vadd.xlane.f32.xlu0 %v5986_v54 }
0x3a9f   : > { %v5985_v38 = vpop.xlane.xlu1 %5984 }
0x3aa0   : > { %v5989_v16 = vmul.f32 0.020833334, %v5985_v38 }
0x3aa2   : > { %v5991_v59 = vadd.f32 1e-06, %v5989_v16 }
0x3aa3   : > { %v5988_v36 = vpop.xlane.xlu0 %5987 }
0x3aa4   : > { %7652 = vrsqrt.f32 %v5991_v59  ;;  %v5990_v39 = vmul.f32 0.020833334, %v5988_v36 }
0x3aa6   : > { %v5992_v40 = vadd.f32 1e-06, %v5990_v39 }
0x3aa8   : > { %7654 = vrsqrt.f32 %v5992_v40 }
0x3ab1   : > { %v7653_v45 = vpop.eup %7652 }
0x3ab2   : > { %v5995_v49 = vmul.f32 %v7653_v45, %v5979_v21 }
0x3ab4   : > { %v6001_v27 = vmul.f32 %v6557_v25, %v5995_v49 }
0x3ab5   : > { %v7655_v50 = vpop.eup %7654 }
0x3ab6   : > { %v5996_v44 = vmul.f32 %v7655_v50, %v5980_v52  ;;  %v6007_v51 = vadd.f32 %v6558_v48, %v6001_v27 }
0x3ab8   : > { %v6002_v15 = vmul.f32 %v6557_v25, %v5996_v44 }
0x3aba   : > { %v6008_v9 = vadd.f32 %v6558_v48, %v6002_v15 }
0x3abc   : > { %v6015_v42 = vpack.c.bf16 %v6008_v9, %v6007_v51 }
0x3abe   : > { %7161 = vmatmul.mubr.msk.bf16.vlgmr.msra.gmra.mxu0 %vm468_vm0, %v6015_v42 }
0x3b7e   : > { %v6078_v24 = vpop.f32.mrf.mxu0 }
0x3b7f   : > { %v6079_v3 = vadd.f32 %v6559_v47, %v6078_v24 }
0x3b80   : > { %v7162_v56 = vpop.f32.mrf.mxu0 }
0x3b81   : > { %6084 = vst [vmem:[%s432_s20] sm:$0x1] %v6079_v3 }
0x3b82   : > { %v6081_v11 = vpop.f32.mrf.mxu0 }
0x3b83   : > { %7669 = shalt.err (!%p7666_p3)
}
0x3b84   : > { %s7670_s25 = scalar_lea.hbm %s9424_s30, 16  ;;  %s7674_s13 = scalar_lea.hbm %s9520_s23, 32 }
0x3b85   : > { %p7671_p4 = scmp.ne.s32.totalorder %s9424_s30, %s7670_s25  ;;  %p7675_p9 = scmp.lt.s32.totalorder %s9424_s30, %s9520_s23 }
0x3b86   : > { %p7676_p10 = scmp.lt.s32.totalorder %s7674_s13, %s7670_s25 }
0x3b87   : > { %p7672_p7 = pnand %p7671_p4, %p7837_p5 }
0x3b88   : > { %p7677_p11 = por %p7676_p10, %p7675_p9 }
0x3b89   : > { %p7673_p8 = pneg %p7672_p7 }
0x3b8b   : > { %p7678_p12 = pnand %p7677_p11, %p7673_p8 }
0x3b8d   : > { %7681 = shalt.err (!%p7678_p12)
}
0x3b8e   : > { %7183 = dma.vmem_to_hbm [thread:$0]  (%p7837_p5), %s9426_s27, 16, %s9424_s30, %s6086_s21   ;;  %v7163_v13 = vpop.f32.mrf.mxu0 }
0x3b8f PF: > { %s9521_s19 = sld [smem:[#allocation7_spill]] }
0x3b90   : > { %s9522_s20 = sld [smem:[#allocation5_spill]] }
0x3b95   : > { %p7189_p13 = scmp.ge.s32.totalorder %s9521_s19, 2 }
0x3b96   : > { %s6110_s24 = sand.u32 1, %s9522_s20  }
0x3b97   : > { %p7186_p0 = pnand %p7189_p13, %p7841_p6  ;;  %s6111_s17 = scalar_lea.sflag [#allocation3], %s6110_s24 }
0x3b99   : > { %p7187_p1 = pneg %p7186_p0 }
0x3b9b   : > { %7699 = dma.done.wait (%p7187_p1), %s6111_s17, 16  }
0x3b9c   : > { %7701 = vsyncadd (%p7187_p1), %s6111_s17, 4294967280  ;;  %s9524_s28 = sld [smem:[#allocation8_spill]]  ;;  %s9527_s25 = smov %s7708_s26 }
0x3b9d   : > { %s9525_s29 = sld [smem:[#allocation6_spill]] }
0x3b9e   : > { %s9526_s27 = sld [smem:[#allocation9_spill]] }
0x3ba2   : > { %p23_p2 = scmp.ge.s32.totalorder %s9524_s28, 4  }
0x3ba3   : > { %s9528_s26 = smov %s9525_s29 }
0x3ba4   :  { %25 = sbr.rel (!%p23_p2) target bundleno = 7 (0x7), region = 130 }
0x3ba9   :  { %6115 = vsyncpa [#allocation3], 1 }
0x3baa   :  { %6117 = vsyncpa [#allocation3 + $0x1], 1 }

</bundles_post_ra>
